<compile_context>
chip_gen: v6e
topology: v6e:2x2x1
jax: 0.10.0
libtpu: 0.0.40
codegen_flags: <defaults>
</compile_context>

<pallas_src>
import functools

import jax
import jax.numpy as jnp
from jax.experimental import pallas as pl
from jax.experimental.pallas import tpu as pltpu

FEATURE_DIM = 512
CLUB_HIDDEN = 256            # CLUBSample(512,512,512) -> hidden_size // 2
AGE_BINS = 8
AGE_PAD = 128                # lane-dense output slab (unmasked stores)
COSFACE_S = 30.0
COSFACE_M = 0.35
BB_TK = 512                  # backbone K-tile (multiple of 128)
VMEM_LIMIT = 32 * 1024 * 1024  # explicit scoped-VMEM budget, safe on v5e/v6e/v7x


def _vmem_spec():
    return pl.BlockSpec(memory_space=pltpu.MemorySpace.VMEM)


# ---------------------------------------------------------------------------
# Kernel 1: fused backbone_id + backbone_ae projection
#   x:[B, K_pad] bf16, w:[K_pad, 1024] bf16 (= [bb_id | bb_ae] along N)
#   grid = (N/512 "parallel", K_pad/BB_TK "arbitrary"); f32 accumulator scratch.
# ---------------------------------------------------------------------------
def _backbone_kernel(x_ref, w_ref, b_ref, o_ref, acc_ref):
    k = pl.program_id(1)

    @pl.when(k == 0)
    def _():
        acc_ref[...] = jnp.zeros_like(acc_ref)

    acc_ref[...] += jnp.dot(x_ref[...], w_ref[...],
                            preferred_element_type=jnp.float32)

    @pl.when(k == pl.num_programs(1) - 1)
    def _():
        o_ref[...] = acc_ref[...] + b_ref[...]


def backbone(x_bf16, w_bf16, b_f32):
    B, k_pad = x_bf16.shape
    N = w_bf16.shape[1]                       # 2 * FEATURE_DIM
    tn = FEATURE_DIM
    return pl.pallas_call(
        _backbone_kernel,
        out_shape=jax.ShapeDtypeStruct((B, N), jnp.float32),
        grid_spec=pltpu.PrefetchScalarGridSpec(
            num_scalar_prefetch=0,
            grid=(N // tn, k_pad // BB_TK),
            in_specs=[
                pl.BlockSpec((B, BB_TK), lambda n, k: (0, k)),     # x (shared stream)
                pl.BlockSpec((BB_TK, tn), lambda n, k: (k, n)),    # fused weight
                pl.BlockSpec((1, tn), lambda n, k: (0, n)),        # fused bias
            ],
            out_specs=pl.BlockSpec((B, tn), lambda n, k: (0, n)),
            scratch_shapes=[pltpu.VMEM((B, tn), jnp.float32)],
        ),
        compiler_params=pltpu.CompilerParams(
            dimension_semantics=("parallel", "arbitrary"),
            vmem_limit_bytes=VMEM_LIMIT,
        ),
    )(x_bf16, w_bf16, b_f32)


# ---------------------------------------------------------------------------
# Kernel 2: fused head (age linear + CLUB mu/logvar + mi_est/loglikeli + CosFace)
# Everything stays VMEM-resident; the CLUB shuffle is done in-kernel with a
# permutation-matrix matmul on the resident embs_id (no HBM round trip).
# ---------------------------------------------------------------------------
def _head_kernel(e_ref, wage_ref, bage_ref,
                 wmu1_ref, bmu1_ref, wmu2_ref, bmu2_ref,
                 wlv1_ref, blv1_ref, wlv2_ref, blv2_ref,
                 wnt_ref, lab_ref, perm_ref,
                 id_ref, age_ref, mi_ref, ll_ref, *, s, m):
    embs_id = e_ref[:, :FEATURE_DIM]          # lane-aligned static slices
    embs_ae = e_ref[:, FEATURE_DIM:]
    B = embs_id.shape[0]

    # age_estimator (output padded to 128 lanes -> unmasked stores)
    age_ref[...] = (jnp.dot(embs_ae, wage_ref[...],
                            preferred_element_type=jnp.float32) + bage_ref[...])

    # CLUBSample.get_mu_logvar(embs_ae)
    h_mu = jnp.maximum(jnp.dot(embs_ae, wmu1_ref[...],
                               preferred_element_type=jnp.float32)
                       + bmu1_ref[...], 0.0)
    mu = jnp.dot(h_mu, wmu2_ref[...],
                 preferred_element_type=jnp.float32) + bmu2_ref[...]
    h_lv = jnp.maximum(jnp.dot(embs_ae, wlv1_ref[...],
                               preferred_element_type=jnp.float32)
                       + blv1_ref[...], 0.0)
    logvar = jnp.tanh(jnp.dot(h_lv, wlv2_ref[...],
                              preferred_element_type=jnp.float32) + blv2_ref[...])

    # y_samples[randperm] without leaving VMEM: one-hot(perm) @ embs_id
    col = jax.lax.broadcasted_iota(jnp.int32, (B, B), 1)
    perm_mat = (col == perm_ref[...]).astype(jnp.float32)      # perm_ref: [B, 1]
    y_shuf = jnp.dot(perm_mat, embs_id, preferred_element_type=jnp.float32)

    inv_var = jnp.exp(-logvar)
    pos = -((mu - embs_id) ** 2) * inv_var
    neg = -((mu - y_shuf) ** 2) * inv_var
    ll_rows = jnp.sum(pos - logvar, axis=1, keepdims=True)     # [B, 1]
    mi_rows = jnp.sum(pos - neg, axis=1, keepdims=True)        # [B, 1]
    ll_ref[...] = jnp.mean(ll_rows, axis=0, keepdims=True)             # loglikeli
    mi_ref[...] = jnp.mean(mi_rows, axis=0, keepdims=True) * 0.5       # mi / 2

    # AddMarginProduct: weight is pre-normalized & transposed to [D, n_cls_pad]
    inv_norm = jax.lax.rsqrt(
        jnp.maximum(jnp.sum(embs_id * embs_id, axis=1, keepdims=True), 1e-24))
    xn = embs_id * inv_norm                                    # F.normalize, eps 1e-12
    cos = jnp.dot(xn, wnt_ref[...], preferred_element_type=jnp.float32)
    cls_ids = jax.lax.broadcasted_iota(jnp.int32, cos.shape, 1)
    one_hot = (cls_ids == lab_ref[...]).astype(jnp.float32)    # lab_ref: [B, 1]
    id_ref[...] = s * (cos - m * one_hot)


def fused_head(embs, params, wn_t, ys, perm, *, s=COSFACE_S, m=COSFACE_M):
    B = embs.shape[0]
    n_cls_pad = wn_t.shape[1]
    w_age, b_age = params["age"]
    w_mu1, b_mu1 = params["mu1"]
    w_mu2, b_mu2 = params["mu2"]
    w_lv1, b_lv1 = params["lv1"]
    w_lv2, b_lv2 = params["lv2"]
    out_shape = (
        jax.ShapeDtypeStruct((B, n_cls_pad), jnp.float32),   # id logits (padded)
        jax.ShapeDtypeStruct((B, AGE_PAD), jnp.float32),     # age logits (padded)
        jax.ShapeDtypeStruct((1, 1), jnp.float32),           # mi upper bound
        jax.ShapeDtypeStruct((1, 1), jnp.float32),           # loglikelihood
    )
    return pl.pallas_call(
        functools.partial(_head_kernel, s=s, m=m),
        out_shape=out_shape,
        in_specs=[_vmem_spec()] * 14,
        out_specs=tuple(_vmem_spec() for _ in range(4)),
        compiler_params=pltpu.CompilerParams(vmem_limit_bytes=VMEM_LIMIT),
    )(embs, w_age, b_age, w_mu1, b_mu1, w_mu2, b_mu2,
      w_lv1, b_lv1, w_lv2, b_lv2, wn_t,
      ys.reshape(B, 1).astype(jnp.int32),
      perm.reshape(B, 1).astype(jnp.int32))


# ---------------------------------------------------------------------------
# Parameters (init_weights: Linear ~ N(0, 0.01), bias 0); weights stored padded.
# ---------------------------------------------------------------------------
def init_params(key, in_dim, n_cls):
    ks = jax.random.split(key, 8)
    k_pad = pl.cdiv(in_dim, BB_TK) * BB_TK
    n_cls_pad = pl.cdiv(n_cls, 128) * 128

    def lin(k, kin, kout, std=0.01, pad_in=0, pad_out=0):
        w = jax.random.normal(k, (kin, kout), jnp.float32) * std  # stored [K, N]
        b = jnp.zeros((kout,), jnp.float32)
        if pad_in or pad_out:
            w = jnp.pad(w, ((0, pad_in), (0, pad_out)))
            b = jnp.pad(b, ((0, pad_out),))
        return w, b.reshape(1, -1)

    w_id, b_id = lin(ks[0], in_dim, FEATURE_DIM, std=0.02, pad_in=k_pad - in_dim)
    w_ae, b_ae = lin(ks[1], in_dim, FEATURE_DIM, std=0.02, pad_in=k_pad - in_dim)

    return {
        # fused backbone projection: [K_pad, 1024] = [bb_id | bb_ae], bf16 stream
        "bb_w": jnp.concatenate([w_id, w_ae], axis=1).astype(jnp.bfloat16),
        "bb_b": jnp.concatenate([b_id, b_ae], axis=1),
        "age": lin(ks[2], FEATURE_DIM, AGE_BINS, pad_out=AGE_PAD - AGE_BINS),
        "mu1": lin(ks[3], FEATURE_DIM, CLUB_HIDDEN),
        "mu2": lin(ks[4], CLUB_HIDDEN, FEATURE_DIM),
        "lv1": lin(ks[5], FEATURE_DIM, CLUB_HIDDEN),
        "lv2": lin(ks[6], CLUB_HIDDEN, FEATURE_DIM),
        # AddMarginProduct weight [n_cls_pad, feature_dim] (zero-padded rows)
        "margin_w": jnp.pad(
            jax.random.normal(ks[7], (n_cls, FEATURE_DIM), jnp.float32) * 0.01,
            ((0, n_cls_pad - n_cls), (0, 0))),
    }


# ---------------------------------------------------------------------------
# Forward pass
# ---------------------------------------------------------------------------
@functools.partial(jax.jit, static_argnames=("n_cls",))
def forward(params, xs_nchw, ys, perm, *, n_cls):
    B = xs_nchw.shape[0]
    x = xs_nchw.reshape(B, -1)                       # glue: NCHW -> [B, C*H*W]
    k_pad = params["bb_w"].shape[0]
    x = jnp.pad(x, ((0, 0), (0, k_pad - x.shape[1]))).astype(jnp.bfloat16)

    embs = backbone(x, params["bb_w"], params["bb_b"])   # [B, 1024] f32 (id | ae)

    # F.normalize(margin_w) per call (as PyTorch does on the live weight),
    # transposed to [D, n_cls_pad] so the kernel dot needs no XLU transpose.
    w = params["margin_w"]
    wn_t = (w * jax.lax.rsqrt(
        jnp.maximum(jnp.sum(w * w, axis=1, keepdims=True), 1e-24))).T

    id_pad, age_pad, mi, ll = fused_head(embs, params, wn_t, ys, perm)
    return id_pad[:, :n_cls], age_pad[:, :AGE_BINS], mi[0, 0], ll[0, 0]


# ---------------------------------------------------------------------------
if __name__ == "__main__":
    key = jax.random.PRNGKey(0)
    kx, kp, ky, kperm = jax.random.split(key, 4)

    B, C, H, W = 8, 3, 16, 16
    n_cls = 16

    xs = jax.random.normal(kx, (B, C, H, W), jnp.float32)
    ys = jax.random.randint(ky, (B,), 0, n_cls, jnp.int32)
    # TODO(synk): PyTorch draws a fresh torch.randperm per mi_est call; thread a
    # fresh PRNG key per training step here instead of this fixed one.
    perm = jax.random.permutation(kperm, B)

    params = init_params(kp, C * H * W, n_cls)

    out = jax.block_until_ready(forward(params, xs, ys, perm, n_cls=n_cls))
    id_logits, age_logits, mi_ub, loglik = out
    assert id_logits.shape == (B, n_cls)
    assert age_logits.shape == (B, AGE_BINS)
    assert mi_ub.shape == () and loglik.shape == ()
    print("KERNEL_OK")
</pallas_src>

<mosaic_0001>
module attributes {stable_mosaic.version = 11 : i64} {
  func.func @_backbone_kernel(%arg0: i32, %arg1: i32, %arg2: memref<8x512xbf16, #tpu.memory_space<vmem>>, %arg3: memref<512x512xbf16, #tpu.memory_space<vmem>>, %arg4: memref<1x512xf32, #tpu.memory_space<vmem>>, %arg5: memref<8x512xf32, #tpu.memory_space<vmem>>, %arg6: memref<8x512xf32, #tpu.memory_space<vmem>>) attributes {dimension_semantics = [#tpu.dimension_semantics<parallel>, #tpu.dimension_semantics<arbitrary>], iteration_bounds = array<i64: 2, 2>, scalar_prefetch = 0 : i64, scratch_operands = 1 : i64, tpu.core_type = #tpu.core_type<tc>, window_params = [{transform_indices = @transform_0, window_bounds = array<i64: 8, 512>}, {transform_indices = @transform_1, window_bounds = array<i64: 512, 512>}, {transform_indices = @transform_2, window_bounds = array<i64: 1, 512>}, {transform_indices = @transform_3, window_bounds = array<i64: 8, 512>}]} {
    %c0_i32 = arith.constant 0 : i32
    %0 = arith.cmpi eq, %arg1, %c0_i32 : i32
    %1 = arith.extui %0 : i1 to i32
    %c0_i32_0 = arith.constant 0 : i32
    %2 = arith.cmpi ne, %1, %c0_i32_0 : i32
    scf.if %2 {
      %cst_9 = arith.constant 0.000000e+00 : f32
      %12 = vector.broadcast %cst_9 : f32 to vector<8x512xf32>
      %c0_10 = arith.constant 0 : index
      %c0_11 = arith.constant 0 : index
      %13 = vector.load %arg6[%c0_10, %c0_11] : memref<8x512xf32, #tpu.memory_space<vmem>>, vector<8x512xf32>
      tpu.vector_store %arg6[%c0_10, %c0_11], %12 {strides = array<i32>} : memref<8x512xf32, #tpu.memory_space<vmem>>, vector<8x512xf32>,
    } else {
    }
    %c0 = arith.constant 0 : index
    %c0_1 = arith.constant 0 : index
    %3 = vector.load %arg6[%c0, %c0_1] : memref<8x512xf32, #tpu.memory_space<vmem>>, vector<8x512xf32>
    %c0_2 = arith.constant 0 : index
    %c0_3 = arith.constant 0 : index
    %4 = vector.load %arg2[%c0_2, %c0_3] : memref<8x512xbf16, #tpu.memory_space<vmem>>, vector<8x512xbf16>
    %c0_4 = arith.constant 0 : index
    %c0_5 = arith.constant 0 : index
    %5 = vector.load %arg3[%c0_4, %c0_5] : memref<512x512xbf16, #tpu.memory_space<vmem>>, vector<512x512xbf16>
    %cst = arith.constant dense<0.000000e+00> : vector<8x512xf32>
    %6 = tpu.matmul %4, %5, %cst {dimension_numbers = #tpu.dot_dimension_numbers<[1], [0], [0], [1], [0, 0, 1, 1], [], []>} : vector<8x512xbf16>, vector<512x512xbf16>, vector<8x512xf32> -> vector<8x512xf32>
    %7 = arith.addf %3, %6 : vector<8x512xf32>
    %c0_6 = arith.constant 0 : index
    %c0_7 = arith.constant 0 : index
    %8 = vector.load %arg6[%c0_6, %c0_7] : memref<8x512xf32, #tpu.memory_space<vmem>>, vector<8x512xf32>
    tpu.vector_store %arg6[%c0_6, %c0_7], %7 {strides = array<i32>} : memref<8x512xf32, #tpu.memory_space<vmem>>, vector<8x512xf32>,
    %c1_i32 = arith.constant 1 : i32
    %9 = arith.cmpi eq, %arg1, %c1_i32 : i32
    %10 = arith.extui %9 : i1 to i32
    %c0_i32_8 = arith.constant 0 : i32
    %11 = arith.cmpi ne, %10, %c0_i32_8 : i32
    scf.if %11 {
      %c0_9 = arith.constant 0 : index
      %c0_10 = arith.constant 0 : index
      %12 = vector.load %arg6[%c0_9, %c0_10] : memref<8x512xf32, #tpu.memory_space<vmem>>, vector<8x512xf32>
      %c0_11 = arith.constant 0 : index
      %c0_12 = arith.constant 0 : index
      %13 = vector.load %arg4[%c0_11, %c0_12] : memref<1x512xf32, #tpu.memory_space<vmem>>, vector<1x512xf32>
      %14 = vector.broadcast %13 : vector<1x512xf32> to vector<8x512xf32>
      %15 = arith.addf %12, %14 : vector<8x512xf32>
      %c0_13 = arith.constant 0 : index
      %c0_14 = arith.constant 0 : index
      %16 = vector.load %arg5[%c0_13, %c0_14] : memref<8x512xf32, #tpu.memory_space<vmem>>, vector<8x512xf32>
      tpu.vector_store %arg5[%c0_13, %c0_14], %15 {strides = array<i32>} : memref<8x512xf32, #tpu.memory_space<vmem>>, vector<8x512xf32>,
    } else {
    }
    return
  }
  func.func @transform_0(%arg0: i32, %arg1: i32) -> (i32, i32) {
    %c0_i32 = arith.constant 0 : i32
    %c0_i32_0 = arith.constant 0 : i32
    return %c0_i32, %arg1 : i32, i32
  }
  func.func @transform_1(%arg0: i32, %arg1: i32) -> (i32, i32) {
    %c0_i32 = arith.constant 0 : i32
    return %arg1, %arg0 : i32, i32
  }
  func.func @transform_2(%arg0: i32, %arg1: i32) -> (i32, i32) {
    %c0_i32 = arith.constant 0 : i32
    %c0_i32_0 = arith.constant 0 : i32
    return %c0_i32, %arg0 : i32, i32
  }
  func.func @transform_3(%arg0: i32, %arg1: i32) -> (i32, i32) {
    %c0_i32 = arith.constant 0 : i32
    %c0_i32_0 = arith.constant 0 : i32
    return %c0_i32, %arg0 : i32, i32
  }
}

module attributes {stable_mosaic.version = 11 : i64} {
  func.func @_head_kernel(%arg0: memref<8x1024xf32, #tpu.memory_space<vmem>>, %arg1: memref<512x128xf32, #tpu.memory_space<vmem>>, %arg2: memref<1x128xf32, #tpu.memory_space<vmem>>, %arg3: memref<512x256xf32, #tpu.memory_space<vmem>>, %arg4: memref<1x256xf32, #tpu.memory_space<vmem>>, %arg5: memref<256x512xf32, #tpu.memory_space<vmem>>, %arg6: memref<1x512xf32, #tpu.memory_space<vmem>>, %arg7: memref<512x256xf32, #tpu.memory_space<vmem>>, %arg8: memref<1x256xf32, #tpu.memory_space<vmem>>, %arg9: memref<256x512xf32, #tpu.memory_space<vmem>>, %arg10: memref<1x512xf32, #tpu.memory_space<vmem>>, %arg11: memref<512x128xf32, #tpu.memory_space<vmem>>, %arg12: memref<8x1xi32, #tpu.memory_space<vmem>>, %arg13: memref<8x1xi32, #tpu.memory_space<vmem>>, %arg14: memref<8x128xf32, #tpu.memory_space<vmem>>, %arg15: memref<8x128xf32, #tpu.memory_space<vmem>>, %arg16: memref<1x1xf32, #tpu.memory_space<vmem>>, %arg17: memref<1x1xf32, #tpu.memory_space<vmem>>) attributes {dimension_semantics = [], scalar_prefetch = 0 : i64, scratch_operands = 0 : i64, tpu.core_type = #tpu.core_type<tc>} {
    %c0 = arith.constant 0 : index
    %c0_0 = arith.constant 0 : index
    %0 = vector.load %arg0[%c0, %c0_0] : memref<8x1024xf32, #tpu.memory_space<vmem>>, vector<8x512xf32>
    %c0_1 = arith.constant 0 : index
    %c512 = arith.constant 512 : index
    %1 = vector.load %arg0[%c0_1, %c512] : memref<8x1024xf32, #tpu.memory_space<vmem>>, vector<8x512xf32>
    %c0_2 = arith.constant 0 : index
    %c0_3 = arith.constant 0 : index
    %2 = vector.load %arg1[%c0_2, %c0_3] : memref<512x128xf32, #tpu.memory_space<vmem>>, vector<512x128xf32>
    %cst = arith.constant dense<0.000000e+00> : vector<8x128xf32>
    %3 = tpu.matmul %1, %2, %cst {dimension_numbers = #tpu.dot_dimension_numbers<[1], [0], [0], [1], [0, 0, 1, 1], [], []>} : vector<8x512xf32>, vector<512x128xf32>, vector<8x128xf32> -> vector<8x128xf32>
    %c0_4 = arith.constant 0 : index
    %c0_5 = arith.constant 0 : index
    %4 = vector.load %arg2[%c0_4, %c0_5] : memref<1x128xf32, #tpu.memory_space<vmem>>, vector<1x128xf32>
    %5 = vector.broadcast %4 : vector<1x128xf32> to vector<8x128xf32>
    %6 = arith.addf %3, %5 : vector<8x128xf32>
    %c0_6 = arith.constant 0 : index
    %c0_7 = arith.constant 0 : index
    %7 = vector.load %arg15[%c0_6, %c0_7] : memref<8x128xf32, #tpu.memory_space<vmem>>, vector<8x128xf32>
    tpu.vector_store %arg15[%c0_6, %c0_7], %6 {strides = array<i32>} : memref<8x128xf32, #tpu.memory_space<vmem>>, vector<8x128xf32>,
    %c0_8 = arith.constant 0 : index
    %c0_9 = arith.constant 0 : index
    %8 = vector.load %arg3[%c0_8, %c0_9] : memref<512x256xf32, #tpu.memory_space<vmem>>, vector<512x256xf32>
    %cst_10 = arith.constant dense<0.000000e+00> : vector<8x256xf32>
    %9 = tpu.matmul %1, %8, %cst_10 {dimension_numbers = #tpu.dot_dimension_numbers<[1], [0], [0], [1], [0, 0, 1, 1], [], []>} : vector<8x512xf32>, vector<512x256xf32>, vector<8x256xf32> -> vector<8x256xf32>
    %c0_11 = arith.constant 0 : index
    %c0_12 = arith.constant 0 : index
    %10 = vector.load %arg4[%c0_11, %c0_12] : memref<1x256xf32, #tpu.memory_space<vmem>>, vector<1x256xf32>
    %11 = vector.broadcast %10 : vector<1x256xf32> to vector<8x256xf32>
    %12 = arith.addf %9, %11 : vector<8x256xf32>
    %cst_13 = arith.constant 0.000000e+00 : f32
    %13 = vector.broadcast %cst_13 : f32 to vector<8x256xf32>
    %14 = arith.maximumf %12, %13 : vector<8x256xf32>
    %c0_14 = arith.constant 0 : index
    %c0_15 = arith.constant 0 : index
    %15 = vector.load %arg5[%c0_14, %c0_15] : memref<256x512xf32, #tpu.memory_space<vmem>>, vector<256x512xf32>
    %cst_16 = arith.constant dense<0.000000e+00> : vector<8x512xf32>
    %16 = tpu.matmul %14, %15, %cst_16 {dimension_numbers = #tpu.dot_dimension_numbers<[1], [0], [0], [1], [0, 0, 1, 1], [], []>} : vector<8x256xf32>, vector<256x512xf32>, vector<8x512xf32> -> vector<8x512xf32>
    %c0_17 = arith.constant 0 : index
    %c0_18 = arith.constant 0 : index
    %17 = vector.load %arg6[%c0_17, %c0_18] : memref<1x512xf32, #tpu.memory_space<vmem>>, vector<1x512xf32>
    %18 = vector.broadcast %17 : vector<1x512xf32> to vector<8x512xf32>
    %19 = arith.addf %16, %18 : vector<8x512xf32>
    %c0_19 = arith.constant 0 : index
    %c0_20 = arith.constant 0 : index
    %20 = vector.load %arg7[%c0_19, %c0_20] : memref<512x256xf32, #tpu.memory_space<vmem>>, vector<512x256xf32>
    %cst_21 = arith.constant dense<0.000000e+00> : vector<8x256xf32>
    %21 = tpu.matmul %1, %20, %cst_21 {dimension_numbers = #tpu.dot_dimension_numbers<[1], [0], [0], [1], [0, 0, 1, 1], [], []>} : vector<8x512xf32>, vector<512x256xf32>, vector<8x256xf32> -> vector<8x256xf32>
    %c0_22 = arith.constant 0 : index
    %c0_23 = arith.constant 0 : index
    %22 = vector.load %arg8[%c0_22, %c0_23] : memref<1x256xf32, #tpu.memory_space<vmem>>, vector<1x256xf32>
    %23 = vector.broadcast %22 : vector<1x256xf32> to vector<8x256xf32>
    %24 = arith.addf %21, %23 : vector<8x256xf32>
    %cst_24 = arith.constant 0.000000e+00 : f32
    %25 = vector.broadcast %cst_24 : f32 to vector<8x256xf32>
    %26 = arith.maximumf %24, %25 : vector<8x256xf32>
    %c0_25 = arith.constant 0 : index
    %c0_26 = arith.constant 0 : index
    %27 = vector.load %arg9[%c0_25, %c0_26] : memref<256x512xf32, #tpu.memory_space<vmem>>, vector<256x512xf32>
    %cst_27 = arith.constant dense<0.000000e+00> : vector<8x512xf32>
    %28 = tpu.matmul %26, %27, %cst_27 {dimension_numbers = #tpu.dot_dimension_numbers<[1], [0], [0], [1], [0, 0, 1, 1], [], []>} : vector<8x256xf32>, vector<256x512xf32>, vector<8x512xf32> -> vector<8x512xf32>
    %c0_28 = arith.constant 0 : index
    %c0_29 = arith.constant 0 : index
    %29 = vector.load %arg10[%c0_28, %c0_29] : memref<1x512xf32, #tpu.memory_space<vmem>>, vector<1x512xf32>
    %30 = vector.broadcast %29 : vector<1x512xf32> to vector<8x512xf32>
    %31 = arith.addf %28, %30 : vector<8x512xf32>
    %32 = math.tanh %31 : vector<8x512xf32>
    %33 = tpu.iota {dimensions = array<i32: 1>} : vector<8x8xi32>
    %c0_30 = arith.constant 0 : index
    %c0_31 = arith.constant 0 : index
    %34 = vector.load %arg13[%c0_30, %c0_31] : memref<8x1xi32, #tpu.memory_space<vmem>>, vector<8x1xi32>
    %35 = vector.broadcast %34 : vector<8x1xi32> to vector<8x8xi32>
    %36 = arith.cmpi eq, %33, %35 : vector<8x8xi32>
    %37 = arith.extui %36 : vector<8x8xi1> to vector<8x8xi32>
    %38 = arith.sitofp %37 : vector<8x8xi32> to vector<8x8xf32>
    %cst_32 = arith.constant dense<0.000000e+00> : vector<8x512xf32>
    %39 = tpu.matmul %38, %0, %cst_32 {dimension_numbers = #tpu.dot_dimension_numbers<[1], [0], [0], [1], [0, 0, 1, 1], [], []>} : vector<8x8xf32>, vector<8x512xf32>, vector<8x512xf32> -> vector<8x512xf32>
    %cst_33 = arith.constant 0.000000e+00 : f32
    %40 = vector.broadcast %cst_33 : f32 to vector<8x512xf32>
    %41 = arith.subf %40, %32 : vector<8x512xf32>
    %42 = math.exp %41 : vector<8x512xf32>
    %43 = arith.subf %19, %0 : vector<8x512xf32>
    %44 = arith.mulf %43, %43 : vector<8x512xf32>
    %cst_34 = arith.constant 0.000000e+00 : f32
    %45 = vector.broadcast %cst_34 : f32 to vector<8x512xf32>
    %46 = arith.subf %45, %44 : vector<8x512xf32>
    %47 = arith.mulf %46, %42 : vector<8x512xf32>
    %48 = arith.subf %19, %39 : vector<8x512xf32>
    %49 = arith.mulf %48, %48 : vector<8x512xf32>
    %cst_35 = arith.constant 0.000000e+00 : f32
    %50 = vector.broadcast %cst_35 : f32 to vector<8x512xf32>
    %51 = arith.subf %50, %49 : vector<8x512xf32>
    %52 = arith.mulf %51, %42 : vector<8x512xf32>
    %53 = arith.subf %47, %32 : vector<8x512xf32>
    %cst_36 = arith.constant dense<0.000000e+00> : vector<8xf32>
    %54 = vector.multi_reduction <add>, %53, %cst_36 [1] : vector<8x512xf32> to vector<8xf32>
    %55 = vector.shape_cast %54 : vector<8xf32> to vector<8x1xf32>
    %56 = arith.subf %47, %52 : vector<8x512xf32>
    %cst_37 = arith.constant dense<0.000000e+00> : vector<8xf32>
    %57 = vector.multi_reduction <add>, %56, %cst_37 [1] : vector<8x512xf32> to vector<8xf32>
    %58 = vector.shape_cast %57 : vector<8xf32> to vector<8x1xf32>
    %cst_38 = arith.constant dense<0.000000e+00> : vector<1xf32>
    %59 = vector.multi_reduction <add>, %55, %cst_38 [0] : vector<8x1xf32> to vector<1xf32>
    %60 = vector.shape_cast %59 : vector<1xf32> to vector<1x1xf32>
    %cst_39 = arith.constant 8.000000e+00 : f32
    %61 = vector.broadcast %cst_39 : f32 to vector<1x1xf32>
    %62 = arith.divf %60, %61 : vector<1x1xf32>
    %c0_40 = arith.constant 0 : index
    %c0_41 = arith.constant 0 : index
    %63 = vector.load %arg17[%c0_40, %c0_41] : memref<1x1xf32, #tpu.memory_space<vmem>>, vector<1x1xf32>
    tpu.vector_store %arg17[%c0_40, %c0_41], %62 {strides = array<i32>} : memref<1x1xf32, #tpu.memory_space<vmem>>, vector<1x1xf32>,
    %cst_42 = arith.constant dense<0.000000e+00> : vector<1xf32>
    %64 = vector.multi_reduction <add>, %58, %cst_42 [0] : vector<8x1xf32> to vector<1xf32>
    %65 = vector.shape_cast %64 : vector<1xf32> to vector<1x1xf32>
    %cst_43 = arith.constant 8.000000e+00 : f32
    %66 = vector.broadcast %cst_43 : f32 to vector<1x1xf32>
    %67 = arith.divf %65, %66 : vector<1x1xf32>
    %cst_44 = arith.constant 5.000000e-01 : f32
    %68 = vector.broadcast %cst_44 : f32 to vector<1x1xf32>
    %69 = arith.mulf %67, %68 : vector<1x1xf32>
    %c0_45 = arith.constant 0 : index
    %c0_46 = arith.constant 0 : index
    %70 = vector.load %arg16[%c0_45, %c0_46] : memref<1x1xf32, #tpu.memory_space<vmem>>, vector<1x1xf32>
    tpu.vector_store %arg16[%c0_45, %c0_46], %69 {strides = array<i32>} : memref<1x1xf32, #tpu.memory_space<vmem>>, vector<1x1xf32>,
    %71 = arith.mulf %0, %0 : vector<8x512xf32>
    %cst_47 = arith.constant dense<0.000000e+00> : vector<8xf32>
    %72 = vector.multi_reduction <add>, %71, %cst_47 [1] : vector<8x512xf32> to vector<8xf32>
    %73 = vector.shape_cast %72 : vector<8xf32> to vector<8x1xf32>
    %cst_48 = arith.constant 1.000000e-24 : f32
    %74 = vector.broadcast %cst_48 : f32 to vector<8x1xf32>
    %75 = arith.maximumf %73, %74 : vector<8x1xf32>
    %76 = math.rsqrt %75 : vector<8x1xf32>
    %77 = vector.broadcast %76 : vector<8x1xf32> to vector<8x512xf32>
    %78 = arith.mulf %0, %77 : vector<8x512xf32>
    %c0_49 = arith.constant 0 : index
    %c0_50 = arith.constant 0 : index
    %79 = vector.load %arg11[%c0_49, %c0_50] : memref<512x128xf32, #tpu.memory_space<vmem>>, vector<512x128xf32>
    %cst_51 = arith.constant dense<0.000000e+00> : vector<8x128xf32>
    %80 = tpu.matmul %78, %79, %cst_51 {dimension_numbers = #tpu.dot_dimension_numbers<[1], [0], [0], [1], [0, 0, 1, 1], [], []>} : vector<8x512xf32>, vector<512x128xf32>, vector<8x128xf32> -> vector<8x128xf32>
    %81 = tpu.iota {dimensions = array<i32: 1>} : vector<8x128xi32>
    %c0_52 = arith.constant 0 : index
    %c0_53 = arith.constant 0 : index
    %82 = vector.load %arg12[%c0_52, %c0_53] : memref<8x1xi32, #tpu.memory_space<vmem>>, vector<8x1xi32>
    %83 = vector.broadcast %82 : vector<8x1xi32> to vector<8x128xi32>
    %84 = arith.cmpi eq, %81, %83 : vector<8x128xi32>
    %85 = arith.extui %84 : vector<8x128xi1> to vector<8x128xi32>
    %86 = arith.sitofp %85 : vector<8x128xi32> to vector<8x128xf32>
    %cst_54 = arith.constant 3.500000e-01 : f32
    %87 = vector.broadcast %cst_54 : f32 to vector<8x128xf32>
    %88 = arith.mulf %87, %86 : vector<8x128xf32>
    %89 = arith.subf %80, %88 : vector<8x128xf32>
    %cst_55 = arith.constant 3.000000e+01 : f32
    %90 = vector.broadcast %cst_55 : f32 to vector<8x128xf32>
    %91 = arith.mulf %90, %89 : vector<8x128xf32>
    %c0_56 = arith.constant 0 : index
    %c0_57 = arith.constant 0 : index
    %92 = vector.load %arg14[%c0_56, %c0_57] : memref<8x128xf32, #tpu.memory_space<vmem>>, vector<8x128xf32>
    tpu.vector_store %arg14[%c0_56, %c0_57], %91 {strides = array<i32>} : memref<8x128xf32, #tpu.memory_space<vmem>>, vector<8x128xf32>,
    return
  }
}

</mosaic_0001>

<bundles_post_ra>
// kernel: forward.2
= control target key start
LH: loop header
LB: loop body
LE: loop exit
PB: predicated region body
PF: predicated region fallthrough
CT: control target
= control target key end

     0   :  { %s2405_s0 = inlined_call_operand.vmem [shape: bf16[8,1024], index: 0, kind: input, shape index: {}]   ;;  %s2406_s1 = inlined_call_operand.hbm [shape: bf16[1024,1024], index: 1, kind: input, shape index: {}]   ;;  %s2407_s2 = inlined_call_operand.hbm [shape: f32[1,1024], index: 2, kind: input, shape index: {}]   ;;  %s2408_s3 = inlined_call_operand.vmem [shape: f32[8,1024], index: 3, kind: output, shape index: {}]  }
   0x1   :  { %2411 = sst [smem:[#allocation11_spill]] %s2406_s1 }
   0x2   :  { %8 = vsyncpa [#allocation4], 0 }
   0x3   :  { %10 = vsyncpa [#allocation4 + $0x1], 0 }
   0x4   :  { %11 = vsyncpa [#allocation6], 0 }
   0x5   :  { %13 = vsyncpa [#allocation6 + $0x1], 0  ;;  %s2030_s12 = smov 0   ;;  %s2032_s13 = smov 0  }
   0x6   :  { %s2034_s14 = smov 0   ;;  %s2036_s15 = smov 0  }
   0x7   :  { %s2038_s16 = smov 0   ;;  %s2040_s17 = smov 0  }
   0x8   :  { %s2042_s18 = smov 0   ;;  %s2044_s19 = smov 0  }
   0x9   :  { %s2046_s20 = smov 0   ;;  %s2048_s21 = smov 0  }
   0xa   :  { %s2050_s22 = smov 0  }
   0xb LB: > { %s28_s23 = sadd.s32 1, %s1994_s20  ;;  %p73_p1 = scmp.ne.s32.totalorder %s1982_s17, %s1978_s16  ;;  %s2002_s22 = sphi %s2050_s22, %s19_s22   ;;  %s1998_s21 = sphi %s2048_s21, %s2436_s21   ;;  %s1994_s20 = sphi %s2046_s20, %s2435_s20   ;;  %s1990_s19 = sphi %s2044_s19, %s2434_s19   ;;  %s1986_s18 = sphi %s2042_s18, %s2433_s18   ;;  %s1982_s17 = sphi %s2040_s17, %s2432_s17   ;;  %s1978_s16 = sphi %s2038_s16, %s2431_s16   ;;  %s1974_s15 = sphi %s2036_s15, %s2430_s15   ;;  %s1970_s14 = sphi %s2034_s14, %s2429_s14   ;;  %s1966_s13 = sphi %s2032_s13, %s2428_s13   ;;  %s1962_s12 = sphi %s2030_s12, %s2427_s12  }
   0xc   : > { %p2087_p0 = scmp.ge.s32.totalorder %s28_s23, 2  ;;  %p74_p2 = scmp.eq.s32.totalorder %s2002_s22, 0 }
   0xd   : > { %p1563_p4 = scmp.lt.s32.totalorder %s2002_s22, 4  ;;  %s164_s27 = sand.u32 1, %s1982_s17  }
   0xe   : > { %s2438_s23 = smov (%p2087_p0, %s28_s23), 0  ;;  %p75_p3 = por %p74_p2, %p73_p1 }
   0xf   : > { %2413 = sst [smem:[#allocation9_spill]] %s2438_s23  ;;  %s1399_s28 = sshll.u32 %s164_s27, 10 }
  0x10   : > { %s1401_s29 = sshll.u32 %s1998_s21, 2  ;;  %s1550_s30 = sshll.u32 %s1994_s20, 9 }
  0x11   : > { %s168_s4 = scalar_lea.vmem [#allocation3], %s1399_s28  ;;  %s175_s6 = sadd.s32 %s1550_s30, %s1401_s29 }
  0x12   : > { %s178_s5 = sshll.u32 %s168_s4, 4  ;;  %s1403_s7 = sshll.u32 %s175_s6, 6  ;;  %s179_s5 = int_to_ptr.vmem [resolvable:$true] %s178_s5 }
  0x13   : > { %p2108_p5 = pnand %p1563_p4, %p75_p3  ;;  %s2415_s1 = sld [smem:[#allocation11_spill]] }
  0x14   : > { %p1407_p6 = scmp.ge.s32.totalorder %s2002_s22, 1  ;;  %s165_s24 = scalar_lea.sflag [#allocation4], %s164_s27 }
  0x15   : > { %p1854_p7 = pneg %p2108_p5  ;;  %s1865_s26 = scalar_lea.vmem %s179_s5, 16384 }
  0x16   : > { %p1866_p8 = scmp.ne.s32.totalorder %s179_s5, %s1865_s26  ;;  %s2004_s28 = smov [#allocation3]  }
  0x17   : > { %s1870_s29 = sshll.u32 %s2004_s28, 4  ;;  %s1871_s29 = int_to_ptr.vmem [resolvable:$false] %s1870_s29 }
  0x18   : > { %p1868_p9 = pnand %p1866_p8, %p1854_p7  ;;  %s1872_s30 = scalar_lea.vmem %s1871_s29, 32768 }
  0x19   : > { %s177_s11 = scalar_lea.hbm %s2415_s1, %s1403_s7  ;;  %p1873_p11 = scmp.lt.s32.totalorder %s179_s5, %s1871_s29 }
  0x1a   : > { %p1869_p10 = pneg %p1868_p9  ;;  %p1874_p12 = scmp.lt.s32.totalorder %s1872_s30, %s1865_s26 }
  0x1c   : > { %p1875_p13 = por %p1874_p12, %p1873_p11 }
  0x1e   : > { %p1876_p1 = pnand %p1875_p13, %p1869_p10 }
  0x20   : > { %1879 = shalt.err (!%p1876_p1)
}
  0x21   : > { %s2005_s4 = smov 512   ;;  %s2006_s27 = smov 256  }
  0x22   : > { %s2007_s26 = smov 16   ;;  %p205_p3 = scmp.lt.s32.totalorder %s2002_s22, 5 }
  0x23   : > { %1559 = dma.hbm_to_vmem [thread:$0]  (!%p2108_p5), %s177_s11, 16384, %s179_s5, %s165_s24, %s2005_s4, %s2006_s27, %s2007_s26  }
  0x24   : > { %p2123_p7 = pnand %p1407_p6, %p205_p3  ;;  %s1395_s7 = sadd.s32 4294967295, %s2002_s22  }
  0x25   : > { %s31_s9 = sadd.s32 1, %s1998_s21  ;;  %p79_p8 = scmp.ne.s32.totalorder %s1978_s16, %s1974_s15 }
  0x26   : > { %s2440_s9 = smov (!%p2087_p0, %s31_s9), %s1998_s21  ;;  %p2134_p9 = scmp.eq.s32.totalorder %s1395_s7, 0 }
  0x27   : > { %p33_p5 = scmp.ge.s32.totalorder %s2440_s9, 2  ;;  %s92_s24 = sadd.s32 1, %s1970_s14 }
  0x28   : > { %p2141_p6 = por %p2134_p9, %p79_p8  ;;  %p99_p10 = scmp.ne.s32.totalorder %s1970_s14, %s1966_s13 }
  0x29   : > { %s2442_s9 = smov (%p33_p5, %s2440_s9), 0  ;;  %p105_p11 = scmp.ne.s32.totalorder %s1966_s13, %s1962_s12 }
  0x2a   : > { %2419 = sst [smem:[#allocation10_spill]] %s2442_s9  ;;  %p2151_p0 = por %p99_p10, %p74_p2 }
  0x2b   : > { %s62_s25 = ssub.s32 %s1998_s21, %s2442_s9  ;;  %s188_s10 = sand.u32 1, %s1970_s14  }
  0x2c   : > { %s2421_s11 = ssub.s32 %s1994_s20, %s2438_s23  ;;  %p90_p12 = scmp.eq.s32.totalorder %s62_s25, 0 }
  0x2d   : > { %s63_s28 = sor.u32 %s62_s25, %s2421_s11  ;;  %p2165_p1 = por %p105_p11, %p2134_p9 }
  0x2e   : > { %p64_p13 = scmp.eq.s32.totalorder %s63_s28, 0  ;;  %s2423_s4 = sadd.s32 1, %s1982_s17 }
  0x2f   : > { %s2170_s30 = scalar_select %p90_p12, %s1970_s14, %s92_s24  }
  0x30   : > { %s2175_s27 = scalar_select %p64_p13, %s1982_s17, %s2423_s4  }
  0x31   : > { %s1404_s26 = sshll.u32 %s188_s10, 2  ;;  %s1551_s7 = sshll.u32 %s1998_s21, 6 }
  0x32   : > { %s198_s9 = scalar_lea.hbm %s2407_s2, %s1551_s7  ;;  %s192_s23 = scalar_lea.vmem [#allocation5], %s1404_s26 }
  0x33   : > { %s200_s11 = sshll.u32 %s192_s23, 4  ;;  %p2185_p2 = pnand %p1563_p4, %p2151_p0  ;;  %s201_s11 = int_to_ptr.vmem [resolvable:$true] %s200_s11 }
  0x34   : > { %s189_s24 = scalar_lea.sflag [#allocation6], %s188_s10  ;;  %s1893_s25 = scalar_lea.vmem %s201_s11, 64 }
  0x35   : > { %p1882_p3 = pneg %p2185_p2  ;;  %p1894_p8 = scmp.ne.s32.totalorder %s201_s11, %s1893_s25 }
  0x36   : > { %s2008_s28 = smov [#allocation5]  }
  0x37   : > { %p1896_p9 = pnand %p1894_p8, %p1882_p3  ;;  %s1898_s1 = sshll.u32 %s2008_s28, 4  ;;  %s1899_s1 = int_to_ptr.vmem [resolvable:$false] %s1898_s1 }
  0x38   : > { %s1900_s4 = scalar_lea.vmem %s1899_s1, 128  ;;  %p1901_p10 = scmp.lt.s32.totalorder %s201_s11, %s1899_s1 }
  0x39   : > { %p1897_p5 = pneg %p1896_p9  ;;  %p1902_p11 = scmp.lt.s32.totalorder %s1900_s4, %s1893_s25 }
  0x3b   : > { %p1903_p12 = por %p1902_p11, %p1901_p10 }
  0x3d   : > { %p1904_p13 = pnand %p1903_p12, %p1897_p5 }
  0x3f   : > { %1907 = shalt.err (!%p1904_p13)
}
  0x40   : > { %1562 = dma.hbm_to_vmem [thread:$0]  (!%p2185_p2), %s198_s9, 64, %s201_s11, %s189_s24  }
  0x41   : > { %209 = sbr.rel (%p2123_p7) target bundleno = 431 (0x1af), region = 32  ;;  %s211_s23 = sand.u32 (!%p2123_p7), 1, %s1978_s16  }
  0x42   : > { %s1408_s15 = sshll.u32 (!%p2123_p7), %s211_s23, 10  ;;  %s212_s10 = scalar_lea.sflag (!%p2123_p7), [#allocation4], %s211_s23 }
  0x43   : > { %s2196_s26 = scalar_lea.vmem (!%p2123_p7), [#allocation3], %s1408_s15 }
  0x46   : > { %1953 = dma.done.wait (%p2141_p6), %s212_s10, 16384  }
  0x47   : > { %1955 = vsyncadd (%p2141_p6), %s212_s10, 4294950912  ;;  %s220_s7 = sand.u32 1, %s1966_s13  }
  0x48   : > { %s2203_s12 = sshll.u32 %s220_s7, 2  ;;  %s221_s6 = scalar_lea.sflag [#allocation6], %s220_s7 }
  0x49   : > { %s224_s9 = scalar_lea.vmem [#allocation5], %s2203_s12 }
  0x4a   : > { %1957 = dma.done.wait (%p2165_p1), %s221_s6, 64  }
  0x4b   : > { %1959 = vsyncadd (%p2165_p1), %s221_s6, 4294967232  ;;  %s1410_s11 = sshll.u32 %s1986_s18, 2  ;;  %s1412_s8 = sshll.u32 %s1990_s19, 2 }
  0x4c   : > { %p258_p4 = scmp.lt.s32.totalorder %s1410_s11, 7  ;;  %p267_p7 = scmp.lt.s32.totalorder %s1412_s8, 7 }
  0x4d   : > { %p1414_p6 = scmp.ne.s32.totalorder %s1986_s18, 0 }
  0x4e   : > { %s2444_s11 = smov (!%p258_p4, %s1410_s11), 7  ;;  %s2446_s8 = smov (!%p267_p7, %s1412_s8), 7 }
  0x4f   : > { %s1411_s5 = sshll.u32 %s2444_s11, 2  ;;  %s1413_s1 = sshll.u32 %s2446_s8, 3 }
  0x50   : > { %s2215_s28 = scalar_lea.vmem %s2405_s0, %s1411_s5  ;;  %s2220_s29 = scalar_lea.vmem %s2408_s3, %s1413_s1 }
  0x51   : > { %275 = sbr.rel (%p1414_p6) target bundleno = 89 (0x59), region = 44 }
  0x56   : > { %v2009_v0 = vmov 0.0  }
  0x57   : > { %276 = vst [vmem:[#allocation2 + $0x10] sm:$0xff] %v2009_v0  ;;  %277 = vst [vmem:[#allocation2] sm:$0xff] %v2009_v0 }
  0x58   : > { %278 = vst [vmem:[#allocation2 + $0x18] sm:$0xff] %v2009_v0  ;;  %279 = vst [vmem:[#allocation2 + $0x8] sm:$0xff] %v2009_v0 }
  0x59 PF: > { %v1656_v1 = vld [vmem:[%s2196_s26 + $0xe4] ss:$16 sps:$4 sm:$0xff]   ;;  %v1660_v3 = vld [vmem:[%s2196_s26 + $0xe0] ss:$16 sps:$4 sm:$0xff]   ;;  %v285_v49 = vld [vmem:[%s2215_s28 + $0x8] sm:$0xff]  ;;  %p1547_p0 = scmp.ne.s32.totalorder %s1986_s18, 1 }
  0x5a   : > { %v1658_v2 = vld [vmem:[%s2196_s26 + $0x2e4] ss:$16 sps:$4 sm:$0xff]   ;;  %1068 = vmatprep.subr.bf16.mxu0 %v1656_v1  ;;  %v1661_v4 = vld [vmem:[%s2196_s26 + $0x2e0] ss:$16 sps:$4 sm:$0xff]   ;;  %v1418_v52 = vcombine.high %v285_v49, %v285_v49 }
  0x5b   : > { %1109 = vmatprep.subr.bf16.mxu1 %v1658_v2  ;;  %v1662_v5 = vld [vmem:[%s2196_s26 + $0xc4] ss:$16 sps:$4 sm:$0xff]   ;;  %1069 = vmatpush1.bf16.msra.mxu0 %v1660_v3  ;;  %v1666_v7 = vld [vmem:[%s2196_s26 + $0xc0] ss:$16 sps:$4 sm:$0xff]  }
  0x5c   : > { %1110 = vmatpush1.bf16.msra.mxu1 %v1661_v4  ;;  %v1664_v6 = vld [vmem:[%s2196_s26 + $0x2c4] ss:$16 sps:$4 sm:$0xff]   ;;  %1070 = vmatprep.subr.bf16.mxu0 %v1662_v5  ;;  %v1667_v8 = vld [vmem:[%s2196_s26 + $0x2c0] ss:$16 sps:$4 sm:$0xff]   ;;  %v1758_v5 = vld [vmem:[%s2196_s26 + $0xec] ss:$16 sps:$4 sm:$0xff]  }
  0x5d   : > { %1111 = vmatprep.subr.bf16.mxu1 %v1664_v6  ;;  %v1668_v9 = vld [vmem:[%s2196_s26 + $0xa4] ss:$16 sps:$4 sm:$0xff]   ;;  %v1672_v11 = vld [vmem:[%s2196_s26 + $0xa0] ss:$16 sps:$4 sm:$0xff]   ;;  %1141 = vmatprep.mubr.bf16.mxu1 %v1418_v52  ;;  %v1761_v6 = vld [vmem:[%s2196_s26 + $0x2ec] ss:$16 sps:$4 sm:$0xff]  }
  0x5e   : > { %v1670_v10 = vld [vmem:[%s2196_s26 + $0x2a4] ss:$16 sps:$4 sm:$0xff]   ;;  %v1673_v12 = vld [vmem:[%s2196_s26 + $0x2a0] ss:$16 sps:$4 sm:$0xff]  }
  0x5f   : > { %1071 = vmatpush1.bf16.msra.mxu0 %v1666_v7  ;;  %v1674_v13 = vld [vmem:[%s2196_s26 + $0x84] ss:$16 sps:$4 sm:$0xff]   ;;  %v1678_v15 = vld [vmem:[%s2196_s26 + $0x80] ss:$16 sps:$4 sm:$0xff]  }
  0x60   : > { %1112 = vmatpush1.bf16.msra.mxu1 %v1667_v8  ;;  %1072 = vmatprep.subr.bf16.mxu0 %v1668_v9  ;;  %v1676_v14 = vld [vmem:[%s2196_s26 + $0x284] ss:$16 sps:$4 sm:$0xff]   ;;  %v1679_v16 = vld [vmem:[%s2196_s26 + $0x280] ss:$16 sps:$4 sm:$0xff]   ;;  %v2296_v8 = vcombine.low %v285_v49, %v285_v49  ;;  %v1756_v9 = vld [vmem:[%s2196_s26 + $0xe8] ss:$16 sps:$4 sm:$0xff]  }
  0x61   : > { %1113 = vmatprep.subr.bf16.mxu1 %v1670_v10  ;;  %v1680_v17 = vld [vmem:[%s2196_s26 + $0x64] ss:$16 sps:$4 sm:$0xff]   ;;  %v1684_v19 = vld [vmem:[%s2196_s26 + $0x60] ss:$16 sps:$4 sm:$0xff]   ;;  %v1759_v10 = vld [vmem:[%s2196_s26 + $0x2e8] ss:$16 sps:$4 sm:$0xff]  }
  0x62   : > { %v1682_v18 = vld [vmem:[%s2196_s26 + $0x264] ss:$16 sps:$4 sm:$0xff]   ;;  %v1685_v20 = vld [vmem:[%s2196_s26 + $0x260] ss:$16 sps:$4 sm:$0xff]   ;;  %v1816_v49 = vld [vmem:[%s2196_s26 + $0x1a8] ss:$16 sps:$4 sm:$0xff]  }
  0x63   : > { %1073 = vmatpush1.bf16.msra.mxu0 %v1672_v11  ;;  %v1686_v21 = vld [vmem:[%s2196_s26 + $0x44] ss:$16 sps:$4 sm:$0xff]   ;;  %v1690_v23 = vld [vmem:[%s2196_s26 + $0x40] ss:$16 sps:$4 sm:$0xff]   ;;  %v1764_v11 = vld [vmem:[%s2196_s26 + $0xcc] ss:$16 sps:$4 sm:$0xff]  }
  0x64   : > { %1114 = vmatpush1.bf16.msra.mxu1 %v1673_v12  ;;  %1074 = vmatprep.subr.bf16.mxu0 %v1674_v13  ;;  %v1688_v22 = vld [vmem:[%s2196_s26 + $0x244] ss:$16 sps:$4 sm:$0xff]   ;;  %v1691_v24 = vld [vmem:[%s2196_s26 + $0x240] ss:$16 sps:$4 sm:$0xff]   ;;  %v1767_v12 = vld [vmem:[%s2196_s26 + $0x2cc] ss:$16 sps:$4 sm:$0xff]  }
  0x65   : > { %1115 = vmatprep.subr.bf16.mxu1 %v1676_v14  ;;  %v1692_v25 = vld [vmem:[%s2196_s26 + $0x24] ss:$16 sps:$4 sm:$0xff]   ;;  %v1696_v27 = vld [vmem:[%s2196_s26 + $0x20] ss:$16 sps:$4 sm:$0xff]   ;;  %v1762_v13 = vld [vmem:[%s2196_s26 + $0xc8] ss:$16 sps:$4 sm:$0xff]  }
  0x66   : > { %v1694_v26 = vld [vmem:[%s2196_s26 + $0x224] ss:$16 sps:$4 sm:$0xff]   ;;  %v1697_v28 = vld [vmem:[%s2196_s26 + $0x220] ss:$16 sps:$4 sm:$0xff]   ;;  %v1765_v14 = vld [vmem:[%s2196_s26 + $0x2c8] ss:$16 sps:$4 sm:$0xff]  }
  0x67   : > { %1075 = vmatpush1.bf16.msra.mxu0 %v1678_v15  ;;  %v1698_v29 = vld [vmem:[%s2196_s26 + $0x4] ss:$16 sps:$4 sm:$0xff]   ;;  %v1702_v31 = vld [vmem:[%s2196_s26] ss:$16 sps:$4 sm:$0xff]   ;;  %v1770_v15 = vld [vmem:[%s2196_s26 + $0xac] ss:$16 sps:$4 sm:$0xff]  }
  0x68   : > { %1116 = vmatpush1.bf16.msra.mxu1 %v1679_v16  ;;  %1076 = vmatprep.subr.bf16.mxu0 %v1680_v17  ;;  %v1700_v30 = vld [vmem:[%s2196_s26 + $0x204] ss:$16 sps:$4 sm:$0xff]   ;;  %v1703_v32 = vld [vmem:[%s2196_s26 + $0x200] ss:$16 sps:$4 sm:$0xff]   ;;  %v1773_v16 = vld [vmem:[%s2196_s26 + $0x2ac] ss:$16 sps:$4 sm:$0xff]  }
  0x69   : > { %1117 = vmatprep.subr.bf16.mxu1 %v1682_v18  ;;  %v1704_v33 = vld [vmem:[%s2196_s26 + $0x1e4] ss:$16 sps:$4 sm:$0xff]   ;;  %v1708_v35 = vld [vmem:[%s2196_s26 + $0x1e0] ss:$16 sps:$4 sm:$0xff]   ;;  %v1768_v17 = vld [vmem:[%s2196_s26 + $0xa8] ss:$16 sps:$4 sm:$0xff]  }
  0x6a   : > { %v1706_v34 = vld [vmem:[%s2196_s26 + $0x3e4] ss:$16 sps:$4 sm:$0xff]   ;;  %v1709_v36 = vld [vmem:[%s2196_s26 + $0x3e0] ss:$16 sps:$4 sm:$0xff]   ;;  %v1771_v18 = vld [vmem:[%s2196_s26 + $0x2a8] ss:$16 sps:$4 sm:$0xff]  }
  0x6b   : > { %1077 = vmatpush1.bf16.msra.mxu0 %v1684_v19  ;;  %v1710_v37 = vld [vmem:[%s2196_s26 + $0x1c4] ss:$16 sps:$4 sm:$0xff]   ;;  %v1714_v39 = vld [vmem:[%s2196_s26 + $0x1c0] ss:$16 sps:$4 sm:$0xff]   ;;  %v1776_v19 = vld [vmem:[%s2196_s26 + $0x8c] ss:$16 sps:$4 sm:$0xff]  }
  0x6c   : > { %1118 = vmatpush1.bf16.msra.mxu1 %v1685_v20  ;;  %1078 = vmatprep.subr.bf16.mxu0 %v1686_v21  ;;  %v1712_v38 = vld [vmem:[%s2196_s26 + $0x3c4] ss:$16 sps:$4 sm:$0xff]   ;;  %v1715_v40 = vld [vmem:[%s2196_s26 + $0x3c0] ss:$16 sps:$4 sm:$0xff]   ;;  %v1779_v20 = vld [vmem:[%s2196_s26 + $0x28c] ss:$16 sps:$4 sm:$0xff]  }
  0x6d   : > { %1119 = vmatprep.subr.bf16.mxu1 %v1688_v22  ;;  %v1716_v41 = vld [vmem:[%s2196_s26 + $0x1a4] ss:$16 sps:$4 sm:$0xff]   ;;  %v1720_v43 = vld [vmem:[%s2196_s26 + $0x1a0] ss:$16 sps:$4 sm:$0xff]   ;;  %v1774_v21 = vld [vmem:[%s2196_s26 + $0x88] ss:$16 sps:$4 sm:$0xff]  }
  0x6e   : > { %v1718_v42 = vld [vmem:[%s2196_s26 + $0x3a4] ss:$16 sps:$4 sm:$0xff]   ;;  %v1721_v44 = vld [vmem:[%s2196_s26 + $0x3a0] ss:$16 sps:$4 sm:$0xff]   ;;  %v1777_v22 = vld [vmem:[%s2196_s26 + $0x288] ss:$16 sps:$4 sm:$0xff]  }
  0x6f   : > { %1079 = vmatpush1.bf16.msra.mxu0 %v1690_v23  ;;  %v1722_v45 = vld [vmem:[%s2196_s26 + $0x184] ss:$16 sps:$4 sm:$0xff]   ;;  %v1726_v50 = vld [vmem:[%s2196_s26 + $0x180] ss:$16 sps:$4 sm:$0xff]   ;;  %v1782_v23 = vld [vmem:[%s2196_s26 + $0x6c] ss:$16 sps:$4 sm:$0xff]  }
  0x70   : > { %1120 = vmatpush1.bf16.msra.mxu1 %v1691_v24  ;;  %1080 = vmatprep.subr.bf16.mxu0 %v1692_v25  ;;  %v1724_v46 = vld [vmem:[%s2196_s26 + $0x384] ss:$16 sps:$4 sm:$0xff]   ;;  %v1727_v51 = vld [vmem:[%s2196_s26 + $0x380] ss:$16 sps:$4 sm:$0xff]   ;;  %v1785_v24 = vld [vmem:[%s2196_s26 + $0x26c] ss:$16 sps:$4 sm:$0xff]  }
  0x71   : > { %1121 = vmatprep.subr.bf16.mxu1 %v1694_v26  ;;  %v284_v47 = vld [vmem:[%s2215_s28] sm:$0xff]  ;;  %v1780_v25 = vld [vmem:[%s2196_s26 + $0x68] ss:$16 sps:$4 sm:$0xff]  }
  0x72   : > { %v2270_v48 = vcombine.high %v284_v47, %v284_v47  ;;  %v1728_v53 = vld [vmem:[%s2196_s26 + $0x164] ss:$16 sps:$4 sm:$0xff]   ;;  %v1732_v55 = vld [vmem:[%s2196_s26 + $0x160] ss:$16 sps:$4 sm:$0xff]   ;;  %v2294_v7 = vcombine.low %v284_v47, %v284_v47  ;;  %v1783_v26 = vld [vmem:[%s2196_s26 + $0x268] ss:$16 sps:$4 sm:$0xff]  }
  0x73   : > { %1081 = vmatpush1.bf16.msra.mxu0 %v1696_v27  ;;  %v1730_v54 = vld [vmem:[%s2196_s26 + $0x364] ss:$16 sps:$4 sm:$0xff]   ;;  %v1733_v56 = vld [vmem:[%s2196_s26 + $0x360] ss:$16 sps:$4 sm:$0xff]   ;;  %v1788_v27 = vld [vmem:[%s2196_s26 + $0x4c] ss:$16 sps:$4 sm:$0xff]  }
  0x74   : > { %1122 = vmatpush1.bf16.msra.mxu1 %v1697_v28  ;;  %1082 = vmatprep.subr.bf16.mxu0 %v1698_v29  ;;  %v1734_v57 = vld [vmem:[%s2196_s26 + $0x144] ss:$16 sps:$4 sm:$0xff]   ;;  %v1738_v59 = vld [vmem:[%s2196_s26 + $0x140] ss:$16 sps:$4 sm:$0xff]   ;;  %v1791_v28 = vld [vmem:[%s2196_s26 + $0x24c] ss:$16 sps:$4 sm:$0xff]  }
  0x75   : > { %1123 = vmatprep.subr.bf16.mxu1 %v1700_v30  ;;  %1100 = vmatprep.mubr.bf16.mxu0 %v2270_v48  ;;  %v1736_v58 = vld [vmem:[%s2196_s26 + $0x344] ss:$16 sps:$4 sm:$0xff]   ;;  %v1739_v60 = vld [vmem:[%s2196_s26 + $0x340] ss:$16 sps:$4 sm:$0xff]   ;;  %v1786_v29 = vld [vmem:[%s2196_s26 + $0x48] ss:$16 sps:$4 sm:$0xff]  }
  0x76   : > { %v1740_v61 = vld [vmem:[%s2196_s26 + $0x124] ss:$16 sps:$4 sm:$0xff]   ;;  %v1744_v63 = vld [vmem:[%s2196_s26 + $0x120] ss:$16 sps:$4 sm:$0xff]   ;;  %v1789_v30 = vld [vmem:[%s2196_s26 + $0x248] ss:$16 sps:$4 sm:$0xff]  }
  0x77   : > { %1083 = vmatpush1.bf16.msra.mxu0 %v1702_v31  ;;  %v1742_v62 = vld [vmem:[%s2196_s26 + $0x324] ss:$16 sps:$4 sm:$0xff]   ;;  %v1745_v0 = vld [vmem:[%s2196_s26 + $0x320] ss:$16 sps:$4 sm:$0xff]   ;;  %v1794_v31 = vld [vmem:[%s2196_s26 + $0x2c] ss:$16 sps:$4 sm:$0xff]  }
  0x78   : > { %1124 = vmatpush1.bf16.msra.mxu1 %v1703_v32  ;;  %1084 = vmatprep.subr.bf16.mxu0 %v1704_v33  ;;  %v1746_v1 = vld [vmem:[%s2196_s26 + $0x104] ss:$16 sps:$4 sm:$0xff]   ;;  %v1750_v3 = vld [vmem:[%s2196_s26 + $0x100] ss:$16 sps:$4 sm:$0xff]   ;;  %v1797_v32 = vld [vmem:[%s2196_s26 + $0x22c] ss:$16 sps:$4 sm:$0xff]  }
  0x79   : > { %1125 = vmatprep.subr.bf16.mxu1 %v1706_v34  ;;  %v1748_v2 = vld [vmem:[%s2196_s26 + $0x304] ss:$16 sps:$4 sm:$0xff]   ;;  %v1751_v4 = vld [vmem:[%s2196_s26 + $0x300] ss:$16 sps:$4 sm:$0xff]   ;;  %v1792_v33 = vld [vmem:[%s2196_s26 + $0x28] ss:$16 sps:$4 sm:$0xff]  }
  0x7a   : > { %v1795_v34 = vld [vmem:[%s2196_s26 + $0x228] ss:$16 sps:$4 sm:$0xff]   ;;  %v1818_v47 = vld [vmem:[%s2196_s26 + $0x1ac] ss:$16 sps:$4 sm:$0xff]  }
  0x7b   : > { %1085 = vmatpush2.bf16.msra.mxu0 %v1708_v35  ;;  %v1800_v35 = vld [vmem:[%s2196_s26 + $0xc] ss:$16 sps:$4 sm:$0xff]  }
  0x7c   : > { %1126 = vmatpush2.bf16.msra.mxu1 %v1709_v36  ;;  %1086 = vmatprep.subr.bf16.mxu0 %v1710_v37  ;;  %v1803_v36 = vld [vmem:[%s2196_s26 + $0x20c] ss:$16 sps:$4 sm:$0xff]   ;;  %v1798_v37 = vld [vmem:[%s2196_s26 + $0x8] ss:$16 sps:$4 sm:$0xff]  }
  0x7d   : > { %1127 = vmatprep.subr.bf16.mxu1 %v1712_v38  ;;  %v1801_v38 = vld [vmem:[%s2196_s26 + $0x208] ss:$16 sps:$4 sm:$0xff]  }
  0x7f   : > { %1087 = vmatpush2.bf16.msra.mxu0 %v1714_v39  ;;  %v1806_v39 = vld [vmem:[%s2196_s26 + $0x1ec] ss:$16 sps:$4 sm:$0xff]  }
  0x80   : > { %1128 = vmatpush2.bf16.msra.mxu1 %v1715_v40  ;;  %1088 = vmatprep.subr.bf16.mxu0 %v1716_v41  ;;  %v1809_v40 = vld [vmem:[%s2196_s26 + $0x3ec] ss:$16 sps:$4 sm:$0xff]   ;;  %v1804_v41 = vld [vmem:[%s2196_s26 + $0x1e8] ss:$16 sps:$4 sm:$0xff]  }
  0x81   : > { %1129 = vmatprep.subr.bf16.mxu1 %v1718_v42  ;;  %v1807_v42 = vld [vmem:[%s2196_s26 + $0x3e8] ss:$16 sps:$4 sm:$0xff]  }
  0x83   : > { %1089 = vmatpush2.bf16.msra.mxu0 %v1720_v43  ;;  %v1812_v43 = vld [vmem:[%s2196_s26 + $0x1cc] ss:$16 sps:$4 sm:$0xff]  }
  0x84   : > { %1130 = vmatpush2.bf16.msra.mxu1 %v1721_v44  ;;  %1090 = vmatprep.subr.bf16.mxu0 %v1722_v45  ;;  %v1815_v44 = vld [vmem:[%s2196_s26 + $0x3cc] ss:$16 sps:$4 sm:$0xff]   ;;  %v1810_v45 = vld [vmem:[%s2196_s26 + $0x1c8] ss:$16 sps:$4 sm:$0xff]  }
  0x85   : > { %1131 = vmatprep.subr.bf16.mxu1 %v1724_v46  ;;  %v1813_v46 = vld [vmem:[%s2196_s26 + $0x3c8] ss:$16 sps:$4 sm:$0xff]  }
  0x87   : > { %1091 = vmatpush2.bf16.msra.mxu0 %v1726_v50  ;;  %v1819_v50 = vld [vmem:[%s2196_s26 + $0x3a8] ss:$16 sps:$4 sm:$0xff]  }
  0x88   : > { %1132 = vmatpush2.bf16.msra.mxu1 %v1727_v51  ;;  %1092 = vmatprep.subr.bf16.mxu0 %v1728_v53  ;;  %v1824_v51 = vld [vmem:[%s2196_s26 + $0x18c] ss:$16 sps:$4 sm:$0xff]   ;;  %v1822_v53 = vld [vmem:[%s2196_s26 + $0x188] ss:$16 sps:$4 sm:$0xff]  }
  0x89   : > { %1133 = vmatprep.subr.bf16.mxu1 %v1730_v54  ;;  %v1825_v54 = vld [vmem:[%s2196_s26 + $0x388] ss:$16 sps:$4 sm:$0xff]  }
  0x8b   : > { %1093 = vmatpush2.bf16.msra.mxu0 %v1732_v55  ;;  %v1830_v55 = vld [vmem:[%s2196_s26 + $0x16c] ss:$16 sps:$4 sm:$0xff]  }
  0x8c   : > { %1134 = vmatpush2.bf16.msra.mxu1 %v1733_v56  ;;  %1094 = vmatprep.subr.bf16.mxu0 %v1734_v57  ;;  %v1833_v56 = vld [vmem:[%s2196_s26 + $0x36c] ss:$16 sps:$4 sm:$0xff]   ;;  %v1828_v57 = vld [vmem:[%s2196_s26 + $0x168] ss:$16 sps:$4 sm:$0xff]  }
  0x8d   : > { %1135 = vmatprep.subr.bf16.mxu1 %v1736_v58  ;;  %v1831_v58 = vld [vmem:[%s2196_s26 + $0x368] ss:$16 sps:$4 sm:$0xff]  }
  0x8f   : > { %1095 = vmatpush2.bf16.msra.mxu0 %v1738_v59  ;;  %v1836_v59 = vld [vmem:[%s2196_s26 + $0x14c] ss:$16 sps:$4 sm:$0xff]  }
  0x90   : > { %1136 = vmatpush2.bf16.msra.mxu1 %v1739_v60  ;;  %1096 = vmatprep.subr.bf16.mxu0 %v1740_v61  ;;  %v1839_v60 = vld [vmem:[%s2196_s26 + $0x34c] ss:$16 sps:$4 sm:$0xff]   ;;  %v1834_v61 = vld [vmem:[%s2196_s26 + $0x148] ss:$16 sps:$4 sm:$0xff]  }
  0x91   : > { %1137 = vmatprep.subr.bf16.mxu1 %v1742_v62  ;;  %v1837_v62 = vld [vmem:[%s2196_s26 + $0x348] ss:$16 sps:$4 sm:$0xff]  }
  0x93   : > { %1097 = vmatpush2.bf16.msra.mxu0 %v1744_v63  ;;  %v1842_v63 = vld [vmem:[%s2196_s26 + $0x12c] ss:$16 sps:$4 sm:$0xff]  }
  0x94   : > { %1138 = vmatpush2.bf16.msra.mxu1 %v1745_v0  ;;  %1098 = vmatprep.subr.bf16.mxu0 %v1746_v1  ;;  %v1845_v0 = vld [vmem:[%s2196_s26 + $0x32c] ss:$16 sps:$4 sm:$0xff]   ;;  %v1840_v1 = vld [vmem:[%s2196_s26 + $0x128] ss:$16 sps:$4 sm:$0xff]  }
  0x95   : > { %1139 = vmatprep.subr.bf16.mxu1 %v1748_v2  ;;  %v1843_v2 = vld [vmem:[%s2196_s26 + $0x328] ss:$16 sps:$4 sm:$0xff]  }
  0x97   : > { %1099 = vmatpush2.bf16.msra.mxu0 %v1750_v3  ;;  %v1848_v3 = vld [vmem:[%s2196_s26 + $0x10c] ss:$16 sps:$4 sm:$0xff]  }
  0x98   : > { %1140 = vmatpush2.bf16.msra.mxu1 %v1751_v4  ;;  %1150 = vmatprep.subr.bf16.mxu0 %v1758_v5  ;;  %v1851_v4 = vld [vmem:[%s2196_s26 + $0x30c] ss:$16 sps:$4 sm:$0xff]   ;;  %v1846_v5 = vld [vmem:[%s2196_s26 + $0x108] ss:$16 sps:$4 sm:$0xff]  }
  0x99   : > { %1191 = vmatprep.subr.bf16.mxu1 %v1761_v6  ;;  %v1849_v6 = vld [vmem:[%s2196_s26 + $0x308] ss:$16 sps:$4 sm:$0xff]  }
  0x9a   : > { %1101 = vmatmul.mubr.bf16.vlgmr.msra.gmra.mxu0 %v2294_v7 }
  0x9b   : > { %1142 = vmatmul.mubr.bf16.vlgmr.msra.gmra.mxu1 %v2296_v8  ;;  %1151 = vmatpush1.bf16.msra.mxu0 %v1756_v9 }
  0x9c   : > { %1192 = vmatpush1.bf16.msra.mxu1 %v1759_v10  ;;  %1152 = vmatprep.subr.bf16.mxu0 %v1764_v11  ;;  %v280_v10 = vld [vmem:[#allocation2 + $0x10] sm:$0xff] }
  0x9d   : > { %1193 = vmatprep.subr.bf16.mxu1 %v1767_v12  ;;  %1182 = vmatprep.mubr.bf16.mxu0 %v2270_v48  ;;  %v1821_v48 = vld [vmem:[%s2196_s26 + $0x3ac] ss:$16 sps:$4 sm:$0xff]  }
  0x9e   : > { %1223 = vmatprep.mubr.bf16.mxu1 %v1418_v52  ;;  %v1827_v52 = vld [vmem:[%s2196_s26 + $0x38c] ss:$16 sps:$4 sm:$0xff]  }
  0x9f   : > { %1153 = vmatpush1.bf16.msra.mxu0 %v1762_v13 }
  0xa0   : > { %1194 = vmatpush1.bf16.msra.mxu1 %v1765_v14  ;;  %1154 = vmatprep.subr.bf16.mxu0 %v1770_v15  ;;  %v281_v14 = vld [vmem:[#allocation2] sm:$0xff] }
  0xa1   : > { %1195 = vmatprep.subr.bf16.mxu1 %v1773_v16 }
  0xa3   : > { %1155 = vmatpush1.bf16.msra.mxu0 %v1768_v17 }
  0xa4   : > { %1196 = vmatpush1.bf16.msra.mxu1 %v1771_v18  ;;  %1156 = vmatprep.subr.bf16.mxu0 %v1776_v19 }
  0xa5   : > { %1197 = vmatprep.subr.bf16.mxu1 %v1779_v20 }
  0xa7   : > { %1157 = vmatpush1.bf16.msra.mxu0 %v1774_v21 }
  0xa8   : > { %1198 = vmatpush1.bf16.msra.mxu1 %v1777_v22  ;;  %1158 = vmatprep.subr.bf16.mxu0 %v1782_v23 }
  0xa9   : > { %1199 = vmatprep.subr.bf16.mxu1 %v1785_v24 }
  0xab   : > { %1159 = vmatpush1.bf16.msra.mxu0 %v1780_v25 }
  0xac   : > { %1200 = vmatpush1.bf16.msra.mxu1 %v1783_v26  ;;  %1160 = vmatprep.subr.bf16.mxu0 %v1788_v27  ;;  %v283_v26 = vld [vmem:[#allocation2 + $0x8] sm:$0xff] }
  0xad   : > { %1201 = vmatprep.subr.bf16.mxu1 %v1791_v28 }
  0xaf   : > { %1161 = vmatpush1.bf16.msra.mxu0 %v1786_v29 }
  0xb0   : > { %1202 = vmatpush1.bf16.msra.mxu1 %v1789_v30  ;;  %1162 = vmatprep.subr.bf16.mxu0 %v1794_v31 }
  0xb1   : > { %1203 = vmatprep.subr.bf16.mxu1 %v1797_v32 }
  0xb3   : > { %1163 = vmatpush1.bf16.msra.mxu0 %v1792_v33 }
  0xb4   : > { %1204 = vmatpush1.bf16.msra.mxu1 %v1795_v34  ;;  %1164 = vmatprep.subr.bf16.mxu0 %v1800_v35 }
  0xb5   : > { %1205 = vmatprep.subr.bf16.mxu1 %v1803_v36 }
  0xb7   : > { %1165 = vmatpush1.bf16.msra.mxu0 %v1798_v37 }
  0xb8   : > { %1206 = vmatpush1.bf16.msra.mxu1 %v1801_v38  ;;  %1166 = vmatprep.subr.bf16.mxu0 %v1806_v39 }
  0xb9   : > { %1207 = vmatprep.subr.bf16.mxu1 %v1809_v40 }
  0xbb   : > { %1167 = vmatpush2.bf16.msra.mxu0 %v1804_v41 }
  0xbc   : > { %1208 = vmatpush2.bf16.msra.mxu1 %v1807_v42  ;;  %1168 = vmatprep.subr.bf16.mxu0 %v1812_v43 }
  0xbd   : > { %1209 = vmatprep.subr.bf16.mxu1 %v1815_v44 }
  0xbf   : > { %1169 = vmatpush2.bf16.msra.mxu0 %v1810_v45 }
  0xc0   : > { %1210 = vmatpush2.bf16.msra.mxu1 %v1813_v46  ;;  %1170 = vmatprep.subr.bf16.mxu0 %v1818_v47 }
  0xc1   : > { %1211 = vmatprep.subr.bf16.mxu1 %v1821_v48 }
  0xc3   : > { %1171 = vmatpush2.bf16.msra.mxu0 %v1816_v49 }
  0xc4   : > { %1212 = vmatpush2.bf16.msra.mxu1 %v1819_v50  ;;  %1172 = vmatprep.subr.bf16.mxu0 %v1824_v51 }
  0xc5   : > { %1213 = vmatprep.subr.bf16.mxu1 %v1827_v52 }
  0xc7   : > { %1173 = vmatpush2.bf16.msra.mxu0 %v1822_v53 }
  0xc8   : > { %1214 = vmatpush2.bf16.msra.mxu1 %v1825_v54  ;;  %1174 = vmatprep.subr.bf16.mxu0 %v1830_v55 }
  0xc9   : > { %1215 = vmatprep.subr.bf16.mxu1 %v1833_v56 }
  0xcb   : > { %1175 = vmatpush2.bf16.msra.mxu0 %v1828_v57 }
  0xcc   : > { %1216 = vmatpush2.bf16.msra.mxu1 %v1831_v58  ;;  %1176 = vmatprep.subr.bf16.mxu0 %v1836_v59 }
  0xcd   : > { %1217 = vmatprep.subr.bf16.mxu1 %v1839_v60 }
  0xcf   : > { %1177 = vmatpush2.bf16.msra.mxu0 %v1834_v61 }
  0xd0   : > { %1218 = vmatpush2.bf16.msra.mxu1 %v1837_v62  ;;  %1178 = vmatprep.subr.bf16.mxu0 %v1842_v63 }
  0xd1   : > { %1219 = vmatprep.subr.bf16.mxu1 %v1845_v0 }
  0xd3   : > { %1179 = vmatpush2.bf16.msra.mxu0 %v1840_v1 }
  0xd4   : > { %1220 = vmatpush2.bf16.msra.mxu1 %v1843_v2  ;;  %1180 = vmatprep.subr.bf16.mxu0 %v1848_v3 }
  0xd5   : > { %1221 = vmatprep.subr.bf16.mxu1 %v1851_v4 }
  0xd7   : > { %1181 = vmatpush2.bf16.msra.mxu0 %v1846_v5 }
  0xd8   : > { %1222 = vmatpush2.bf16.msra.mxu1 %v1849_v6 }
  0xda   : > { %1183 = vmatmul.mubr.bf16.vlgmr.msra.gmra.mxu0 %v2294_v7  ;;  %v282_v7 = vld [vmem:[#allocation2 + $0x18] sm:$0xff] }
  0xdb   : > { %1224 = vmatmul.mubr.bf16.vlgmr.msra.gmra.mxu1 %v2296_v8 }
 0x15a   : > { %v1102_v9 = vpop.f32.mrf.mxu0 }
 0x15b   : > { %v1143_v11 = vpop.f32.mrf.mxu1 }
 0x15c   : > { %v1144_v12 = vadd.f32 %v1143_v11, %v1102_v9  ;;  %v1104_v13 = vpop.f32.mrf.mxu0 }
 0x15d   : > { %v1145_v15 = vpop.f32.mrf.mxu1 }
 0x15e   : > { %v1232_v16 = vadd.f32 %v1144_v12, %v280_v10  ;;  %v1146_v17 = vadd.f32 %v1145_v15, %v1104_v13  ;;  %v1106_v18 = vpop.f32.mrf.mxu0 }
 0x15f   : > { %v1147_v19 = vpop.f32.mrf.mxu1 }
 0x160   : > { %1236 = vst [vmem:[#allocation2 + $0x10] sm:$0xff] %v1232_v16  ;;  %v1233_v20 = vadd.f32 %v1146_v17, %v281_v14  ;;  %v1107_v21 = vpop.f32.mrf.mxu0 }
 0x161   : > { %v1148_v22 = vpop.f32.mrf.mxu1 }
 0x162   : > { %1237 = vst [vmem:[#allocation2] sm:$0xff] %v1233_v20 }
 0x19a   : > { %v1184_v23 = vpop.f32.mrf.mxu0 }
 0x19b   : > { %v1225_v24 = vpop.f32.mrf.mxu1 }
 0x19c   : > { %v1226_v8 = vadd.f32 %v1225_v24, %v1184_v23  ;;  %v1186_v25 = vpop.f32.mrf.mxu0 }
 0x19d   : > { %v1227_v27 = vpop.f32.mrf.mxu1 }
 0x19e   : > { %v1234_v28 = vadd.f32 %v1226_v8, %v282_v7  ;;  %v1228_v29 = vadd.f32 %v1227_v27, %v1186_v25  ;;  %v1188_v30 = vpop.f32.mrf.mxu0  ;;  %1243 = sbr.rel (%p1547_p0) target bundleno = 431 (0x1af), region = 48 }
 0x19f   : > { %v1229_v31 = vpop.f32.mrf.mxu1 }
 0x1a0   : > { %1238 = vst [vmem:[#allocation2 + $0x18] sm:$0xff] %v1234_v28  ;;  %v1235_v32 = vadd.f32 %v1228_v29, %v283_v26  ;;  %v1189_v33 = vpop.f32.mrf.mxu0 }
 0x1a1   : > { %v1230_v34 = vpop.f32.mrf.mxu1 }
 0x1a2   : > { %1239 = vst [vmem:[#allocation2 + $0x8] sm:$0xff] %v1235_v32 }
 0x1a3   : > { %v1250_v35 = vlaneseq  ;;  %v1248_v37 = vld [vmem:[%s224_s9] sm:$0xf]  ;;  %v1244_v42 = vld [vmem:[#allocation2 + $0x10] sm:$0xff] }
 0x1a4   : > { %v1245_v43 = vld [vmem:[#allocation2] sm:$0xff] }
 0x1a5   : > { %v1251_v36 = vshrl.u32 %v1250_v35, 7 }
 0x1a7   : > { %v1252_v38 = vsub.s32 0, %v1251_v36  ;;  %v1256_v39 = vsub.s32 1, %v1251_v36  ;;  %v1260_v40 = vsub.s32 2, %v1251_v36  ;;  %v1264_v41 = vsub.s32 3, %v1251_v36  ;;  %v1246_v44 = vld [vmem:[#allocation2 + $0x18] sm:$0xff] }
 0x1a9   : > { %v1253_v45 = vrot.slane %v1248_v37, %v1252_v38  ;;  %v1257_v46 = vrot.slane %v1248_v37, %v1256_v39  ;;  %v1261_v47 = vrot.slane %v1248_v37, %v1260_v40  ;;  %v1247_v48 = vld [vmem:[#allocation2 + $0x8] sm:$0xff]  ;;  %v1265_v49 = vrot.slane %v1248_v37, %v1264_v41 }
 0x1ab   : > { %v1270_v50 = vadd.f32 %v1253_v45, %v1244_v42  ;;  %v1271_v51 = vadd.f32 %v1257_v46, %v1245_v43  ;;  %v1272_v52 = vadd.f32 %v1261_v47, %v1246_v44  ;;  %v1273_v53 = vadd.f32 %v1265_v49, %v1247_v48 }
 0x1ad   : > { %1274 = vst [vmem:[%s2220_s29] sm:$0xff] %v1270_v50  ;;  %1275 = vst [vmem:[%s2220_s29 + $0x8] sm:$0xff] %v1271_v51 }
 0x1ae   : > { %1276 = vst [vmem:[%s2220_s29 + $0x10] sm:$0xff] %v1272_v52  ;;  %1277 = vst [vmem:[%s2220_s29 + $0x18] sm:$0xff] %v1273_v53 }
 0x1af PF: > { %s19_s22 = sadd.s32 1, %s2002_s22   ;;  %s2425_s10 = sld [smem:[#allocation9_spill]] }
 0x1b0   : > { %p16_p1 = scmp.ge.s32.totalorder %s19_s22, 6   ;;  %s2426_s26 = sld [smem:[#allocation10_spill]] }
 0x1b1   : > { %s2427_s12 = smov %s1966_s13  ;;  %s2428_s13 = smov %s1970_s14 }
 0x1b2   : > { %s2429_s14 = smov %s2170_s30  ;;  %s2430_s15 = smov %s1978_s16 }
 0x1b3   : > { %s2431_s16 = smov %s1982_s17  ;;  %s2432_s17 = smov %s2175_s27 }
 0x1b4   : > { %s2433_s18 = smov %s1994_s20  ;;  %s2434_s19 = smov %s1998_s21 }
 0x1b5   : > { %s2435_s20 = smov %s2425_s10  ;;  %18 = sbr.rel (!%p16_p1) target bundleno = 11 (0xb), region = 96 }
 0x1b6   : > { %s2436_s21 = smov %s2426_s26 }
 0x1ba   :  { %1300 = vsyncpa [#allocation4], 1 }
 0x1bb   :  { %1302 = vsyncpa [#allocation4 + $0x1], 1 }
 0x1bc   :  { %1303 = vsyncpa [#allocation6], 1 }
 0x1bd   :  { %1305 = vsyncpa [#allocation6 + $0x1], 1 }

// kernel: forward.3
= control target key start
LH: loop header
LB: loop body
LE: loop exit
PB: predicated region body
PF: predicated region fallthrough
CT: control target
= control target key end

     0   :  { %s4399_s0 = inlined_call_operand.vmem [shape: f32[8,1024], index: 0, kind: input, shape index: {}]   ;;  %s4400_s1 = inlined_call_operand.vmem [shape: f32[512,128], index: 1, kind: input, shape index: {}]   ;;  %s4401_s2 = inlined_call_operand.vmem [shape: f32[1,128], index: 2, kind: input, shape index: {}]   ;;  %s4402_s3 = inlined_call_operand.vmem [shape: f32[512,256], index: 3, kind: input, shape index: {}]   ;;  %s4403_s4 = inlined_call_operand.vmem [shape: f32[1,256], index: 4, kind: input, shape index: {}]   ;;  %s4404_s5 = inlined_call_operand.vmem [shape: f32[256,512], index: 5, kind: input, shape index: {}]   ;;  %s4405_s6 = inlined_call_operand.vmem [shape: f32[1,512], index: 6, kind: input, shape index: {}]   ;;  %s4406_s7 = inlined_call_operand.vmem [shape: f32[512,256], index: 7, kind: input, shape index: {}]   ;;  %s4407_s8 = inlined_call_operand.vmem [shape: f32[1,256], index: 8, kind: input, shape index: {}]   ;;  %s4408_s9 = inlined_call_operand.vmem [shape: f32[256,512], index: 9, kind: input, shape index: {}]   ;;  %s4409_s10 = inlined_call_operand.vmem [shape: f32[1,512], index: 10, kind: input, shape index: {}]   ;;  %s4410_s11 = inlined_call_operand.vmem [shape: f32[512,128], index: 11, kind: input, shape index: {}]   ;;  %s4411_s12 = inlined_call_operand.vmem [shape: s32[8,1], index: 12, kind: input, shape index: {}]   ;;  %s4412_s13 = inlined_call_operand.vmem [shape: s32[8,1], index: 13, kind: input, shape index: {}]   ;;  %s4413_s14 = inlined_call_operand.hbm [shape: f32[8,128], index: 14, kind: output, shape index: {0}]   ;;  %s4414_s15 = inlined_call_operand.hbm [shape: f32[8,128], index: 15, kind: output, shape index: {1}]   ;;  %s4415_s16 = inlined_call_operand.hbm [shape: f32[1,1], index: 16, kind: output, shape index: {2}]   ;;  %s4416_s17 = inlined_call_operand.hbm [shape: f32[1,1], index: 17, kind: output, shape index: {3}]  }
   0x1   :  { %4419 = sst [smem:[#allocation12_spill]] %s4399_s0 }
   0x2   :  { %4420 = sst [smem:[#allocation13_spill]] %s4400_s1 }
   0x3   :  { %23 = vsyncpa [#allocation3], 0 }
   0x4   :  { %24 = vsyncpa [#allocation5], 0  ;;  %s4421_s26 = sld [smem:[#allocation13_spill]] }
   0x5   :  { %s4422_s27 = sld [smem:[#allocation12_spill]] }
   0xa   :  { %v93_v0 = vld [vmem:[%s4421_s26 + $0xf8] sm:$0xff]  ;;  %v92_v4 = vld [vmem:[%s4421_s26 + $0xf0] sm:$0xff]  ;;  %v91_v8 = vld [vmem:[%s4421_s26 + $0xe8] sm:$0xff] }
   0xb   :  { %v125_v1 = vld [vmem:[%s4421_s26 + $0x1f8] sm:$0xff]  ;;  %1956 = vmatprep.subr.mxu0 %v93_v0  ;;  %v124_v5 = vld [vmem:[%s4421_s26 + $0x1f0] sm:$0xff]  ;;  %v123_v9 = vld [vmem:[%s4421_s26 + $0x1e8] sm:$0xff] }
   0xc   :  { %v77_v2 = vld [vmem:[%s4421_s26 + $0x78] sm:$0xff]  ;;  %1991 = vmatprep.subr.mxu1 %v125_v1  ;;  %v76_v6 = vld [vmem:[%s4421_s26 + $0x70] sm:$0xff]  ;;  %v75_v10 = vld [vmem:[%s4421_s26 + $0x68] sm:$0xff] }
   0xd   :  { %v109_v3 = vld [vmem:[%s4421_s26 + $0x178] sm:$0xff]  ;;  %1957 = vmatpush3.msra.mxu0 %v77_v2  ;;  %v108_v7 = vld [vmem:[%s4421_s26 + $0x170] sm:$0xff]  ;;  %v107_v11 = vld [vmem:[%s4421_s26 + $0x168] sm:$0xff] }
   0xe   :  { %1992 = vmatpush3.msra.mxu1 %v109_v3  ;;  %1958 = vmatprep.subr.mxu0 %v92_v4  ;;  %v90_v12 = vld [vmem:[%s4421_s26 + $0xe0] sm:$0xff]  ;;  %v89_v16 = vld [vmem:[%s4421_s26 + $0xd8] sm:$0xff]  ;;  %v88_v20 = vld [vmem:[%s4421_s26 + $0xd0] sm:$0xff] }
   0xf   :  { %1993 = vmatprep.subr.mxu1 %v124_v5  ;;  %1959 = vmatpush3.msra.mxu0 %v76_v6  ;;  %v122_v13 = vld [vmem:[%s4421_s26 + $0x1e0] sm:$0xff]  ;;  %v121_v17 = vld [vmem:[%s4421_s26 + $0x1d8] sm:$0xff]  ;;  %v120_v21 = vld [vmem:[%s4421_s26 + $0x1d0] sm:$0xff] }
  0x10   :  { %1994 = vmatpush3.msra.mxu1 %v108_v7  ;;  %1960 = vmatprep.subr.mxu0 %v91_v8  ;;  %v74_v14 = vld [vmem:[%s4421_s26 + $0x60] sm:$0xff]  ;;  %v73_v18 = vld [vmem:[%s4421_s26 + $0x58] sm:$0xff]  ;;  %v72_v22 = vld [vmem:[%s4421_s26 + $0x50] sm:$0xff] }
  0x11   :  { %1995 = vmatprep.subr.mxu1 %v123_v9  ;;  %v106_v15 = vld [vmem:[%s4421_s26 + $0x160] sm:$0xff]  ;;  %1961 = vmatpush3.msra.mxu0 %v75_v10  ;;  %v105_v19 = vld [vmem:[%s4421_s26 + $0x158] sm:$0xff]  ;;  %v104_v23 = vld [vmem:[%s4421_s26 + $0x150] sm:$0xff] }
  0x12   :  { %1996 = vmatpush3.msra.mxu1 %v107_v11  ;;  %1962 = vmatprep.subr.mxu0 %v90_v12  ;;  %v87_v24 = vld [vmem:[%s4421_s26 + $0xc8] sm:$0xff]  ;;  %v86_v28 = vld [vmem:[%s4421_s26 + $0xc0] sm:$0xff]  ;;  %v85_v32 = vld [vmem:[%s4421_s26 + $0xb8] sm:$0xff] }
  0x13   :  { %1997 = vmatprep.subr.mxu1 %v122_v13  ;;  %1963 = vmatpush3.msra.mxu0 %v74_v14  ;;  %v119_v25 = vld [vmem:[%s4421_s26 + $0x1c8] sm:$0xff]  ;;  %v118_v29 = vld [vmem:[%s4421_s26 + $0x1c0] sm:$0xff]  ;;  %v117_v33 = vld [vmem:[%s4421_s26 + $0x1b8] sm:$0xff] }
  0x14   :  { %1998 = vmatpush3.msra.mxu1 %v106_v15  ;;  %1964 = vmatprep.subr.mxu0 %v89_v16  ;;  %v71_v26 = vld [vmem:[%s4421_s26 + $0x48] sm:$0xff]  ;;  %v70_v30 = vld [vmem:[%s4421_s26 + $0x40] sm:$0xff]  ;;  %v69_v34 = vld [vmem:[%s4421_s26 + $0x38] sm:$0xff] }
  0x15   :  { %1999 = vmatprep.subr.mxu1 %v121_v17  ;;  %1965 = vmatpush3.msra.mxu0 %v73_v18  ;;  %v103_v27 = vld [vmem:[%s4421_s26 + $0x148] sm:$0xff]  ;;  %v102_v31 = vld [vmem:[%s4421_s26 + $0x140] sm:$0xff]  ;;  %v101_v35 = vld [vmem:[%s4421_s26 + $0x138] sm:$0xff] }
  0x16   :  { %2000 = vmatpush3.msra.mxu1 %v105_v19  ;;  %1966 = vmatprep.subr.mxu0 %v88_v20  ;;  %v84_v36 = vld [vmem:[%s4421_s26 + $0xb0] sm:$0xff]  ;;  %v83_v40 = vld [vmem:[%s4421_s26 + $0xa8] sm:$0xff]  ;;  %v82_v44 = vld [vmem:[%s4421_s26 + $0xa0] sm:$0xff] }
  0x17   :  { %2001 = vmatprep.subr.mxu1 %v120_v21  ;;  %1967 = vmatpush3.msra.mxu0 %v72_v22  ;;  %v116_v37 = vld [vmem:[%s4421_s26 + $0x1b0] sm:$0xff]  ;;  %v115_v41 = vld [vmem:[%s4421_s26 + $0x1a8] sm:$0xff]  ;;  %v114_v45 = vld [vmem:[%s4421_s26 + $0x1a0] sm:$0xff] }
  0x18   :  { %2002 = vmatpush3.msra.mxu1 %v104_v23  ;;  %1968 = vmatprep.subr.mxu0 %v87_v24  ;;  %v68_v38 = vld [vmem:[%s4421_s26 + $0x30] sm:$0xff]  ;;  %v67_v42 = vld [vmem:[%s4421_s26 + $0x28] sm:$0xff]  ;;  %v66_v46 = vld [vmem:[%s4421_s26 + $0x20] sm:$0xff] }
  0x19   :  { %2003 = vmatprep.subr.mxu1 %v119_v25  ;;  %1969 = vmatpush3.msra.mxu0 %v71_v26  ;;  %v100_v39 = vld [vmem:[%s4421_s26 + $0x130] sm:$0xff]  ;;  %v99_v43 = vld [vmem:[%s4421_s26 + $0x128] sm:$0xff]  ;;  %v98_v47 = vld [vmem:[%s4421_s26 + $0x120] sm:$0xff] }
  0x1a   :  { %2004 = vmatpush3.msra.mxu1 %v103_v27  ;;  %1970 = vmatprep.subr.mxu0 %v86_v28  ;;  %v81_v48 = vld [vmem:[%s4421_s26 + $0x98] sm:$0xff]  ;;  %v80_v52 = vld [vmem:[%s4421_s26 + $0x90] sm:$0xff]  ;;  %v79_v56 = vld [vmem:[%s4421_s26 + $0x88] sm:$0xff] }
  0x1b   :  { %2005 = vmatprep.subr.mxu1 %v118_v29  ;;  %1971 = vmatpush3.msra.mxu0 %v70_v30  ;;  %v113_v49 = vld [vmem:[%s4421_s26 + $0x198] sm:$0xff]  ;;  %v112_v53 = vld [vmem:[%s4421_s26 + $0x190] sm:$0xff]  ;;  %v111_v57 = vld [vmem:[%s4421_s26 + $0x188] sm:$0xff] }
  0x1c   :  { %2006 = vmatpush3.msra.mxu1 %v102_v31  ;;  %1972 = vmatprep.subr.mxu0 %v85_v32  ;;  %v65_v50 = vld [vmem:[%s4421_s26 + $0x18] sm:$0xff]  ;;  %v64_v54 = vld [vmem:[%s4421_s26 + $0x10] sm:$0xff]  ;;  %v63_v58 = vld [vmem:[%s4421_s26 + $0x8] sm:$0xff] }
  0x1d   :  { %2007 = vmatprep.subr.mxu1 %v117_v33  ;;  %1973 = vmatpush3.msra.mxu0 %v69_v34  ;;  %v97_v51 = vld [vmem:[%s4421_s26 + $0x118] sm:$0xff]  ;;  %v96_v55 = vld [vmem:[%s4421_s26 + $0x110] sm:$0xff]  ;;  %v95_v59 = vld [vmem:[%s4421_s26 + $0x108] sm:$0xff] }
  0x1e   :  { %2008 = vmatpush3.msra.mxu1 %v101_v35  ;;  %1974 = vmatprep.subr.mxu0 %v84_v36  ;;  %v78_v60 = vld [vmem:[%s4421_s26 + $0x80] sm:$0xff]  ;;  %v2500_v63 = vld [vmem:[%s4422_s27 + $0x28] sm:$0xff]  ;;  %v2513_v2 = vld [vmem:[%s4422_s27 + $0x38] sm:$0xff] }
  0x1f   :  { %2009 = vmatprep.subr.mxu1 %v116_v37  ;;  %1975 = vmatpush3.msra.mxu0 %v68_v38  ;;  %v110_v61 = vld [vmem:[%s4421_s26 + $0x180] sm:$0xff]  ;;  %v305_v3 = vld [vmem:[%s4402_s3 + $0xf8] sm:$0xff]  ;;  %v2525_v5 = vld [vmem:[%s4422_s27 + $0x30] sm:$0xff] }
  0x20   :  { %2010 = vmatpush3.msra.mxu1 %v100_v39  ;;  %1976 = vmatprep.subr.mxu0 %v83_v40  ;;  %v62_v62 = vld [vmem:[%s4421_s26] sm:$0xff]  ;;  %v369_v4 = vld [vmem:[%s4402_s3 + $0x2f8] sm:$0xff]  ;;  %v304_v6 = vld [vmem:[%s4402_s3 + $0xf0] sm:$0xff] }
  0x21   :  { %2011 = vmatprep.subr.mxu1 %v115_v41  ;;  %1977 = vmatpush3.msra.mxu0 %v67_v42  ;;  %v94_v0 = vld [vmem:[%s4421_s26 + $0x100] sm:$0xff]  ;;  %v368_v7 = vld [vmem:[%s4402_s3 + $0x2f0] sm:$0xff]  ;;  %v303_v8 = vld [vmem:[%s4402_s3 + $0xe8] sm:$0xff] }
  0x22   :  { %2012 = vmatpush3.msra.mxu1 %v99_v43  ;;  %1978 = vmatprep.subr.mxu0 %v82_v44  ;;  %v2508_v1 = vld [vmem:[%s4422_s27 + $0x20] sm:$0xff]  ;;  %v367_v9 = vld [vmem:[%s4402_s3 + $0x2e8] sm:$0xff]  ;;  %v301_v12 = vld [vmem:[%s4402_s3 + $0xd8] sm:$0xff] }
  0x23   :  { %2013 = vmatprep.subr.mxu1 %v114_v45  ;;  %1979 = vmatpush3.msra.mxu0 %v66_v46  ;;  %v302_v10 = vld [vmem:[%s4402_s3 + $0xe0] sm:$0xff]  ;;  %v365_v13 = vld [vmem:[%s4402_s3 + $0x2d8] sm:$0xff]  ;;  %v300_v14 = vld [vmem:[%s4402_s3 + $0xd0] sm:$0xff] }
  0x24   :  { %2014 = vmatpush3.msra.mxu1 %v98_v47  ;;  %1980 = vmatprep.subr.mxu0 %v81_v48  ;;  %v366_v11 = vld [vmem:[%s4402_s3 + $0x2e0] sm:$0xff]  ;;  %v364_v15 = vld [vmem:[%s4402_s3 + $0x2d0] sm:$0xff]  ;;  %v299_v16 = vld [vmem:[%s4402_s3 + $0xc8] sm:$0xff] }
  0x25   :  { %2015 = vmatprep.subr.mxu1 %v113_v49  ;;  %1981 = vmatpush3.msra.mxu0 %v65_v50  ;;  %v363_v17 = vld [vmem:[%s4402_s3 + $0x2c8] sm:$0xff]  ;;  %v298_v18 = vld [vmem:[%s4402_s3 + $0xc0] sm:$0xff]  ;;  %v297_v20 = vld [vmem:[%s4402_s3 + $0xb8] sm:$0xff] }
  0x26   :  { %2016 = vmatpush3.msra.mxu1 %v97_v51  ;;  %1982 = vmatprep.subr.mxu0 %v80_v52  ;;  %v362_v19 = vld [vmem:[%s4402_s3 + $0x2c0] sm:$0xff]  ;;  %v361_v21 = vld [vmem:[%s4402_s3 + $0x2b8] sm:$0xff]  ;;  %v296_v22 = vld [vmem:[%s4402_s3 + $0xb0] sm:$0xff] }
  0x27   :  { %2017 = vmatprep.subr.mxu1 %v112_v53  ;;  %1983 = vmatpush3.msra.mxu0 %v64_v54  ;;  %v360_v23 = vld [vmem:[%s4402_s3 + $0x2b0] sm:$0xff]  ;;  %v295_v24 = vld [vmem:[%s4402_s3 + $0xa8] sm:$0xff]  ;;  %v294_v26 = vld [vmem:[%s4402_s3 + $0xa0] sm:$0xff] }
  0x28   :  { %2018 = vmatpush3.msra.mxu1 %v96_v55  ;;  %1984 = vmatprep.subr.mxu0 %v79_v56  ;;  %v359_v25 = vld [vmem:[%s4402_s3 + $0x2a8] sm:$0xff]  ;;  %v358_v27 = vld [vmem:[%s4402_s3 + $0x2a0] sm:$0xff]  ;;  %v293_v28 = vld [vmem:[%s4402_s3 + $0x98] sm:$0xff] }
  0x29   :  { %2019 = vmatprep.subr.mxu1 %v111_v57  ;;  %1985 = vmatpush3.msra.mxu0 %v63_v58  ;;  %v357_v29 = vld [vmem:[%s4402_s3 + $0x298] sm:$0xff]  ;;  %v292_v30 = vld [vmem:[%s4402_s3 + $0x90] sm:$0xff]  ;;  %v291_v32 = vld [vmem:[%s4402_s3 + $0x88] sm:$0xff] }
  0x2a   :  { %2020 = vmatpush3.msra.mxu1 %v95_v59  ;;  %1986 = vmatprep.subr.mxu0 %v78_v60  ;;  %v356_v31 = vld [vmem:[%s4402_s3 + $0x290] sm:$0xff]  ;;  %v355_v33 = vld [vmem:[%s4402_s3 + $0x288] sm:$0xff]  ;;  %v290_v34 = vld [vmem:[%s4402_s3 + $0x80] sm:$0xff] }
  0x2b   :  { %2021 = vmatprep.subr.mxu1 %v110_v61  ;;  %1987 = vmatpush3.msra.mxu0 %v62_v62  ;;  %v354_v35 = vld [vmem:[%s4402_s3 + $0x280] sm:$0xff]  ;;  %v289_v36 = vld [vmem:[%s4402_s3 + $0x78] sm:$0xff]  ;;  %v288_v38 = vld [vmem:[%s4402_s3 + $0x70] sm:$0xff] }
  0x2c   :  { %197 = vmatprep.mubr.f32.mxu0 %v2500_v63  ;;  %2022 = vmatpush3.msra.mxu1 %v94_v0  ;;  %v353_v37 = vld [vmem:[%s4402_s3 + $0x278] sm:$0xff]  ;;  %v352_v39 = vld [vmem:[%s4402_s3 + $0x270] sm:$0xff]  ;;  %v287_v40 = vld [vmem:[%s4402_s3 + $0x68] sm:$0xff] }
  0x2d   :  { %198 = vmatmul.mubr.f32.vlgmr.msra.gmra.mxu0 %v2508_v1  ;;  %267 = vmatprep.mubr.f32.mxu1 %v2513_v2  ;;  %v351_v41 = vld [vmem:[%s4402_s3 + $0x268] sm:$0xff]  ;;  %v286_v42 = vld [vmem:[%s4402_s3 + $0x60] sm:$0xff]  ;;  %v285_v44 = vld [vmem:[%s4402_s3 + $0x58] sm:$0xff] }
  0x2e   :  { %414 = vmatprep.subr.mxu0 %v305_v3  ;;  %485 = vmatprep.subr.mxu1 %v369_v4  ;;  %v350_v43 = vld [vmem:[%s4402_s3 + $0x260] sm:$0xff]  ;;  %v349_v45 = vld [vmem:[%s4402_s3 + $0x258] sm:$0xff]  ;;  %v284_v46 = vld [vmem:[%s4402_s3 + $0x50] sm:$0xff] }
  0x2f   :  { %268 = vmatmul.mubr.f32.vlgmr.msra.gmra.mxu1 %v2525_v5  ;;  %415 = vmatpush1.msra.mxu0 %v304_v6  ;;  %v348_v47 = vld [vmem:[%s4402_s3 + $0x250] sm:$0xff]  ;;  %v283_v48 = vld [vmem:[%s4402_s3 + $0x48] sm:$0xff]  ;;  %v282_v50 = vld [vmem:[%s4402_s3 + $0x40] sm:$0xff] }
  0x30   :  { %486 = vmatpush1.msra.mxu1 %v368_v7  ;;  %416 = vmatprep.subr.mxu0 %v303_v8  ;;  %v347_v49 = vld [vmem:[%s4402_s3 + $0x248] sm:$0xff]  ;;  %v346_v51 = vld [vmem:[%s4402_s3 + $0x240] sm:$0xff]  ;;  %v281_v52 = vld [vmem:[%s4402_s3 + $0x38] sm:$0xff] }
  0x31   :  { %487 = vmatprep.subr.mxu1 %v367_v9  ;;  %417 = vmatpush1.msra.mxu0 %v302_v10  ;;  %v345_v53 = vld [vmem:[%s4402_s3 + $0x238] sm:$0xff]  ;;  %v280_v54 = vld [vmem:[%s4402_s3 + $0x30] sm:$0xff]  ;;  %v279_v56 = vld [vmem:[%s4402_s3 + $0x28] sm:$0xff] }
  0x32   :  { %488 = vmatpush1.msra.mxu1 %v366_v11  ;;  %418 = vmatprep.subr.mxu0 %v301_v12  ;;  %v344_v55 = vld [vmem:[%s4402_s3 + $0x230] sm:$0xff]  ;;  %v343_v57 = vld [vmem:[%s4402_s3 + $0x228] sm:$0xff]  ;;  %v278_v58 = vld [vmem:[%s4402_s3 + $0x20] sm:$0xff] }
  0x33   :  { %489 = vmatprep.subr.mxu1 %v365_v13  ;;  %419 = vmatpush1.msra.mxu0 %v300_v14  ;;  %v342_v59 = vld [vmem:[%s4402_s3 + $0x220] sm:$0xff]  ;;  %v277_v60 = vld [vmem:[%s4402_s3 + $0x18] sm:$0xff]  ;;  %v276_v62 = vld [vmem:[%s4402_s3 + $0x10] sm:$0xff] }
  0x34   :  { %490 = vmatpush1.msra.mxu1 %v364_v15  ;;  %420 = vmatprep.subr.mxu0 %v299_v16  ;;  %v341_v61 = vld [vmem:[%s4402_s3 + $0x218] sm:$0xff]  ;;  %v340_v0 = vld [vmem:[%s4402_s3 + $0x210] sm:$0xff]  ;;  %v275_v3 = vld [vmem:[%s4402_s3 + $0x8] sm:$0xff] }
  0x35   :  { %491 = vmatprep.subr.mxu1 %v363_v17  ;;  %421 = vmatpush1.msra.mxu0 %v298_v18  ;;  %v339_v4 = vld [vmem:[%s4402_s3 + $0x208] sm:$0xff]  ;;  %v274_v6 = vld [vmem:[%s4402_s3] sm:$0xff]  ;;  %v337_v8 = vld [vmem:[%s4402_s3 + $0x1f8] sm:$0xff] }
  0x36   :  { %492 = vmatpush1.msra.mxu1 %v362_v19  ;;  %422 = vmatprep.subr.mxu0 %v297_v20  ;;  %v338_v7 = vld [vmem:[%s4402_s3 + $0x200] sm:$0xff]  ;;  %v401_v9 = vld [vmem:[%s4402_s3 + $0x3f8] sm:$0xff]  ;;  %v336_v10 = vld [vmem:[%s4402_s3 + $0x1f0] sm:$0xff] }
  0x37   :  { %493 = vmatprep.subr.mxu1 %v361_v21  ;;  %423 = vmatpush1.msra.mxu0 %v296_v22  ;;  %v400_v11 = vld [vmem:[%s4402_s3 + $0x3f0] sm:$0xff] }
  0x38   :  { %494 = vmatpush1.msra.mxu1 %v360_v23  ;;  %424 = vmatprep.subr.mxu0 %v295_v24 }
  0x39   :  { %495 = vmatprep.subr.mxu1 %v359_v25  ;;  %425 = vmatpush1.msra.mxu0 %v294_v26 }
  0x3a   :  { %496 = vmatpush1.msra.mxu1 %v358_v27  ;;  %426 = vmatprep.subr.mxu0 %v293_v28 }
  0x3b   :  { %497 = vmatprep.subr.mxu1 %v357_v29  ;;  %427 = vmatpush1.msra.mxu0 %v292_v30 }
  0x3c   :  { %498 = vmatpush1.msra.mxu1 %v356_v31  ;;  %428 = vmatprep.subr.mxu0 %v291_v32 }
  0x3d   :  { %499 = vmatprep.subr.mxu1 %v355_v33  ;;  %429 = vmatpush1.msra.mxu0 %v290_v34 }
  0x3e   :  { %500 = vmatpush1.msra.mxu1 %v354_v35  ;;  %430 = vmatprep.subr.mxu0 %v289_v36 }
  0x3f   :  { %501 = vmatprep.subr.mxu1 %v353_v37  ;;  %431 = vmatpush1.msra.mxu0 %v288_v38 }
  0x40   :  { %502 = vmatpush1.msra.mxu1 %v352_v39  ;;  %432 = vmatprep.subr.mxu0 %v287_v40 }
  0x41   :  { %503 = vmatprep.subr.mxu1 %v351_v41  ;;  %433 = vmatpush1.msra.mxu0 %v286_v42 }
  0x42   :  { %504 = vmatpush1.msra.mxu1 %v350_v43  ;;  %434 = vmatprep.subr.mxu0 %v285_v44 }
  0x43   :  { %505 = vmatprep.subr.mxu1 %v349_v45  ;;  %435 = vmatpush1.msra.mxu0 %v284_v46 }
  0x44   :  { %506 = vmatpush1.msra.mxu1 %v348_v47  ;;  %436 = vmatprep.subr.mxu0 %v283_v48 }
  0x45   :  { %507 = vmatprep.subr.mxu1 %v347_v49  ;;  %437 = vmatpush1.msra.mxu0 %v282_v50 }
  0x46   :  { %508 = vmatpush1.msra.mxu1 %v346_v51  ;;  %438 = vmatprep.subr.mxu0 %v281_v52 }
  0x47   :  { %509 = vmatprep.subr.mxu1 %v345_v53  ;;  %439 = vmatpush1.msra.mxu0 %v280_v54 }
  0x48   :  { %510 = vmatpush1.msra.mxu1 %v344_v55  ;;  %440 = vmatprep.subr.mxu0 %v279_v56 }
  0x49   :  { %511 = vmatprep.subr.mxu1 %v343_v57  ;;  %441 = vmatpush1.msra.mxu0 %v278_v58 }
  0x4a   :  { %512 = vmatpush1.msra.mxu1 %v342_v59  ;;  %442 = vmatprep.subr.mxu0 %v277_v60 }
  0x4b   :  { %513 = vmatprep.subr.mxu1 %v341_v61  ;;  %443 = vmatpush1.msra.mxu0 %v276_v62 }
  0x4c   :  { %514 = vmatpush1.msra.mxu1 %v340_v0  ;;  %444 = vmatprep.subr.mxu0 %v275_v3 }
  0x4d   :  { %515 = vmatprep.subr.mxu1 %v339_v4 }
  0x4e   :  { %25 = vsyncpa [#allocation8], 0  ;;  %445 = vmatpush1.msra.mxu0 %v274_v6  ;;  %516 = vmatpush1.msra.mxu1 %v338_v7  ;;  %v335_v12 = vld [vmem:[%s4402_s3 + $0x1e8] sm:$0xff]  ;;  %v334_v14 = vld [vmem:[%s4402_s3 + $0x1e0] sm:$0xff]  ;;  %vm1439_vm1 = vcmask 64512   ;;  %s2214_s29 = smov [#allocation4]  }
  0x4f   :  { %v399_v13 = vld [vmem:[%s4402_s3 + $0x3e8] sm:$0xff]  ;;  %446 = vmatprep.subr.mxu0 %v337_v8  ;;  %517 = vmatprep.subr.mxu1 %v401_v9  ;;  %v398_v15 = vld [vmem:[%s4402_s3 + $0x3e0] sm:$0xff]  ;;  %v333_v16 = vld [vmem:[%s4402_s3 + $0x1d8] sm:$0xff] }
  0x50   :  { %447 = vmatpush2.msra.mxu0 %v336_v10  ;;  %518 = vmatpush2.msra.mxu1 %v400_v11  ;;  %v397_v17 = vld [vmem:[%s4402_s3 + $0x3d8] sm:$0xff]  ;;  %v332_v18 = vld [vmem:[%s4402_s3 + $0x1d0] sm:$0xff]  ;;  %v331_v20 = vld [vmem:[%s4402_s3 + $0x1c8] sm:$0xff] }
  0x51   :  { %448 = vmatprep.subr.mxu0 %v335_v12  ;;  %519 = vmatprep.subr.mxu1 %v399_v13  ;;  %v396_v19 = vld [vmem:[%s4402_s3 + $0x3d0] sm:$0xff]  ;;  %v395_v21 = vld [vmem:[%s4402_s3 + $0x3c8] sm:$0xff]  ;;  %v330_v22 = vld [vmem:[%s4402_s3 + $0x1c0] sm:$0xff] }
  0x52   :  { %449 = vmatpush2.msra.mxu0 %v334_v14  ;;  %520 = vmatpush2.msra.mxu1 %v398_v15  ;;  %v394_v23 = vld [vmem:[%s4402_s3 + $0x3c0] sm:$0xff]  ;;  %v329_v24 = vld [vmem:[%s4402_s3 + $0x1b8] sm:$0xff]  ;;  %v328_v26 = vld [vmem:[%s4402_s3 + $0x1b0] sm:$0xff] }
  0x53   :  { %450 = vmatprep.subr.mxu0 %v333_v16  ;;  %521 = vmatprep.subr.mxu1 %v397_v17  ;;  %v393_v25 = vld [vmem:[%s4402_s3 + $0x3b8] sm:$0xff]  ;;  %v392_v27 = vld [vmem:[%s4402_s3 + $0x3b0] sm:$0xff]  ;;  %v327_v28 = vld [vmem:[%s4402_s3 + $0x1a8] sm:$0xff] }
  0x54   :  { %451 = vmatpush2.msra.mxu0 %v332_v18  ;;  %522 = vmatpush2.msra.mxu1 %v396_v19  ;;  %v391_v29 = vld [vmem:[%s4402_s3 + $0x3a8] sm:$0xff]  ;;  %v326_v30 = vld [vmem:[%s4402_s3 + $0x1a0] sm:$0xff]  ;;  %v325_v32 = vld [vmem:[%s4402_s3 + $0x198] sm:$0xff] }
  0x55   :  { %452 = vmatprep.subr.mxu0 %v331_v20  ;;  %523 = vmatprep.subr.mxu1 %v395_v21  ;;  %v390_v31 = vld [vmem:[%s4402_s3 + $0x3a0] sm:$0xff]  ;;  %v389_v33 = vld [vmem:[%s4402_s3 + $0x398] sm:$0xff]  ;;  %v324_v34 = vld [vmem:[%s4402_s3 + $0x190] sm:$0xff] }
  0x56   :  { %453 = vmatpush2.msra.mxu0 %v330_v22  ;;  %524 = vmatpush2.msra.mxu1 %v394_v23  ;;  %v388_v35 = vld [vmem:[%s4402_s3 + $0x390] sm:$0xff]  ;;  %v323_v36 = vld [vmem:[%s4402_s3 + $0x188] sm:$0xff]  ;;  %v322_v38 = vld [vmem:[%s4402_s3 + $0x180] sm:$0xff] }
  0x57   :  { %454 = vmatprep.subr.mxu0 %v329_v24  ;;  %525 = vmatprep.subr.mxu1 %v393_v25  ;;  %v387_v37 = vld [vmem:[%s4402_s3 + $0x388] sm:$0xff]  ;;  %v386_v39 = vld [vmem:[%s4402_s3 + $0x380] sm:$0xff]  ;;  %v321_v40 = vld [vmem:[%s4402_s3 + $0x178] sm:$0xff] }
  0x58   :  { %455 = vmatpush2.msra.mxu0 %v328_v26  ;;  %526 = vmatpush2.msra.mxu1 %v392_v27  ;;  %v385_v41 = vld [vmem:[%s4402_s3 + $0x378] sm:$0xff]  ;;  %v320_v42 = vld [vmem:[%s4402_s3 + $0x170] sm:$0xff]  ;;  %v319_v44 = vld [vmem:[%s4402_s3 + $0x168] sm:$0xff] }
  0x59   :  { %456 = vmatprep.subr.mxu0 %v327_v28  ;;  %527 = vmatprep.subr.mxu1 %v391_v29  ;;  %v384_v43 = vld [vmem:[%s4402_s3 + $0x370] sm:$0xff]  ;;  %v383_v45 = vld [vmem:[%s4402_s3 + $0x368] sm:$0xff]  ;;  %v318_v46 = vld [vmem:[%s4402_s3 + $0x160] sm:$0xff] }
  0x5a   :  { %457 = vmatpush2.msra.mxu0 %v326_v30  ;;  %528 = vmatpush2.msra.mxu1 %v390_v31  ;;  %v382_v47 = vld [vmem:[%s4402_s3 + $0x360] sm:$0xff]  ;;  %v317_v48 = vld [vmem:[%s4402_s3 + $0x158] sm:$0xff]  ;;  %v316_v50 = vld [vmem:[%s4402_s3 + $0x150] sm:$0xff] }
  0x5b   :  { %458 = vmatprep.subr.mxu0 %v325_v32  ;;  %529 = vmatprep.subr.mxu1 %v389_v33  ;;  %v381_v49 = vld [vmem:[%s4402_s3 + $0x358] sm:$0xff]  ;;  %v380_v51 = vld [vmem:[%s4402_s3 + $0x350] sm:$0xff]  ;;  %v315_v52 = vld [vmem:[%s4402_s3 + $0x148] sm:$0xff] }
  0x5c   :  { %459 = vmatpush2.msra.mxu0 %v324_v34  ;;  %530 = vmatpush2.msra.mxu1 %v388_v35  ;;  %v379_v53 = vld [vmem:[%s4402_s3 + $0x348] sm:$0xff]  ;;  %v314_v54 = vld [vmem:[%s4402_s3 + $0x140] sm:$0xff]  ;;  %v313_v56 = vld [vmem:[%s4402_s3 + $0x138] sm:$0xff] }
  0x5d   :  { %460 = vmatprep.subr.mxu0 %v323_v36  ;;  %531 = vmatprep.subr.mxu1 %v387_v37  ;;  %v378_v55 = vld [vmem:[%s4402_s3 + $0x340] sm:$0xff]  ;;  %v377_v57 = vld [vmem:[%s4402_s3 + $0x338] sm:$0xff]  ;;  %v312_v58 = vld [vmem:[%s4402_s3 + $0x130] sm:$0xff] }
  0x5e   :  { %461 = vmatpush2.msra.mxu0 %v322_v38  ;;  %532 = vmatpush2.msra.mxu1 %v386_v39  ;;  %v376_v59 = vld [vmem:[%s4402_s3 + $0x330] sm:$0xff]  ;;  %v311_v60 = vld [vmem:[%s4402_s3 + $0x128] sm:$0xff]  ;;  %v310_v62 = vld [vmem:[%s4402_s3 + $0x120] sm:$0xff] }
  0x5f   :  { %462 = vmatprep.subr.mxu0 %v321_v40  ;;  %533 = vmatprep.subr.mxu1 %v385_v41  ;;  %v375_v61 = vld [vmem:[%s4402_s3 + $0x328] sm:$0xff]  ;;  %v374_v0 = vld [vmem:[%s4402_s3 + $0x320] sm:$0xff]  ;;  %v309_v3 = vld [vmem:[%s4402_s3 + $0x118] sm:$0xff] }
  0x60   :  { %463 = vmatpush2.msra.mxu0 %v320_v42  ;;  %534 = vmatpush2.msra.mxu1 %v384_v43  ;;  %v373_v4 = vld [vmem:[%s4402_s3 + $0x318] sm:$0xff]  ;;  %v308_v6 = vld [vmem:[%s4402_s3 + $0x110] sm:$0xff]  ;;  %v307_v8 = vld [vmem:[%s4402_s3 + $0x108] sm:$0xff] }
  0x61   :  { %464 = vmatprep.subr.mxu0 %v319_v44  ;;  %535 = vmatprep.subr.mxu1 %v383_v45  ;;  %v372_v7 = vld [vmem:[%s4402_s3 + $0x310] sm:$0xff]  ;;  %v371_v9 = vld [vmem:[%s4402_s3 + $0x308] sm:$0xff]  ;;  %v306_v10 = vld [vmem:[%s4402_s3 + $0x100] sm:$0xff] }
  0x62   :  { %465 = vmatpush2.msra.mxu0 %v318_v46  ;;  %536 = vmatpush2.msra.mxu1 %v382_v47  ;;  %v370_v11 = vld [vmem:[%s4402_s3 + $0x300] sm:$0xff]  ;;  %v619_v12 = vld [vmem:[%s4404_s5 + $0x1e8] sm:$0xff]  ;;  %v621_v13 = vld [vmem:[%s4404_s5 + $0x1f8] sm:$0xff]  ;;  %s1912_s3 = sshll.u32 %s2214_s29, 4  ;;  %s1913_s3 = int_to_ptr.vmem [resolvable:$true] %s1912_s3 }
  0x63   :  { %466 = vmatprep.subr.mxu0 %v317_v48  ;;  %537 = vmatprep.subr.mxu1 %v381_v49  ;;  %v618_v14 = vld [vmem:[%s4404_s5 + $0x1e0] sm:$0xff]  ;;  %v616_v15 = vld [vmem:[%s4404_s5 + $0x1d0] sm:$0xff]  ;;  %v611_v16 = vld [vmem:[%s4404_s5 + $0x1a8] sm:$0xff]  ;;  %s2126_s0 = scalar_lea.vmem %s1913_s3, 128  ;;  %p2131_p1 = scmp.lt.s32.totalorder %s1913_s3, %s1913_s3 }
  0x64   :  { %467 = vmatpush2.msra.mxu0 %v316_v50  ;;  %538 = vmatpush2.msra.mxu1 %v380_v51  ;;  %v613_v17 = vld [vmem:[%s4404_s5 + $0x1b8] sm:$0xff]  ;;  %v610_v18 = vld [vmem:[%s4404_s5 + $0x1a0] sm:$0xff]  ;;  %v612_v19 = vld [vmem:[%s4404_s5 + $0x1b0] sm:$0xff]  ;;  %p2127_p0 = scmp.ne.s32.totalorder %s1913_s3, %s2126_s0  ;;  %p2132_p2 = scmp.lt.s32.totalorder %s2126_s0, %s2126_s0 }
  0x65   :  { %468 = vmatprep.subr.mxu0 %v315_v52  ;;  %539 = vmatprep.subr.mxu1 %v379_v53  ;;  %v607_v20 = vld [vmem:[%s4404_s5 + $0x188] sm:$0xff]  ;;  %v609_v21 = vld [vmem:[%s4404_s5 + $0x198] sm:$0xff]  ;;  %v606_v22 = vld [vmem:[%s4404_s5 + $0x180] sm:$0xff] }
  0x66   :  { %469 = vmatpush2.msra.mxu0 %v314_v54  ;;  %540 = vmatpush2.msra.mxu1 %v378_v55  ;;  %v608_v23 = vld [vmem:[%s4404_s5 + $0x190] sm:$0xff]  ;;  %v603_v24 = vld [vmem:[%s4404_s5 + $0x168] sm:$0xff]  ;;  %v605_v25 = vld [vmem:[%s4404_s5 + $0x178] sm:$0xff]  ;;  %p2133_p3 = por %p2132_p2, %p2131_p1 }
  0x67   :  { %470 = vmatprep.subr.mxu0 %v313_v56  ;;  %541 = vmatprep.subr.mxu1 %v377_v57  ;;  %v602_v26 = vld [vmem:[%s4404_s5 + $0x160] sm:$0xff]  ;;  %v604_v27 = vld [vmem:[%s4404_s5 + $0x170] sm:$0xff]  ;;  %v599_v28 = vld [vmem:[%s4404_s5 + $0x148] sm:$0xff] }
  0x68   :  { %471 = vmatpush2.msra.mxu0 %v312_v58  ;;  %542 = vmatpush2.msra.mxu1 %v376_v59  ;;  %v601_v29 = vld [vmem:[%s4404_s5 + $0x158] sm:$0xff]  ;;  %v598_v30 = vld [vmem:[%s4404_s5 + $0x140] sm:$0xff]  ;;  %v600_v31 = vld [vmem:[%s4404_s5 + $0x150] sm:$0xff]  ;;  %p2134_p4 = pnand %p2133_p3, %p2127_p0 }
  0x69   :  { %472 = vmatprep.subr.mxu0 %v311_v60  ;;  %543 = vmatprep.subr.mxu1 %v375_v61  ;;  %v595_v32 = vld [vmem:[%s4404_s5 + $0x128] sm:$0xff]  ;;  %v597_v33 = vld [vmem:[%s4404_s5 + $0x138] sm:$0xff]  ;;  %v594_v34 = vld [vmem:[%s4404_s5 + $0x120] sm:$0xff] }
  0x6a   :  { %473 = vmatpush2.msra.mxu0 %v310_v62  ;;  %544 = vmatpush2.msra.mxu1 %v374_v0  ;;  %v596_v35 = vld [vmem:[%s4404_s5 + $0x130] sm:$0xff]  ;;  %v591_v36 = vld [vmem:[%s4404_s5 + $0x108] sm:$0xff]  ;;  %v593_v37 = vld [vmem:[%s4404_s5 + $0x118] sm:$0xff] }
  0x6b   :  { %474 = vmatprep.subr.mxu0 %v309_v3  ;;  %545 = vmatprep.subr.mxu1 %v373_v4  ;;  %v590_v38 = vld [vmem:[%s4404_s5 + $0x100] sm:$0xff]  ;;  %v592_v39 = vld [vmem:[%s4404_s5 + $0x110] sm:$0xff]  ;;  %v587_v40 = vld [vmem:[%s4404_s5 + $0xe8] sm:$0xff] }
  0x6c   :  { %475 = vmatpush2.msra.mxu0 %v308_v6  ;;  %546 = vmatpush2.msra.mxu1 %v372_v7  ;;  %v589_v41 = vld [vmem:[%s4404_s5 + $0xf8] sm:$0xff]  ;;  %v586_v42 = vld [vmem:[%s4404_s5 + $0xe0] sm:$0xff]  ;;  %v588_v43 = vld [vmem:[%s4404_s5 + $0xf0] sm:$0xff] }
  0x6d   :  { %476 = vmatprep.subr.mxu0 %v307_v8  ;;  %547 = vmatprep.subr.mxu1 %v371_v9  ;;  %v583_v44 = vld [vmem:[%s4404_s5 + $0xc8] sm:$0xff]  ;;  %v585_v45 = vld [vmem:[%s4404_s5 + $0xd8] sm:$0xff]  ;;  %v582_v46 = vld [vmem:[%s4404_s5 + $0xc0] sm:$0xff] }
  0x6e   :  { %477 = vmatpush2.msra.mxu0 %v306_v10  ;;  %478 = vmatprep.mubr.f32.mxu0 %v2500_v63  ;;  %v620_v63 = vld [vmem:[%s4404_s5 + $0x1f0] sm:$0xff]  ;;  %v579_v48 = vld [vmem:[%s4404_s5 + $0xa8] sm:$0xff]  ;;  %v581_v49 = vld [vmem:[%s4404_s5 + $0xb8] sm:$0xff] }
  0x6f   :  { %548 = vmatpush2.msra.mxu1 %v370_v11  ;;  %549 = vmatprep.mubr.f32.mxu1 %v2513_v2  ;;  %v617_v2 = vld [vmem:[%s4404_s5 + $0x1d8] sm:$0xff]  ;;  %v584_v47 = vld [vmem:[%s4404_s5 + $0xd0] sm:$0xff]  ;;  %v578_v50 = vld [vmem:[%s4404_s5 + $0xa0] sm:$0xff] }
  0x70   :  { %479 = vmatmul.mubr.f32.vlgmr.msra.gmra.mxu0 %v2508_v1  ;;  %550 = vmatmul.mubr.f32.vlgmr.msra.gmra.mxu1 %v2525_v5  ;;  %v615_v1 = vld [vmem:[%s4404_s5 + $0x1c8] sm:$0xff]  ;;  %v614_v5 = vld [vmem:[%s4404_s5 + $0x1c0] sm:$0xff]  ;;  %v580_v51 = vld [vmem:[%s4404_s5 + $0xb0] sm:$0xff] }
  0x71   :  { %708 = vmatprep.subr.mxu0 %v619_v12  ;;  %779 = vmatprep.subr.mxu1 %v621_v13  ;;  %v575_v52 = vld [vmem:[%s4404_s5 + $0x88] sm:$0xff]  ;;  %v577_v53 = vld [vmem:[%s4404_s5 + $0x98] sm:$0xff]  ;;  %v574_v54 = vld [vmem:[%s4404_s5 + $0x80] sm:$0xff] }
  0x72   :  { %709 = vmatpush1.msra.mxu0 %v618_v14  ;;  %780 = vmatpush1.msra.mxu1 %v620_v63  ;;  %v576_v55 = vld [vmem:[%s4404_s5 + $0x90] sm:$0xff]  ;;  %v571_v56 = vld [vmem:[%s4404_s5 + $0x68] sm:$0xff]  ;;  %v573_v57 = vld [vmem:[%s4404_s5 + $0x78] sm:$0xff] }
  0x73   :  { %710 = vmatprep.subr.mxu0 %v615_v1  ;;  %781 = vmatprep.subr.mxu1 %v617_v2  ;;  %v570_v58 = vld [vmem:[%s4404_s5 + $0x60] sm:$0xff]  ;;  %v572_v59 = vld [vmem:[%s4404_s5 + $0x70] sm:$0xff]  ;;  %v567_v60 = vld [vmem:[%s4404_s5 + $0x48] sm:$0xff] }
  0x74   :  { %711 = vmatpush1.msra.mxu0 %v614_v5  ;;  %782 = vmatpush1.msra.mxu1 %v616_v15  ;;  %v569_v61 = vld [vmem:[%s4404_s5 + $0x58] sm:$0xff]  ;;  %v566_v62 = vld [vmem:[%s4404_s5 + $0x40] sm:$0xff]  ;;  %v568_v0 = vld [vmem:[%s4404_s5 + $0x50] sm:$0xff] }
  0x75   :  { %712 = vmatprep.subr.mxu0 %v611_v16  ;;  %783 = vmatprep.subr.mxu1 %v613_v17  ;;  %v563_v3 = vld [vmem:[%s4404_s5 + $0x28] sm:$0xff]  ;;  %v565_v4 = vld [vmem:[%s4404_s5 + $0x38] sm:$0xff]  ;;  %v562_v6 = vld [vmem:[%s4404_s5 + $0x20] sm:$0xff] }
  0x76   :  { %713 = vmatpush1.msra.mxu0 %v610_v18  ;;  %784 = vmatpush1.msra.mxu1 %v612_v19  ;;  %v564_v7 = vld [vmem:[%s4404_s5 + $0x30] sm:$0xff]  ;;  %v559_v8 = vld [vmem:[%s4404_s5 + $0x8] sm:$0xff]  ;;  %v561_v9 = vld [vmem:[%s4404_s5 + $0x18] sm:$0xff] }
  0x77   :  { %714 = vmatprep.subr.mxu0 %v607_v20  ;;  %785 = vmatprep.subr.mxu1 %v609_v21  ;;  %v558_v10 = vld [vmem:[%s4404_s5] sm:$0xff]  ;;  %v560_v11 = vld [vmem:[%s4404_s5 + $0x10] sm:$0xff]  ;;  %v683_v12 = vld [vmem:[%s4404_s5 + $0x3e8] sm:$0xff] }
  0x78   :  { %715 = vmatpush1.msra.mxu0 %v606_v22  ;;  %786 = vmatpush1.msra.mxu1 %v608_v23  ;;  %v685_v13 = vld [vmem:[%s4404_s5 + $0x3f8] sm:$0xff]  ;;  %v682_v14 = vld [vmem:[%s4404_s5 + $0x3e0] sm:$0xff]  ;;  %v684_v63 = vld [vmem:[%s4404_s5 + $0x3f0] sm:$0xff] }
  0x79   :  { %716 = vmatprep.subr.mxu0 %v603_v24  ;;  %787 = vmatprep.subr.mxu1 %v605_v25  ;;  %v679_v1 = vld [vmem:[%s4404_s5 + $0x3c8] sm:$0xff]  ;;  %v681_v2 = vld [vmem:[%s4404_s5 + $0x3d8] sm:$0xff]  ;;  %v678_v5 = vld [vmem:[%s4404_s5 + $0x3c0] sm:$0xff] }
  0x7a   :  { %717 = vmatpush1.msra.mxu0 %v602_v26  ;;  %788 = vmatpush1.msra.mxu1 %v604_v27  ;;  %v680_v15 = vld [vmem:[%s4404_s5 + $0x3d0] sm:$0xff]  ;;  %v675_v16 = vld [vmem:[%s4404_s5 + $0x3a8] sm:$0xff]  ;;  %v677_v17 = vld [vmem:[%s4404_s5 + $0x3b8] sm:$0xff] }
  0x7b   :  { %718 = vmatprep.subr.mxu0 %v599_v28  ;;  %789 = vmatprep.subr.mxu1 %v601_v29  ;;  %v674_v18 = vld [vmem:[%s4404_s5 + $0x3a0] sm:$0xff]  ;;  %v676_v19 = vld [vmem:[%s4404_s5 + $0x3b0] sm:$0xff]  ;;  %v671_v20 = vld [vmem:[%s4404_s5 + $0x388] sm:$0xff] }
  0x7c   :  { %719 = vmatpush1.msra.mxu0 %v598_v30  ;;  %790 = vmatpush1.msra.mxu1 %v600_v31  ;;  %v673_v21 = vld [vmem:[%s4404_s5 + $0x398] sm:$0xff]  ;;  %v670_v22 = vld [vmem:[%s4404_s5 + $0x380] sm:$0xff]  ;;  %v672_v23 = vld [vmem:[%s4404_s5 + $0x390] sm:$0xff] }
  0x7d   :  { %720 = vmatprep.subr.mxu0 %v595_v32  ;;  %791 = vmatprep.subr.mxu1 %v597_v33  ;;  %v667_v24 = vld [vmem:[%s4404_s5 + $0x368] sm:$0xff]  ;;  %v669_v25 = vld [vmem:[%s4404_s5 + $0x378] sm:$0xff]  ;;  %v666_v26 = vld [vmem:[%s4404_s5 + $0x360] sm:$0xff] }
  0x7e   :  { %721 = vmatpush1.msra.mxu0 %v594_v34  ;;  %792 = vmatpush1.msra.mxu1 %v596_v35  ;;  %v668_v27 = vld [vmem:[%s4404_s5 + $0x370] sm:$0xff]  ;;  %v663_v28 = vld [vmem:[%s4404_s5 + $0x348] sm:$0xff]  ;;  %v665_v29 = vld [vmem:[%s4404_s5 + $0x358] sm:$0xff] }
  0x7f   :  { %722 = vmatprep.subr.mxu0 %v591_v36  ;;  %793 = vmatprep.subr.mxu1 %v593_v37  ;;  %v662_v30 = vld [vmem:[%s4404_s5 + $0x340] sm:$0xff]  ;;  %v664_v31 = vld [vmem:[%s4404_s5 + $0x350] sm:$0xff]  ;;  %v659_v32 = vld [vmem:[%s4404_s5 + $0x328] sm:$0xff] }
  0x80   :  { %723 = vmatpush1.msra.mxu0 %v590_v38  ;;  %794 = vmatpush1.msra.mxu1 %v592_v39  ;;  %v661_v33 = vld [vmem:[%s4404_s5 + $0x338] sm:$0xff]  ;;  %v658_v34 = vld [vmem:[%s4404_s5 + $0x320] sm:$0xff]  ;;  %v660_v35 = vld [vmem:[%s4404_s5 + $0x330] sm:$0xff] }
  0x81   :  { %724 = vmatprep.subr.mxu0 %v587_v40  ;;  %795 = vmatprep.subr.mxu1 %v589_v41  ;;  %v655_v36 = vld [vmem:[%s4404_s5 + $0x308] sm:$0xff]  ;;  %v657_v37 = vld [vmem:[%s4404_s5 + $0x318] sm:$0xff]  ;;  %v654_v38 = vld [vmem:[%s4404_s5 + $0x300] sm:$0xff] }
  0x82   :  { %725 = vmatpush1.msra.mxu0 %v586_v42  ;;  %796 = vmatpush1.msra.mxu1 %v588_v43  ;;  %v656_v39 = vld [vmem:[%s4404_s5 + $0x310] sm:$0xff]  ;;  %v651_v40 = vld [vmem:[%s4404_s5 + $0x2e8] sm:$0xff]  ;;  %v653_v41 = vld [vmem:[%s4404_s5 + $0x2f8] sm:$0xff] }
  0x83   :  { %726 = vmatprep.subr.mxu0 %v583_v44  ;;  %797 = vmatprep.subr.mxu1 %v585_v45  ;;  %v650_v42 = vld [vmem:[%s4404_s5 + $0x2e0] sm:$0xff]  ;;  %v652_v43 = vld [vmem:[%s4404_s5 + $0x2f0] sm:$0xff]  ;;  %v647_v44 = vld [vmem:[%s4404_s5 + $0x2c8] sm:$0xff] }
  0x84   :  { %727 = vmatpush1.msra.mxu0 %v582_v46  ;;  %798 = vmatpush1.msra.mxu1 %v584_v47  ;;  %v649_v45 = vld [vmem:[%s4404_s5 + $0x2d8] sm:$0xff]  ;;  %v646_v46 = vld [vmem:[%s4404_s5 + $0x2c0] sm:$0xff]  ;;  %v648_v47 = vld [vmem:[%s4404_s5 + $0x2d0] sm:$0xff] }
  0x85   :  { %728 = vmatprep.subr.mxu0 %v579_v48  ;;  %799 = vmatprep.subr.mxu1 %v581_v49  ;;  %v643_v48 = vld [vmem:[%s4404_s5 + $0x2a8] sm:$0xff]  ;;  %v645_v49 = vld [vmem:[%s4404_s5 + $0x2b8] sm:$0xff] }
  0x86   :  { %729 = vmatpush1.msra.mxu0 %v578_v50  ;;  %800 = vmatpush1.msra.mxu1 %v580_v51  ;;  %v642_v50 = vld [vmem:[%s4404_s5 + $0x2a0] sm:$0xff]  ;;  %v644_v51 = vld [vmem:[%s4404_s5 + $0x2b0] sm:$0xff] }
  0x87   :  { %730 = vmatprep.subr.mxu0 %v575_v52  ;;  %801 = vmatprep.subr.mxu1 %v577_v53  ;;  %v639_v52 = vld [vmem:[%s4404_s5 + $0x288] sm:$0xff]  ;;  %v641_v53 = vld [vmem:[%s4404_s5 + $0x298] sm:$0xff] }
  0x88   :  { %731 = vmatpush1.msra.mxu0 %v574_v54  ;;  %802 = vmatpush1.msra.mxu1 %v576_v55  ;;  %v638_v54 = vld [vmem:[%s4404_s5 + $0x280] sm:$0xff]  ;;  %v640_v55 = vld [vmem:[%s4404_s5 + $0x290] sm:$0xff] }
  0x89   :  { %732 = vmatprep.subr.mxu0 %v571_v56  ;;  %803 = vmatprep.subr.mxu1 %v573_v57  ;;  %v635_v56 = vld [vmem:[%s4404_s5 + $0x268] sm:$0xff]  ;;  %v637_v57 = vld [vmem:[%s4404_s5 + $0x278] sm:$0xff] }
  0x8a   :  { %733 = vmatpush1.msra.mxu0 %v570_v58  ;;  %804 = vmatpush1.msra.mxu1 %v572_v59  ;;  %v634_v58 = vld [vmem:[%s4404_s5 + $0x260] sm:$0xff]  ;;  %v636_v59 = vld [vmem:[%s4404_s5 + $0x270] sm:$0xff] }
  0x8b   :  { %734 = vmatprep.subr.mxu0 %v567_v60  ;;  %805 = vmatprep.subr.mxu1 %v569_v61  ;;  %v631_v60 = vld [vmem:[%s4404_s5 + $0x248] sm:$0xff]  ;;  %v633_v61 = vld [vmem:[%s4404_s5 + $0x258] sm:$0xff] }
  0x8c   :  { %735 = vmatpush1.msra.mxu0 %v566_v62  ;;  %806 = vmatpush1.msra.mxu1 %v568_v0  ;;  %v630_v62 = vld [vmem:[%s4404_s5 + $0x240] sm:$0xff]  ;;  %v632_v0 = vld [vmem:[%s4404_s5 + $0x250] sm:$0xff] }
  0x8d   :  { %736 = vmatprep.subr.mxu0 %v563_v3  ;;  %807 = vmatprep.subr.mxu1 %v565_v4  ;;  %v627_v3 = vld [vmem:[%s4404_s5 + $0x228] sm:$0xff]  ;;  %v629_v4 = vld [vmem:[%s4404_s5 + $0x238] sm:$0xff] }
  0x8e   :  { %737 = vmatpush1.msra.mxu0 %v562_v6  ;;  %808 = vmatpush1.msra.mxu1 %v564_v7  ;;  %v626_v6 = vld [vmem:[%s4404_s5 + $0x220] sm:$0xff]  ;;  %v628_v7 = vld [vmem:[%s4404_s5 + $0x230] sm:$0xff] }
  0x8f   :  { %738 = vmatprep.subr.mxu0 %v559_v8  ;;  %809 = vmatprep.subr.mxu1 %v561_v9  ;;  %v623_v8 = vld [vmem:[%s4404_s5 + $0x208] sm:$0xff]  ;;  %v625_v9 = vld [vmem:[%s4404_s5 + $0x218] sm:$0xff] }
  0x90   :  { %739 = vmatpush1.msra.mxu0 %v558_v10  ;;  %810 = vmatpush1.msra.mxu1 %v560_v11  ;;  %v622_v10 = vld [vmem:[%s4404_s5 + $0x200] sm:$0xff]  ;;  %v624_v11 = vld [vmem:[%s4404_s5 + $0x210] sm:$0xff] }
  0x91   :  { %740 = vmatprep.subr.mxu0 %v683_v12  ;;  %811 = vmatprep.subr.mxu1 %v685_v13  ;;  %v881_v12 = vld [vmem:[%s4406_s7 + $0xf8] sm:$0xff] }
  0x92   :  { %741 = vmatpush2.msra.mxu0 %v682_v14  ;;  %812 = vmatpush2.msra.mxu1 %v684_v63  ;;  %v945_v13 = vld [vmem:[%s4406_s7 + $0x2f8] sm:$0xff] }
  0x93   :  { %742 = vmatprep.subr.mxu0 %v679_v1  ;;  %813 = vmatprep.subr.mxu1 %v681_v2  ;;  %v1951_v1 = vld [vmem:[%s4401_s2] ss:$0 sm:$0xff] }
  0x94   :  { %743 = vmatpush2.msra.mxu0 %v678_v5  ;;  %814 = vmatpush2.msra.mxu1 %v680_v15 }
  0x95   :  { %744 = vmatprep.subr.mxu0 %v675_v16  ;;  %815 = vmatprep.subr.mxu1 %v677_v17 }
  0x96   :  { %745 = vmatpush2.msra.mxu0 %v674_v18  ;;  %816 = vmatpush2.msra.mxu1 %v676_v19  ;;  %v1432_v19 = vld [vmem:[%s4412_s13] sm:$0xff] }
  0x97   :  { %746 = vmatprep.subr.mxu0 %v671_v20  ;;  %817 = vmatprep.subr.mxu1 %v673_v21  ;;  %v2212_v20 = vmov 0   ;;  %v404_v21 = vlaneseq }
  0x98   :  { %747 = vmatpush2.msra.mxu0 %v670_v22  ;;  %818 = vmatpush2.msra.mxu1 %v672_v23 }
  0x99   :  { %748 = vmatprep.subr.mxu0 %v667_v24  ;;  %819 = vmatprep.subr.mxu1 %v669_v25  ;;  %v3309_v22 = vshrl.u32 %v404_v21, 7  ;;  %v402_v24 = vld [vmem:[%s4403_s4] sm:$0x3] }
  0x9a   :  { %749 = vmatpush2.msra.mxu0 %v666_v26  ;;  %820 = vmatpush2.msra.mxu1 %v668_v27 }
  0x9b   :  { %750 = vmatprep.subr.mxu0 %v663_v28  ;;  %821 = vmatprep.subr.mxu1 %v665_v29  ;;  %v3312_v23 = vsub.s32 0, %v3309_v22  ;;  %v3318_v25 = vsub.s32 1, %v3309_v22 }
  0x9c   :  { %751 = vmatpush2.msra.mxu0 %v662_v30  ;;  %822 = vmatpush2.msra.mxu1 %v664_v31 }
  0x9d   :  { %752 = vmatprep.subr.mxu0 %v659_v32  ;;  %823 = vmatprep.subr.mxu1 %v661_v33  ;;  %v407_v26 = vrot.slane %v402_v24, %v3312_v23  ;;  %v411_v27 = vrot.slane %v402_v24, %v3318_v25  ;;  %v921_v24 = vld [vmem:[%s4406_s7 + $0x238] sm:$0xff] }
  0x9e   :  { %753 = vmatpush2.msra.mxu0 %v658_v34  ;;  %824 = vmatpush2.msra.mxu1 %v660_v35 }
  0x9f   :  { %754 = vmatprep.subr.mxu0 %v655_v36  ;;  %825 = vmatprep.subr.mxu1 %v657_v37 }
  0xa0   :  { %755 = vmatpush2.msra.mxu0 %v654_v38  ;;  %826 = vmatpush2.msra.mxu1 %v656_v39  ;;  %v880_v38 = vld [vmem:[%s4406_s7 + $0xf0] sm:$0xff] }
  0xa1   :  { %756 = vmatprep.subr.mxu0 %v651_v40  ;;  %827 = vmatprep.subr.mxu1 %v653_v41  ;;  %v944_v39 = vld [vmem:[%s4406_s7 + $0x2f0] sm:$0xff]  ;;  %v879_v40 = vld [vmem:[%s4406_s7 + $0xe8] sm:$0xff] }
  0xa2   :  { %757 = vmatpush2.msra.mxu0 %v650_v42  ;;  %828 = vmatpush2.msra.mxu1 %v652_v43  ;;  %v943_v41 = vld [vmem:[%s4406_s7 + $0x2e8] sm:$0xff]  ;;  %v878_v42 = vld [vmem:[%s4406_s7 + $0xe0] sm:$0xff] }
  0xa3   :  { %758 = vmatprep.subr.mxu0 %v647_v44  ;;  %829 = vmatprep.subr.mxu1 %v649_v45  ;;  %v942_v43 = vld [vmem:[%s4406_s7 + $0x2e0] sm:$0xff]  ;;  %v877_v44 = vld [vmem:[%s4406_s7 + $0xd8] sm:$0xff] }
  0xa4   :  { %759 = vmatpush2.msra.mxu0 %v646_v46  ;;  %830 = vmatpush2.msra.mxu1 %v648_v47  ;;  %v941_v45 = vld [vmem:[%s4406_s7 + $0x2d8] sm:$0xff]  ;;  %v876_v46 = vld [vmem:[%s4406_s7 + $0xd0] sm:$0xff] }
  0xa5   :  { %760 = vmatprep.subr.mxu0 %v643_v48  ;;  %831 = vmatprep.subr.mxu1 %v645_v49  ;;  %v940_v47 = vld [vmem:[%s4406_s7 + $0x2d0] sm:$0xff]  ;;  %v875_v48 = vld [vmem:[%s4406_s7 + $0xc8] sm:$0xff] }
  0xa6   :  { %761 = vmatpush2.msra.mxu0 %v642_v50  ;;  %832 = vmatpush2.msra.mxu1 %v644_v51  ;;  %v939_v49 = vld [vmem:[%s4406_s7 + $0x2c8] sm:$0xff]  ;;  %v874_v50 = vld [vmem:[%s4406_s7 + $0xc0] sm:$0xff] }
  0xa7   :  { %762 = vmatprep.subr.mxu0 %v639_v52  ;;  %833 = vmatprep.subr.mxu1 %v641_v53  ;;  %v938_v51 = vld [vmem:[%s4406_s7 + $0x2c0] sm:$0xff]  ;;  %v873_v52 = vld [vmem:[%s4406_s7 + $0xb8] sm:$0xff] }
  0xa8   :  { %763 = vmatpush2.msra.mxu0 %v638_v54  ;;  %834 = vmatpush2.msra.mxu1 %v640_v55  ;;  %v937_v53 = vld [vmem:[%s4406_s7 + $0x2b8] sm:$0xff]  ;;  %v872_v54 = vld [vmem:[%s4406_s7 + $0xb0] sm:$0xff] }
  0xa9   :  { %764 = vmatprep.subr.mxu0 %v635_v56  ;;  %835 = vmatprep.subr.mxu1 %v637_v57  ;;  %v936_v55 = vld [vmem:[%s4406_s7 + $0x2b0] sm:$0xff]  ;;  %v871_v56 = vld [vmem:[%s4406_s7 + $0xa8] sm:$0xff] }
  0xaa   :  { %765 = vmatpush2.msra.mxu0 %v634_v58  ;;  %836 = vmatpush2.msra.mxu1 %v636_v59  ;;  %v935_v57 = vld [vmem:[%s4406_s7 + $0x2a8] sm:$0xff]  ;;  %v870_v58 = vld [vmem:[%s4406_s7 + $0xa0] sm:$0xff] }
  0xab   :  { %766 = vmatprep.subr.mxu0 %v631_v60  ;;  %837 = vmatprep.subr.mxu1 %v633_v61  ;;  %v934_v59 = vld [vmem:[%s4406_s7 + $0x2a0] sm:$0xff]  ;;  %v869_v60 = vld [vmem:[%s4406_s7 + $0x98] sm:$0xff] }
  0xac   :  { %767 = vmatpush2.msra.mxu0 %v630_v62  ;;  %838 = vmatpush2.msra.mxu1 %v632_v0  ;;  %v933_v61 = vld [vmem:[%s4406_s7 + $0x298] sm:$0xff]  ;;  %v868_v62 = vld [vmem:[%s4406_s7 + $0x90] sm:$0xff] }
  0xad   :  { %768 = vmatprep.subr.mxu0 %v627_v3  ;;  %839 = vmatprep.subr.mxu1 %v629_v4  ;;  %v932_v0 = vld [vmem:[%s4406_s7 + $0x290] sm:$0xff]  ;;  %v867_v3 = vld [vmem:[%s4406_s7 + $0x88] sm:$0xff] }
  0xae   :  { %769 = vmatpush2.msra.mxu0 %v626_v6  ;;  %840 = vmatpush2.msra.mxu1 %v628_v7  ;;  %v931_v4 = vld [vmem:[%s4406_s7 + $0x288] sm:$0xff]  ;;  %v866_v6 = vld [vmem:[%s4406_s7 + $0x80] sm:$0xff] }
  0xaf   :  { %770 = vmatprep.subr.mxu0 %v623_v8  ;;  %841 = vmatprep.subr.mxu1 %v625_v9  ;;  %v930_v7 = vld [vmem:[%s4406_s7 + $0x280] sm:$0xff]  ;;  %v865_v8 = vld [vmem:[%s4406_s7 + $0x78] sm:$0xff] }
  0xb0   :  { %771 = vmatpush2.msra.mxu0 %v622_v10  ;;  %842 = vmatpush2.msra.mxu1 %v624_v11  ;;  %v929_v9 = vld [vmem:[%s4406_s7 + $0x278] sm:$0xff]  ;;  %v864_v10 = vld [vmem:[%s4406_s7 + $0x70] sm:$0xff] }
  0xb1   :  { %990 = vmatprep.subr.mxu0 %v881_v12  ;;  %1061 = vmatprep.subr.mxu1 %v945_v13  ;;  %v928_v11 = vld [vmem:[%s4406_s7 + $0x270] sm:$0xff]  ;;  %v863_v12 = vld [vmem:[%s4406_s7 + $0x68] sm:$0xff] }
  0xb2   :  { %2102 = vset.pattern.permute.xlu0 %v2212_v20  ;;  %2103 = vset.pattern.permute.xlu1 %v2212_v20  ;;  %v927_v13 = vld [vmem:[%s4406_s7 + $0x268] sm:$0xff]  ;;  %v857_v20 = vld [vmem:[%s4406_s7 + $0x38] sm:$0xff] }
  0xb3   :  { %1434 = vperm.xlu0 %2102, %v1432_v19   ;;  %v922_v19 = vld [vmem:[%s4406_s7 + $0x240] sm:$0xff] }
  0xed   :  { %v1988_v14 = vpop.f32.mrf.mxu0 }
  0xef   :  { %v2023_v63 = vpop.f32.mrf.mxu1  ;;  %v1989_v2 = vpop.f32.mrf.mxu0 }
  0xf0   :  { %v1990_v5 = vadd.f32 %v1989_v2, %v1988_v14  ;;  %v862_v14 = vld [vmem:[%s4406_s7 + $0x60] sm:$0xff]  ;;  %v925_v2 = vld [vmem:[%s4406_s7 + $0x258] sm:$0xff] }
  0xf1   :  { %v2024_v15 = vpop.f32.mrf.mxu1 }
  0xf2   :  { %v200_v16 = vadd.f32 %v1990_v5, %v1951_v1  ;;  %v2025_v17 = vadd.f32 %v2024_v15, %v2023_v63  ;;  %v926_v63 = vld [vmem:[%s4406_s7 + $0x260] sm:$0xff]  ;;  %v861_v1 = vld [vmem:[%s4406_s7 + $0x58] sm:$0xff]  ;;  %v860_v5 = vld [vmem:[%s4406_s7 + $0x50] sm:$0xff] }
  0xf3   :  { %v924_v15 = vld [vmem:[%s4406_s7 + $0x250] sm:$0xff] }
  0xf4   :  { %v270_v18 = vadd.f32 %v2025_v17, %v200_v16  ;;  %v859_v16 = vld [vmem:[%s4406_s7 + $0x48] sm:$0xff] }
  0xf5   :  { %v923_v17 = vld [vmem:[%s4406_s7 + $0x248] sm:$0xff] }
  0xf6   :  { %273 = vst [vmem:[#allocation4] sm:$0xff] %v270_v18  ;;  %v858_v18 = vld [vmem:[%s4406_s7 + $0x40] sm:$0xff] }
 0x130   :  { %v480_v28 = vpop.f32.mrf.mxu0  ;;  %v551_v29 = vpop.f32.mrf.mxu1 }
 0x131   :  { %v481_v30 = vadd.f32 %v480_v28, %v407_v26  ;;  %v856_v26 = vld [vmem:[%s4406_s7 + $0x30] sm:$0xff]  ;;  %v855_v28 = vld [vmem:[%s4406_s7 + $0x28] sm:$0xff] }
 0x132   :  { %v482_v31 = vpop.f32.mrf.mxu0  ;;  %v553_v34 = vpop.f32.mrf.mxu1 }
 0x133   :  { %v483_v32 = vadd.f32 %v482_v31, %v411_v27  ;;  %v552_v33 = vadd.f32 %v551_v29, %v481_v30  ;;  %v920_v27 = vld [vmem:[%s4406_s7 + $0x230] sm:$0xff]  ;;  %v919_v29 = vld [vmem:[%s4406_s7 + $0x228] sm:$0xff]  ;;  %v854_v30 = vld [vmem:[%s4406_s7 + $0x20] sm:$0xff] }
 0x134   :  { %v918_v31 = vld [vmem:[%s4406_s7 + $0x220] sm:$0xff] }
 0x135   :  { %v554_v35 = vadd.f32 %v553_v34, %v483_v32  ;;  %v556_v37 = vmax.f32 %v552_v33, 0.0  ;;  %v853_v32 = vld [vmem:[%s4406_s7 + $0x18] sm:$0xff]  ;;  %v852_v34 = vld [vmem:[%s4406_s7 + $0x10] sm:$0xff] }
 0x136   :  { %v917_v33 = vld [vmem:[%s4406_s7 + $0x218] sm:$0xff] }
 0x137   :  { %v557_v36 = vmax.f32 %v554_v35, 0.0  ;;  %v916_v35 = vld [vmem:[%s4406_s7 + $0x210] sm:$0xff] }
 0x139   :  { %772 = vmatprep.mubr.f32.mxu0 %v557_v36  ;;  %843 = vmatprep.mubr.f32.mxu1 %v557_v36  ;;  %v851_v36 = vld [vmem:[%s4406_s7 + $0x8] sm:$0xff] }
 0x13a   :  { %773 = vmatmul.mubr.f32.vlgmr.msra.gmra.mxu0 %v556_v37  ;;  %844 = vmatmul.mubr.f32.vlgmr.msra.gmra.mxu1 %v556_v37  ;;  %v915_v37 = vld [vmem:[%s4406_s7 + $0x208] sm:$0xff] }
 0x13b   :  { %991 = vmatpush1.msra.mxu0 %v880_v38  ;;  %1062 = vmatpush1.msra.mxu1 %v944_v39  ;;  %v850_v38 = vld [vmem:[%s4406_s7] sm:$0xff] }
 0x13c   :  { %992 = vmatprep.subr.mxu0 %v879_v40  ;;  %1063 = vmatprep.subr.mxu1 %v943_v41  ;;  %v914_v39 = vld [vmem:[%s4406_s7 + $0x200] sm:$0xff]  ;;  %v913_v40 = vld [vmem:[%s4406_s7 + $0x1f8] sm:$0xff] }
 0x13d   :  { %993 = vmatpush1.msra.mxu0 %v878_v42  ;;  %1064 = vmatpush1.msra.mxu1 %v942_v43  ;;  %v977_v41 = vld [vmem:[%s4406_s7 + $0x3f8] sm:$0xff]  ;;  %v912_v42 = vld [vmem:[%s4406_s7 + $0x1f0] sm:$0xff] }
 0x13e   :  { %994 = vmatprep.subr.mxu0 %v877_v44  ;;  %1065 = vmatprep.subr.mxu1 %v941_v45  ;;  %v976_v43 = vld [vmem:[%s4406_s7 + $0x3f0] sm:$0xff]  ;;  %v911_v44 = vld [vmem:[%s4406_s7 + $0x1e8] sm:$0xff] }
 0x13f   :  { %995 = vmatpush1.msra.mxu0 %v876_v46  ;;  %1066 = vmatpush1.msra.mxu1 %v940_v47  ;;  %v975_v45 = vld [vmem:[%s4406_s7 + $0x3e8] sm:$0xff]  ;;  %v910_v46 = vld [vmem:[%s4406_s7 + $0x1e0] sm:$0xff] }
 0x140   :  { %996 = vmatprep.subr.mxu0 %v875_v48  ;;  %1067 = vmatprep.subr.mxu1 %v939_v49  ;;  %v974_v47 = vld [vmem:[%s4406_s7 + $0x3e0] sm:$0xff]  ;;  %v909_v48 = vld [vmem:[%s4406_s7 + $0x1d8] sm:$0xff] }
 0x141   :  { %997 = vmatpush1.msra.mxu0 %v874_v50  ;;  %1068 = vmatpush1.msra.mxu1 %v938_v51  ;;  %v973_v49 = vld [vmem:[%s4406_s7 + $0x3d8] sm:$0xff]  ;;  %v908_v50 = vld [vmem:[%s4406_s7 + $0x1d0] sm:$0xff] }
 0x142   :  { %998 = vmatprep.subr.mxu0 %v873_v52  ;;  %1069 = vmatprep.subr.mxu1 %v937_v53  ;;  %v972_v51 = vld [vmem:[%s4406_s7 + $0x3d0] sm:$0xff]  ;;  %v907_v52 = vld [vmem:[%s4406_s7 + $0x1c8] sm:$0xff] }
 0x143   :  { %999 = vmatpush1.msra.mxu0 %v872_v54  ;;  %1070 = vmatpush1.msra.mxu1 %v936_v55  ;;  %v971_v53 = vld [vmem:[%s4406_s7 + $0x3c8] sm:$0xff]  ;;  %v906_v54 = vld [vmem:[%s4406_s7 + $0x1c0] sm:$0xff] }
 0x144   :  { %1000 = vmatprep.subr.mxu0 %v871_v56  ;;  %1071 = vmatprep.subr.mxu1 %v935_v57  ;;  %v970_v55 = vld [vmem:[%s4406_s7 + $0x3c0] sm:$0xff]  ;;  %v905_v56 = vld [vmem:[%s4406_s7 + $0x1b8] sm:$0xff] }
 0x145   :  { %1001 = vmatpush1.msra.mxu0 %v870_v58  ;;  %1072 = vmatpush1.msra.mxu1 %v934_v59  ;;  %v969_v57 = vld [vmem:[%s4406_s7 + $0x3b8] sm:$0xff]  ;;  %v904_v58 = vld [vmem:[%s4406_s7 + $0x1b0] sm:$0xff] }
 0x146   :  { %1002 = vmatprep.subr.mxu0 %v869_v60  ;;  %1073 = vmatprep.subr.mxu1 %v933_v61  ;;  %v968_v59 = vld [vmem:[%s4406_s7 + $0x3b0] sm:$0xff]  ;;  %v903_v60 = vld [vmem:[%s4406_s7 + $0x1a8] sm:$0xff] }
 0x147   :  { %1003 = vmatpush1.msra.mxu0 %v868_v62  ;;  %1074 = vmatpush1.msra.mxu1 %v932_v0  ;;  %v967_v61 = vld [vmem:[%s4406_s7 + $0x3a8] sm:$0xff]  ;;  %v902_v62 = vld [vmem:[%s4406_s7 + $0x1a0] sm:$0xff] }
 0x148   :  { %1004 = vmatprep.subr.mxu0 %v867_v3  ;;  %1075 = vmatprep.subr.mxu1 %v931_v4  ;;  %v966_v0 = vld [vmem:[%s4406_s7 + $0x3a0] sm:$0xff]  ;;  %v901_v3 = vld [vmem:[%s4406_s7 + $0x198] sm:$0xff] }
 0x149   :  { %1005 = vmatpush1.msra.mxu0 %v866_v6  ;;  %1076 = vmatpush1.msra.mxu1 %v930_v7  ;;  %v965_v4 = vld [vmem:[%s4406_s7 + $0x398] sm:$0xff]  ;;  %v900_v6 = vld [vmem:[%s4406_s7 + $0x190] sm:$0xff] }
 0x14a   :  { %1006 = vmatprep.subr.mxu0 %v865_v8  ;;  %1077 = vmatprep.subr.mxu1 %v929_v9  ;;  %v964_v7 = vld [vmem:[%s4406_s7 + $0x390] sm:$0xff]  ;;  %v899_v8 = vld [vmem:[%s4406_s7 + $0x188] sm:$0xff] }
 0x14b   :  { %1007 = vmatpush1.msra.mxu0 %v864_v10  ;;  %1078 = vmatpush1.msra.mxu1 %v928_v11  ;;  %v963_v9 = vld [vmem:[%s4406_s7 + $0x388] sm:$0xff]  ;;  %v898_v10 = vld [vmem:[%s4406_s7 + $0x180] sm:$0xff] }
 0x14c   :  { %1008 = vmatprep.subr.mxu0 %v863_v12  ;;  %1079 = vmatprep.subr.mxu1 %v927_v13  ;;  %v962_v11 = vld [vmem:[%s4406_s7 + $0x380] sm:$0xff]  ;;  %v897_v12 = vld [vmem:[%s4406_s7 + $0x178] sm:$0xff] }
 0x14d   :  { %1009 = vmatpush1.msra.mxu0 %v862_v14  ;;  %1080 = vmatpush1.msra.mxu1 %v926_v63  ;;  %v961_v13 = vld [vmem:[%s4406_s7 + $0x378] sm:$0xff]  ;;  %v896_v14 = vld [vmem:[%s4406_s7 + $0x170] sm:$0xff] }
 0x14e   :  { %1010 = vmatprep.subr.mxu0 %v861_v1  ;;  %1081 = vmatprep.subr.mxu1 %v925_v2  ;;  %v960_v63 = vld [vmem:[%s4406_s7 + $0x370] sm:$0xff]  ;;  %v895_v1 = vld [vmem:[%s4406_s7 + $0x168] sm:$0xff] }
 0x14f   :  { %1011 = vmatpush1.msra.mxu0 %v860_v5  ;;  %1082 = vmatpush1.msra.mxu1 %v924_v15  ;;  %v959_v2 = vld [vmem:[%s4406_s7 + $0x368] sm:$0xff]  ;;  %v894_v5 = vld [vmem:[%s4406_s7 + $0x160] sm:$0xff] }
 0x150   :  { %1012 = vmatprep.subr.mxu0 %v859_v16  ;;  %1083 = vmatprep.subr.mxu1 %v923_v17  ;;  %v958_v15 = vld [vmem:[%s4406_s7 + $0x360] sm:$0xff]  ;;  %v893_v16 = vld [vmem:[%s4406_s7 + $0x158] sm:$0xff] }
 0x151   :  { %1013 = vmatpush1.msra.mxu0 %v858_v18  ;;  %1084 = vmatpush1.msra.mxu1 %v922_v19  ;;  %v957_v17 = vld [vmem:[%s4406_s7 + $0x358] sm:$0xff]  ;;  %v892_v18 = vld [vmem:[%s4406_s7 + $0x150] sm:$0xff] }
 0x152   :  { %1014 = vmatprep.subr.mxu0 %v857_v20  ;;  %1085 = vmatprep.subr.mxu1 %v921_v24  ;;  %v956_v19 = vld [vmem:[%s4406_s7 + $0x350] sm:$0xff]  ;;  %v891_v20 = vld [vmem:[%s4406_s7 + $0x148] sm:$0xff] }
 0x153   :  { %1015 = vmatpush1.msra.mxu0 %v856_v26  ;;  %1086 = vmatpush1.msra.mxu1 %v920_v27  ;;  %v955_v24 = vld [vmem:[%s4406_s7 + $0x348] sm:$0xff]  ;;  %v890_v26 = vld [vmem:[%s4406_s7 + $0x140] sm:$0xff] }
 0x154   :  { %1016 = vmatprep.subr.mxu0 %v855_v28  ;;  %1087 = vmatprep.subr.mxu1 %v919_v29  ;;  %v954_v27 = vld [vmem:[%s4406_s7 + $0x340] sm:$0xff]  ;;  %v889_v28 = vld [vmem:[%s4406_s7 + $0x138] sm:$0xff] }
 0x155   :  { %1017 = vmatpush1.msra.mxu0 %v854_v30  ;;  %1088 = vmatpush1.msra.mxu1 %v918_v31  ;;  %v953_v29 = vld [vmem:[%s4406_s7 + $0x338] sm:$0xff]  ;;  %v888_v30 = vld [vmem:[%s4406_s7 + $0x130] sm:$0xff] }
 0x156   :  { %1018 = vmatprep.subr.mxu0 %v853_v32  ;;  %1089 = vmatprep.subr.mxu1 %v917_v33  ;;  %v952_v31 = vld [vmem:[%s4406_s7 + $0x330] sm:$0xff]  ;;  %v887_v32 = vld [vmem:[%s4406_s7 + $0x128] sm:$0xff] }
 0x157   :  { %1019 = vmatpush1.msra.mxu0 %v852_v34  ;;  %1090 = vmatpush1.msra.mxu1 %v916_v35  ;;  %v951_v33 = vld [vmem:[%s4406_s7 + $0x328] sm:$0xff]  ;;  %v886_v34 = vld [vmem:[%s4406_s7 + $0x120] sm:$0xff] }
 0x158   :  { %1020 = vmatprep.subr.mxu0 %v851_v36  ;;  %1091 = vmatprep.subr.mxu1 %v915_v37  ;;  %v950_v35 = vld [vmem:[%s4406_s7 + $0x320] sm:$0xff]  ;;  %v885_v36 = vld [vmem:[%s4406_s7 + $0x118] sm:$0xff] }
 0x159   :  { %1021 = vmatpush1.msra.mxu0 %v850_v38  ;;  %1092 = vmatpush1.msra.mxu1 %v914_v39  ;;  %v949_v37 = vld [vmem:[%s4406_s7 + $0x318] sm:$0xff]  ;;  %v884_v38 = vld [vmem:[%s4406_s7 + $0x110] sm:$0xff] }
 0x15a   :  { %1022 = vmatprep.subr.mxu0 %v913_v40  ;;  %1093 = vmatprep.subr.mxu1 %v977_v41  ;;  %v948_v39 = vld [vmem:[%s4406_s7 + $0x310] sm:$0xff]  ;;  %v883_v40 = vld [vmem:[%s4406_s7 + $0x108] sm:$0xff] }
 0x15b   :  { %1023 = vmatpush2.msra.mxu0 %v912_v42  ;;  %1094 = vmatpush2.msra.mxu1 %v976_v43  ;;  %v947_v41 = vld [vmem:[%s4406_s7 + $0x308] sm:$0xff]  ;;  %v882_v42 = vld [vmem:[%s4406_s7 + $0x100] sm:$0xff] }
 0x15c   :  { %1024 = vmatprep.subr.mxu0 %v911_v44  ;;  %1095 = vmatprep.subr.mxu1 %v975_v45  ;;  %v946_v43 = vld [vmem:[%s4406_s7 + $0x300] sm:$0xff]  ;;  %v2122_v44 = vld [vmem:[%s4422_s27 + $0x28] sm:$0xff]  ;;  %v2123_v45 = vld [vmem:[%s4422_s27 + $0x38] sm:$0xff] }
 0x15d   :  { %1025 = vmatpush2.msra.mxu0 %v910_v46  ;;  %1096 = vmatpush2.msra.mxu1 %v974_v47  ;;  %v2124_v46 = vld [vmem:[%s4422_s27 + $0x20] sm:$0xff]  ;;  %v2125_v47 = vld [vmem:[%s4422_s27 + $0x30] sm:$0xff] }
 0x15e   :  { %1026 = vmatprep.subr.mxu0 %v909_v48  ;;  %1097 = vmatprep.subr.mxu1 %v973_v49  ;;  %v1195_v48 = vld [vmem:[%s4408_s9 + $0x1e8] sm:$0xff]  ;;  %v1197_v49 = vld [vmem:[%s4408_s9 + $0x1f8] sm:$0xff] }
 0x15f   :  { %1027 = vmatpush2.msra.mxu0 %v908_v50  ;;  %1098 = vmatpush2.msra.mxu1 %v972_v51  ;;  %v1194_v50 = vld [vmem:[%s4408_s9 + $0x1e0] sm:$0xff]  ;;  %v1196_v51 = vld [vmem:[%s4408_s9 + $0x1f0] sm:$0xff] }
 0x160   :  { %1028 = vmatprep.subr.mxu0 %v907_v52  ;;  %1099 = vmatprep.subr.mxu1 %v971_v53  ;;  %v1191_v52 = vld [vmem:[%s4408_s9 + $0x1c8] sm:$0xff]  ;;  %v1193_v53 = vld [vmem:[%s4408_s9 + $0x1d8] sm:$0xff] }
 0x161   :  { %1029 = vmatpush2.msra.mxu0 %v906_v54  ;;  %1100 = vmatpush2.msra.mxu1 %v970_v55  ;;  %v1190_v54 = vld [vmem:[%s4408_s9 + $0x1c0] sm:$0xff]  ;;  %v1192_v55 = vld [vmem:[%s4408_s9 + $0x1d0] sm:$0xff] }
 0x162   :  { %1030 = vmatprep.subr.mxu0 %v905_v56  ;;  %1101 = vmatprep.subr.mxu1 %v969_v57  ;;  %v1187_v56 = vld [vmem:[%s4408_s9 + $0x1a8] sm:$0xff]  ;;  %v1189_v57 = vld [vmem:[%s4408_s9 + $0x1b8] sm:$0xff] }
 0x163   :  { %1031 = vmatpush2.msra.mxu0 %v904_v58  ;;  %1102 = vmatpush2.msra.mxu1 %v968_v59  ;;  %v1186_v58 = vld [vmem:[%s4408_s9 + $0x1a0] sm:$0xff]  ;;  %v1188_v59 = vld [vmem:[%s4408_s9 + $0x1b0] sm:$0xff] }
 0x164   :  { %1032 = vmatprep.subr.mxu0 %v903_v60  ;;  %1103 = vmatprep.subr.mxu1 %v967_v61  ;;  %v1183_v60 = vld [vmem:[%s4408_s9 + $0x188] sm:$0xff]  ;;  %v1185_v61 = vld [vmem:[%s4408_s9 + $0x198] sm:$0xff] }
 0x165   :  { %1033 = vmatpush2.msra.mxu0 %v902_v62  ;;  %1104 = vmatpush2.msra.mxu1 %v966_v0  ;;  %v1182_v62 = vld [vmem:[%s4408_s9 + $0x180] sm:$0xff]  ;;  %v1184_v0 = vld [vmem:[%s4408_s9 + $0x190] sm:$0xff] }
 0x166   :  { %1034 = vmatprep.subr.mxu0 %v901_v3  ;;  %1105 = vmatprep.subr.mxu1 %v965_v4  ;;  %v1179_v3 = vld [vmem:[%s4408_s9 + $0x168] sm:$0xff]  ;;  %v1181_v4 = vld [vmem:[%s4408_s9 + $0x178] sm:$0xff] }
 0x167   :  { %1035 = vmatpush2.msra.mxu0 %v900_v6  ;;  %1106 = vmatpush2.msra.mxu1 %v964_v7  ;;  %v1178_v6 = vld [vmem:[%s4408_s9 + $0x160] sm:$0xff]  ;;  %v1180_v7 = vld [vmem:[%s4408_s9 + $0x170] sm:$0xff] }
 0x168   :  { %1036 = vmatprep.subr.mxu0 %v899_v8  ;;  %1107 = vmatprep.subr.mxu1 %v963_v9  ;;  %v1175_v8 = vld [vmem:[%s4408_s9 + $0x148] sm:$0xff]  ;;  %v1177_v9 = vld [vmem:[%s4408_s9 + $0x158] sm:$0xff] }
 0x169   :  { %1037 = vmatpush2.msra.mxu0 %v898_v10  ;;  %1108 = vmatpush2.msra.mxu1 %v962_v11  ;;  %v1174_v10 = vld [vmem:[%s4408_s9 + $0x140] sm:$0xff]  ;;  %v1176_v11 = vld [vmem:[%s4408_s9 + $0x150] sm:$0xff] }
 0x16a   :  { %1038 = vmatprep.subr.mxu0 %v897_v12  ;;  %1109 = vmatprep.subr.mxu1 %v961_v13  ;;  %v1171_v12 = vld [vmem:[%s4408_s9 + $0x128] sm:$0xff]  ;;  %v1173_v13 = vld [vmem:[%s4408_s9 + $0x138] sm:$0xff] }
 0x16b   :  { %1039 = vmatpush2.msra.mxu0 %v896_v14  ;;  %1110 = vmatpush2.msra.mxu1 %v960_v63  ;;  %v1170_v14 = vld [vmem:[%s4408_s9 + $0x120] sm:$0xff]  ;;  %v1172_v63 = vld [vmem:[%s4408_s9 + $0x130] sm:$0xff] }
 0x16c   :  { %1040 = vmatprep.subr.mxu0 %v895_v1  ;;  %1111 = vmatprep.subr.mxu1 %v959_v2  ;;  %v1167_v1 = vld [vmem:[%s4408_s9 + $0x108] sm:$0xff]  ;;  %v1169_v2 = vld [vmem:[%s4408_s9 + $0x118] sm:$0xff] }
 0x16d   :  { %1041 = vmatpush2.msra.mxu0 %v894_v5  ;;  %1112 = vmatpush2.msra.mxu1 %v958_v15  ;;  %v1166_v5 = vld [vmem:[%s4408_s9 + $0x100] sm:$0xff]  ;;  %v1168_v15 = vld [vmem:[%s4408_s9 + $0x110] sm:$0xff] }
 0x16e   :  { %1042 = vmatprep.subr.mxu0 %v893_v16  ;;  %1113 = vmatprep.subr.mxu1 %v957_v17  ;;  %v1163_v16 = vld [vmem:[%s4408_s9 + $0xe8] sm:$0xff]  ;;  %v1165_v17 = vld [vmem:[%s4408_s9 + $0xf8] sm:$0xff] }
 0x16f   :  { %1043 = vmatpush2.msra.mxu0 %v892_v18  ;;  %1114 = vmatpush2.msra.mxu1 %v956_v19  ;;  %v1162_v18 = vld [vmem:[%s4408_s9 + $0xe0] sm:$0xff]  ;;  %v1164_v19 = vld [vmem:[%s4408_s9 + $0xf0] sm:$0xff] }
 0x170   :  { %1044 = vmatprep.subr.mxu0 %v891_v20  ;;  %1115 = vmatprep.subr.mxu1 %v955_v24  ;;  %v1159_v20 = vld [vmem:[%s4408_s9 + $0xc8] sm:$0xff]  ;;  %v1161_v24 = vld [vmem:[%s4408_s9 + $0xd8] sm:$0xff] }
 0x171   :  { %1045 = vmatpush2.msra.mxu0 %v890_v26  ;;  %1116 = vmatpush2.msra.mxu1 %v954_v27  ;;  %v1158_v26 = vld [vmem:[%s4408_s9 + $0xc0] sm:$0xff]  ;;  %v1160_v27 = vld [vmem:[%s4408_s9 + $0xd0] sm:$0xff] }
 0x172   :  { %1046 = vmatprep.subr.mxu0 %v889_v28  ;;  %1117 = vmatprep.subr.mxu1 %v953_v29  ;;  %v1155_v28 = vld [vmem:[%s4408_s9 + $0xa8] sm:$0xff]  ;;  %v1157_v29 = vld [vmem:[%s4408_s9 + $0xb8] sm:$0xff] }
 0x173   :  { %1047 = vmatpush2.msra.mxu0 %v888_v30  ;;  %1118 = vmatpush2.msra.mxu1 %v952_v31  ;;  %v1154_v30 = vld [vmem:[%s4408_s9 + $0xa0] sm:$0xff]  ;;  %v1156_v31 = vld [vmem:[%s4408_s9 + $0xb0] sm:$0xff] }
 0x174   :  { %1048 = vmatprep.subr.mxu0 %v887_v32  ;;  %1119 = vmatprep.subr.mxu1 %v951_v33  ;;  %v1151_v32 = vld [vmem:[%s4408_s9 + $0x88] sm:$0xff]  ;;  %v1153_v33 = vld [vmem:[%s4408_s9 + $0x98] sm:$0xff] }
 0x175   :  { %1049 = vmatpush2.msra.mxu0 %v886_v34  ;;  %1120 = vmatpush2.msra.mxu1 %v950_v35  ;;  %v1150_v34 = vld [vmem:[%s4408_s9 + $0x80] sm:$0xff]  ;;  %v1152_v35 = vld [vmem:[%s4408_s9 + $0x90] sm:$0xff] }
 0x176   :  { %1050 = vmatprep.subr.mxu0 %v885_v36  ;;  %1121 = vmatprep.subr.mxu1 %v949_v37  ;;  %v1147_v36 = vld [vmem:[%s4408_s9 + $0x68] sm:$0xff]  ;;  %v1149_v37 = vld [vmem:[%s4408_s9 + $0x78] sm:$0xff] }
 0x177   :  { %1051 = vmatpush2.msra.mxu0 %v884_v38  ;;  %1122 = vmatpush2.msra.mxu1 %v948_v39  ;;  %v1146_v38 = vld [vmem:[%s4408_s9 + $0x60] sm:$0xff]  ;;  %v1148_v39 = vld [vmem:[%s4408_s9 + $0x70] sm:$0xff] }
 0x178   :  { %1052 = vmatprep.subr.mxu0 %v883_v40  ;;  %1123 = vmatprep.subr.mxu1 %v947_v41  ;;  %v1143_v40 = vld [vmem:[%s4408_s9 + $0x48] sm:$0xff]  ;;  %v1145_v41 = vld [vmem:[%s4408_s9 + $0x58] sm:$0xff] }
 0x179   :  { %1053 = vmatpush2.msra.mxu0 %v882_v42  ;;  %1054 = vmatprep.mubr.f32.mxu0 %v2122_v44  ;;  %v1142_v42 = vld [vmem:[%s4408_s9 + $0x40] sm:$0xff]  ;;  %v1139_v44 = vld [vmem:[%s4408_s9 + $0x28] sm:$0xff] }
 0x17a   :  { %1124 = vmatpush2.msra.mxu1 %v946_v43  ;;  %1125 = vmatprep.mubr.f32.mxu1 %v2123_v45  ;;  %v1144_v43 = vld [vmem:[%s4408_s9 + $0x50] sm:$0xff]  ;;  %v1141_v45 = vld [vmem:[%s4408_s9 + $0x38] sm:$0xff] }
 0x17b   :  { %1055 = vmatmul.mubr.f32.vlgmr.msra.gmra.mxu0 %v2124_v46  ;;  %1126 = vmatmul.mubr.f32.vlgmr.msra.gmra.mxu1 %v2125_v47  ;;  %v1138_v46 = vld [vmem:[%s4408_s9 + $0x20] sm:$0xff]  ;;  %v1140_v47 = vld [vmem:[%s4408_s9 + $0x30] sm:$0xff] }
 0x17c   :  { %1284 = vmatprep.subr.mxu0 %v1195_v48  ;;  %1355 = vmatprep.subr.mxu1 %v1197_v49  ;;  %v1135_v48 = vld [vmem:[%s4408_s9 + $0x8] sm:$0xff]  ;;  %v1137_v49 = vld [vmem:[%s4408_s9 + $0x18] sm:$0xff] }
 0x17d   :  { %1285 = vmatpush1.msra.mxu0 %v1194_v50  ;;  %1356 = vmatpush1.msra.mxu1 %v1196_v51  ;;  %v1134_v50 = vld [vmem:[%s4408_s9] sm:$0xff]  ;;  %v1136_v51 = vld [vmem:[%s4408_s9 + $0x10] sm:$0xff] }
 0x17e   :  { %1286 = vmatprep.subr.mxu0 %v1191_v52  ;;  %1357 = vmatprep.subr.mxu1 %v1193_v53  ;;  %v1259_v52 = vld [vmem:[%s4408_s9 + $0x3e8] sm:$0xff]  ;;  %v1261_v53 = vld [vmem:[%s4408_s9 + $0x3f8] sm:$0xff] }
 0x17f   :  { %1287 = vmatpush1.msra.mxu0 %v1190_v54  ;;  %1358 = vmatpush1.msra.mxu1 %v1192_v55  ;;  %v1258_v54 = vld [vmem:[%s4408_s9 + $0x3e0] sm:$0xff]  ;;  %v1260_v55 = vld [vmem:[%s4408_s9 + $0x3f0] sm:$0xff] }
 0x180   :  { %1288 = vmatprep.subr.mxu0 %v1187_v56  ;;  %1359 = vmatprep.subr.mxu1 %v1189_v57  ;;  %v1255_v56 = vld [vmem:[%s4408_s9 + $0x3c8] sm:$0xff]  ;;  %v1257_v57 = vld [vmem:[%s4408_s9 + $0x3d8] sm:$0xff] }
 0x181   :  { %1289 = vmatpush1.msra.mxu0 %v1186_v58  ;;  %1360 = vmatpush1.msra.mxu1 %v1188_v59  ;;  %v1254_v58 = vld [vmem:[%s4408_s9 + $0x3c0] sm:$0xff]  ;;  %v1256_v59 = vld [vmem:[%s4408_s9 + $0x3d0] sm:$0xff] }
 0x182   :  { %1290 = vmatprep.subr.mxu0 %v1183_v60  ;;  %1361 = vmatprep.subr.mxu1 %v1185_v61  ;;  %v1251_v60 = vld [vmem:[%s4408_s9 + $0x3a8] sm:$0xff]  ;;  %v1253_v61 = vld [vmem:[%s4408_s9 + $0x3b8] sm:$0xff] }
 0x183   :  { %1291 = vmatpush1.msra.mxu0 %v1182_v62  ;;  %1362 = vmatpush1.msra.mxu1 %v1184_v0  ;;  %v1250_v62 = vld [vmem:[%s4408_s9 + $0x3a0] sm:$0xff]  ;;  %v1252_v0 = vld [vmem:[%s4408_s9 + $0x3b0] sm:$0xff] }
 0x184   :  { %1292 = vmatprep.subr.mxu0 %v1179_v3  ;;  %1363 = vmatprep.subr.mxu1 %v1181_v4  ;;  %v1247_v3 = vld [vmem:[%s4408_s9 + $0x388] sm:$0xff]  ;;  %v1249_v4 = vld [vmem:[%s4408_s9 + $0x398] sm:$0xff] }
 0x185   :  { %1293 = vmatpush1.msra.mxu0 %v1178_v6  ;;  %1364 = vmatpush1.msra.mxu1 %v1180_v7  ;;  %v1246_v6 = vld [vmem:[%s4408_s9 + $0x380] sm:$0xff]  ;;  %v1248_v7 = vld [vmem:[%s4408_s9 + $0x390] sm:$0xff] }
 0x186   :  { %1294 = vmatprep.subr.mxu0 %v1175_v8  ;;  %1365 = vmatprep.subr.mxu1 %v1177_v9  ;;  %v1243_v8 = vld [vmem:[%s4408_s9 + $0x368] sm:$0xff]  ;;  %v1245_v9 = vld [vmem:[%s4408_s9 + $0x378] sm:$0xff] }
 0x187   :  { %1295 = vmatpush1.msra.mxu0 %v1174_v10  ;;  %1366 = vmatpush1.msra.mxu1 %v1176_v11  ;;  %v1242_v10 = vld [vmem:[%s4408_s9 + $0x360] sm:$0xff]  ;;  %v1244_v11 = vld [vmem:[%s4408_s9 + $0x370] sm:$0xff] }
 0x188   :  { %1296 = vmatprep.subr.mxu0 %v1171_v12  ;;  %1367 = vmatprep.subr.mxu1 %v1173_v13  ;;  %v1239_v12 = vld [vmem:[%s4408_s9 + $0x348] sm:$0xff]  ;;  %v1241_v13 = vld [vmem:[%s4408_s9 + $0x358] sm:$0xff] }
 0x189   :  { %1297 = vmatpush1.msra.mxu0 %v1170_v14  ;;  %1368 = vmatpush1.msra.mxu1 %v1172_v63  ;;  %v1238_v14 = vld [vmem:[%s4408_s9 + $0x340] sm:$0xff]  ;;  %v1240_v63 = vld [vmem:[%s4408_s9 + $0x350] sm:$0xff] }
 0x18a   :  { %1298 = vmatprep.subr.mxu0 %v1167_v1  ;;  %1369 = vmatprep.subr.mxu1 %v1169_v2  ;;  %v1235_v1 = vld [vmem:[%s4408_s9 + $0x328] sm:$0xff]  ;;  %v1237_v2 = vld [vmem:[%s4408_s9 + $0x338] sm:$0xff] }
 0x18b   :  { %1299 = vmatpush1.msra.mxu0 %v1166_v5  ;;  %1370 = vmatpush1.msra.mxu1 %v1168_v15  ;;  %v1234_v5 = vld [vmem:[%s4408_s9 + $0x320] sm:$0xff]  ;;  %v1236_v15 = vld [vmem:[%s4408_s9 + $0x330] sm:$0xff] }
 0x18c   :  { %1300 = vmatprep.subr.mxu0 %v1163_v16  ;;  %1371 = vmatprep.subr.mxu1 %v1165_v17  ;;  %v1231_v16 = vld [vmem:[%s4408_s9 + $0x308] sm:$0xff]  ;;  %v1233_v17 = vld [vmem:[%s4408_s9 + $0x318] sm:$0xff] }
 0x18d   :  { %1301 = vmatpush1.msra.mxu0 %v1162_v18  ;;  %1372 = vmatpush1.msra.mxu1 %v1164_v19  ;;  %v1230_v18 = vld [vmem:[%s4408_s9 + $0x300] sm:$0xff]  ;;  %v1232_v19 = vld [vmem:[%s4408_s9 + $0x310] sm:$0xff] }
 0x18e   :  { %1302 = vmatprep.subr.mxu0 %v1159_v20  ;;  %1373 = vmatprep.subr.mxu1 %v1161_v24  ;;  %v1227_v20 = vld [vmem:[%s4408_s9 + $0x2e8] sm:$0xff]  ;;  %v1229_v24 = vld [vmem:[%s4408_s9 + $0x2f8] sm:$0xff] }
 0x18f   :  { %1303 = vmatpush1.msra.mxu0 %v1158_v26  ;;  %1374 = vmatpush1.msra.mxu1 %v1160_v27  ;;  %v1226_v26 = vld [vmem:[%s4408_s9 + $0x2e0] sm:$0xff]  ;;  %v1228_v27 = vld [vmem:[%s4408_s9 + $0x2f0] sm:$0xff] }
 0x190   :  { %1304 = vmatprep.subr.mxu0 %v1155_v28  ;;  %1375 = vmatprep.subr.mxu1 %v1157_v29  ;;  %v1223_v28 = vld [vmem:[%s4408_s9 + $0x2c8] sm:$0xff]  ;;  %v1225_v29 = vld [vmem:[%s4408_s9 + $0x2d8] sm:$0xff] }
 0x191   :  { %1305 = vmatpush1.msra.mxu0 %v1154_v30  ;;  %1376 = vmatpush1.msra.mxu1 %v1156_v31  ;;  %v1222_v30 = vld [vmem:[%s4408_s9 + $0x2c0] sm:$0xff]  ;;  %v1224_v31 = vld [vmem:[%s4408_s9 + $0x2d0] sm:$0xff] }
 0x192   :  { %1306 = vmatprep.subr.mxu0 %v1151_v32  ;;  %1377 = vmatprep.subr.mxu1 %v1153_v33  ;;  %v1219_v32 = vld [vmem:[%s4408_s9 + $0x2a8] sm:$0xff]  ;;  %v1221_v33 = vld [vmem:[%s4408_s9 + $0x2b8] sm:$0xff] }
 0x193   :  { %1307 = vmatpush1.msra.mxu0 %v1150_v34  ;;  %1378 = vmatpush1.msra.mxu1 %v1152_v35  ;;  %v1218_v34 = vld [vmem:[%s4408_s9 + $0x2a0] sm:$0xff]  ;;  %v1220_v35 = vld [vmem:[%s4408_s9 + $0x2b0] sm:$0xff] }
 0x194   :  { %1308 = vmatprep.subr.mxu0 %v1147_v36  ;;  %1379 = vmatprep.subr.mxu1 %v1149_v37  ;;  %v1215_v36 = vld [vmem:[%s4408_s9 + $0x288] sm:$0xff]  ;;  %v1217_v37 = vld [vmem:[%s4408_s9 + $0x298] sm:$0xff] }
 0x195   :  { %1309 = vmatpush1.msra.mxu0 %v1146_v38  ;;  %1380 = vmatpush1.msra.mxu1 %v1148_v39  ;;  %v1214_v38 = vld [vmem:[%s4408_s9 + $0x280] sm:$0xff]  ;;  %v1216_v39 = vld [vmem:[%s4408_s9 + $0x290] sm:$0xff] }
 0x196   :  { %1310 = vmatprep.subr.mxu0 %v1143_v40  ;;  %1381 = vmatprep.subr.mxu1 %v1145_v41  ;;  %v1211_v40 = vld [vmem:[%s4408_s9 + $0x268] sm:$0xff]  ;;  %v1213_v41 = vld [vmem:[%s4408_s9 + $0x278] sm:$0xff] }
 0x197   :  { %1311 = vmatpush1.msra.mxu0 %v1142_v42  ;;  %1382 = vmatpush1.msra.mxu1 %v1144_v43  ;;  %v1210_v42 = vld [vmem:[%s4408_s9 + $0x260] sm:$0xff]  ;;  %v1212_v43 = vld [vmem:[%s4408_s9 + $0x270] sm:$0xff] }
 0x198   :  { %1312 = vmatprep.subr.mxu0 %v1139_v44  ;;  %1383 = vmatprep.subr.mxu1 %v1141_v45  ;;  %v1207_v44 = vld [vmem:[%s4408_s9 + $0x248] sm:$0xff]  ;;  %v1209_v45 = vld [vmem:[%s4408_s9 + $0x258] sm:$0xff] }
 0x199   :  { %1313 = vmatpush1.msra.mxu0 %v1138_v46  ;;  %1384 = vmatpush1.msra.mxu1 %v1140_v47  ;;  %v1206_v46 = vld [vmem:[%s4408_s9 + $0x240] sm:$0xff]  ;;  %v1208_v47 = vld [vmem:[%s4408_s9 + $0x250] sm:$0xff] }
 0x19a   :  { %1314 = vmatprep.subr.mxu0 %v1135_v48  ;;  %1385 = vmatprep.subr.mxu1 %v1137_v49  ;;  %v1203_v48 = vld [vmem:[%s4408_s9 + $0x228] sm:$0xff]  ;;  %v1205_v49 = vld [vmem:[%s4408_s9 + $0x238] sm:$0xff] }
 0x19b   :  { %1315 = vmatpush1.msra.mxu0 %v1134_v50  ;;  %1386 = vmatpush1.msra.mxu1 %v1136_v51  ;;  %v1202_v50 = vld [vmem:[%s4408_s9 + $0x220] sm:$0xff]  ;;  %v1204_v51 = vld [vmem:[%s4408_s9 + $0x230] sm:$0xff] }
 0x19c   :  { %1316 = vmatprep.subr.mxu0 %v1259_v52  ;;  %1387 = vmatprep.subr.mxu1 %v1261_v53  ;;  %v1199_v52 = vld [vmem:[%s4408_s9 + $0x208] sm:$0xff]  ;;  %v1201_v53 = vld [vmem:[%s4408_s9 + $0x218] sm:$0xff] }
 0x19d   :  { %1317 = vmatpush2.msra.mxu0 %v1258_v54  ;;  %1388 = vmatpush2.msra.mxu1 %v1260_v55  ;;  %v1198_v54 = vld [vmem:[%s4408_s9 + $0x200] sm:$0xff]  ;;  %v1200_v55 = vld [vmem:[%s4408_s9 + $0x210] sm:$0xff] }
 0x19e   :  { %1318 = vmatprep.subr.mxu0 %v1255_v56  ;;  %1389 = vmatprep.subr.mxu1 %v1257_v57  ;;  %v4099_v56 = vld [vmem:[%s4422_s27 + $0x8] sm:$0xff]  ;;  %v4104_v57 = vld [vmem:[%s4422_s27 + $0x18] sm:$0xff] }
 0x19f   :  { %1319 = vmatpush2.msra.mxu0 %v1254_v58  ;;  %1390 = vmatpush2.msra.mxu1 %v1256_v59  ;;  %v4111_v58 = vld [vmem:[%s4422_s27] sm:$0xff]  ;;  %v4116_v59 = vld [vmem:[%s4422_s27 + $0x10] sm:$0xff] }
 0x1a0   :  { %1320 = vmatprep.subr.mxu0 %v1251_v60  ;;  %1391 = vmatprep.subr.mxu1 %v1253_v61  ;;  %v1666_v60 = vmul.f32 %v4111_v58, %v4111_v58  ;;  %v1667_v61 = vmul.f32 %v4099_v56, %v4099_v56 }
 0x1a1   :  { %1321 = vmatpush2.msra.mxu0 %v1250_v62  ;;  %1392 = vmatpush2.msra.mxu1 %v1252_v0  ;;  %v1668_v62 = vmul.f32 %v4116_v59, %v4116_v59  ;;  %v1669_v0 = vmul.f32 %v4104_v57, %v4104_v57 }
 0x1a2   :  { %1322 = vmatprep.subr.mxu0 %v1247_v3  ;;  %1393 = vmatprep.subr.mxu1 %v1249_v4  ;;  %v1670_v3 = vadd.f32 %v1667_v61, %v1666_v60  ;;  %v1737_v60 = vld [vmem:[%s4410_s11 + $0x1c0] sm:$0xff] }
 0x1a3   :  { %1323 = vmatpush2.msra.mxu0 %v1246_v6  ;;  %1394 = vmatpush2.msra.mxu1 %v1248_v7  ;;  %v1689_v61 = vld [vmem:[%s4410_s11 + $0x40] sm:$0xff] }
 0x1a4   :  { %1324 = vmatprep.subr.mxu0 %v1243_v8  ;;  %1395 = vmatprep.subr.mxu1 %v1245_v9  ;;  %v1671_v4 = vadd.f32 %v1670_v3, %v1668_v62  ;;  %v978_v9 = vld [vmem:[%s4407_s8] sm:$0x3]  ;;  %v1736_v3 = vld [vmem:[%s4410_s11 + $0x1b8] sm:$0xff] }
 0x1a5   :  { %1325 = vmatpush2.msra.mxu0 %v1242_v10  ;;  %1396 = vmatpush2.msra.mxu1 %v1244_v11  ;;  %v983_v10 = vrot.slane %v978_v9, %v3312_v23  ;;  %v1721_v62 = vld [vmem:[%s4410_s11 + $0x140] sm:$0xff] }
 0x1a6   :  { %1326 = vmatprep.subr.mxu0 %v1239_v12  ;;  %1397 = vmatprep.subr.mxu1 %v1241_v13  ;;  %v1672_v6 = vadd.f32 %v1671_v4, %v1669_v0  ;;  %v987_v13 = vrot.slane %v978_v9, %v3318_v25  ;;  %v1704_v0 = vld [vmem:[%s4410_s11 + $0xb8] sm:$0xff]  ;;  %v1703_v9 = vld [vmem:[%s4410_s11 + $0xb0] sm:$0xff] }
 0x1a7   :  { %1327 = vmatpush2.msra.mxu0 %v1238_v14  ;;  %1398 = vmatpush2.msra.mxu1 %v1240_v63  ;;  %v1688_v4 = vld [vmem:[%s4410_s11 + $0x38] sm:$0xff] }
 0x1a8   :  { %1328 = vmatprep.subr.mxu0 %v1235_v1  ;;  %1399 = vmatprep.subr.mxu1 %v1237_v2 }
 0x1a9   :  { %1329 = vmatpush2.msra.mxu0 %v1234_v5  ;;  %1400 = vmatpush2.msra.mxu1 %v1236_v15 }
 0x1aa   :  { %1330 = vmatprep.subr.mxu0 %v1231_v16  ;;  %1401 = vmatprep.subr.mxu1 %v1233_v17  ;;  %v4140_v17 = vand.u32 127, %v404_v21  ;;  %v2213_v21 = vmov 0.0  }
 0x1ab   :  { %1331 = vmatpush2.msra.mxu0 %v1230_v18  ;;  %1402 = vmatpush2.msra.mxu1 %v1232_v19  ;;  %v1435_v19 = vpop.permute.xlu0 %1434 }
 0x1ac   :  { %1332 = vmatprep.subr.mxu0 %v1227_v20  ;;  %1403 = vmatprep.subr.mxu1 %v1229_v24  ;;  %vm1436_vm0 = vcmp.eq.s32.totalorder %v4140_v17, %v1435_v19  ;;  %v1733_v19 = vld [vmem:[%s4410_s11 + $0x1a0] sm:$0xff] }
 0x1ad   :  { %1333 = vmatpush2.msra.mxu0 %v1226_v26  ;;  %1404 = vmatpush2.msra.mxu1 %v1228_v27  ;;  %v1712_v26 = vld [vmem:[%s4410_s11 + $0xf8] sm:$0xff] }
 0x1ae   :  { %1334 = vmatprep.subr.mxu0 %v1223_v28  ;;  %1405 = vmatprep.subr.mxu1 %v1225_v29  ;;  %v1744_v27 = vld [vmem:[%s4410_s11 + $0x1f8] sm:$0xff]  ;;  %v1952_v28 = vsel %vm1436_vm0, 1.0, %v2213_v21 }
 0x1af   :  { %1335 = vmatpush2.msra.mxu0 %v1222_v30  ;;  %1406 = vmatpush2.msra.mxu1 %v1224_v31  ;;  %v1696_v29 = vld [vmem:[%s4410_s11 + $0x78] sm:$0xff]  ;;  %v1711_v31 = vld [vmem:[%s4410_s11 + $0xf0] sm:$0xff] }
 0x1b0   :  { %1336 = vmatprep.subr.mxu0 %v1219_v32  ;;  %1407 = vmatprep.subr.mxu1 %v1221_v33  ;;  %v1728_v30 = vld [vmem:[%s4410_s11 + $0x178] sm:$0xff]  ;;  %v1743_v32 = vld [vmem:[%s4410_s11 + $0x1f0] sm:$0xff] }
 0x1b1   :  { %1337 = vmatpush2.msra.mxu0 %v1218_v34  ;;  %1408 = vmatpush2.msra.mxu1 %v1220_v35  ;;  %v1695_v33 = vld [vmem:[%s4410_s11 + $0x70] sm:$0xff]  ;;  %v1710_v35 = vld [vmem:[%s4410_s11 + $0xe8] sm:$0xff] }
 0x1b2   :  { %1338 = vmatprep.subr.mxu0 %v1215_v36  ;;  %1409 = vmatprep.subr.mxu1 %v1217_v37  ;;  %v1727_v34 = vld [vmem:[%s4410_s11 + $0x170] sm:$0xff]  ;;  %v1742_v36 = vld [vmem:[%s4410_s11 + $0x1e8] sm:$0xff] }
 0x1b3   :  { %1339 = vmatpush2.msra.mxu0 %v1214_v38  ;;  %1410 = vmatpush2.msra.mxu1 %v1216_v39  ;;  %v1694_v37 = vld [vmem:[%s4410_s11 + $0x68] sm:$0xff]  ;;  %v1709_v39 = vld [vmem:[%s4410_s11 + $0xe0] sm:$0xff] }
 0x1b4   :  { %1340 = vmatprep.subr.mxu0 %v1211_v40  ;;  %1411 = vmatprep.subr.mxu1 %v1213_v41  ;;  %v1726_v38 = vld [vmem:[%s4410_s11 + $0x168] sm:$0xff]  ;;  %v1741_v40 = vld [vmem:[%s4410_s11 + $0x1e0] sm:$0xff] }
 0x1b5   :  { %1341 = vmatpush2.msra.mxu0 %v1210_v42  ;;  %1412 = vmatpush2.msra.mxu1 %v1212_v43  ;;  %v1693_v41 = vld [vmem:[%s4410_s11 + $0x60] sm:$0xff]  ;;  %v1708_v43 = vld [vmem:[%s4410_s11 + $0xd8] sm:$0xff] }
 0x1b6   :  { %1342 = vmatprep.subr.mxu0 %v1207_v44  ;;  %1413 = vmatprep.subr.mxu1 %v1209_v45  ;;  %v1725_v42 = vld [vmem:[%s4410_s11 + $0x160] sm:$0xff]  ;;  %v1740_v44 = vld [vmem:[%s4410_s11 + $0x1d8] sm:$0xff] }
 0x1b7   :  { %1343 = vmatpush2.msra.mxu0 %v1206_v46  ;;  %1414 = vmatpush2.msra.mxu1 %v1208_v47  ;;  %v1692_v45 = vld [vmem:[%s4410_s11 + $0x58] sm:$0xff]  ;;  %v1707_v47 = vld [vmem:[%s4410_s11 + $0xd0] sm:$0xff] }
 0x1b8   :  { %1344 = vmatprep.subr.mxu0 %v1203_v48  ;;  %1415 = vmatprep.subr.mxu1 %v1205_v49  ;;  %v1724_v46 = vld [vmem:[%s4410_s11 + $0x158] sm:$0xff]  ;;  %v1739_v48 = vld [vmem:[%s4410_s11 + $0x1d0] sm:$0xff] }
 0x1b9   :  { %1345 = vmatpush2.msra.mxu0 %v1202_v50  ;;  %1416 = vmatpush2.msra.mxu1 %v1204_v51  ;;  %v1691_v49 = vld [vmem:[%s4410_s11 + $0x50] sm:$0xff]  ;;  %v1738_v51 = vld [vmem:[%s4410_s11 + $0x1c8] sm:$0xff] }
 0x1ba   :  { %1346 = vmatprep.subr.mxu0 %v1199_v52  ;;  %1417 = vmatprep.subr.mxu1 %v1201_v53  ;;  %v1723_v50 = vld [vmem:[%s4410_s11 + $0x150] sm:$0xff]  ;;  %v1706_v52 = vld [vmem:[%s4410_s11 + $0xc8] sm:$0xff] }
 0x1bb   :  { %1347 = vmatpush2.msra.mxu0 %v1198_v54  ;;  %1418 = vmatpush2.msra.mxu1 %v1200_v55  ;;  %v1690_v53 = vld [vmem:[%s4410_s11 + $0x48] sm:$0xff]  ;;  %v1705_v55 = vld [vmem:[%s4410_s11 + $0xc0] sm:$0xff] }
 0x1bc   :  { %1473 = vmatprep.subr.mxu0 %v4099_v56  ;;  %1544 = vmatprep.subr.mxu1 %v4104_v57  ;;  %v1722_v54 = vld [vmem:[%s4410_s11 + $0x148] sm:$0xff] }
 0x1bd   :  { %1673 = vadd.xlane.f32.xlu0 %v1672_v6  ;;  %v1720_v6 = vld [vmem:[%s4410_s11 + $0x138] sm:$0xff] }
 0x1fa   :  { %v4126_v7 = vpop.f32.mrf.mxu0  ;;  %v4128_v8 = vpop.f32.mrf.mxu1 }
 0x1fc   :  { %v4134_v11 = vpop.f32.mrf.mxu0  ;;  %v4136_v12 = vpop.f32.mrf.mxu1 }
 0x23b   :  { %v1056_v14 = vpop.f32.mrf.mxu0  ;;  %v1127_v63 = vpop.f32.mrf.mxu1 }
 0x23c   :  { %v1057_v1 = vadd.f32 %v1056_v14, %v983_v10  ;;  %v1735_v10 = vld [vmem:[%s4410_s11 + $0x1b0] sm:$0xff] }
 0x23d   :  { %v1058_v2 = vpop.f32.mrf.mxu0  ;;  %v1129_v16 = vpop.f32.mrf.mxu1  ;;  %v1719_v14 = vld [vmem:[%s4410_s11 + $0x130] sm:$0xff] }
 0x23e   :  { %v1059_v5 = vadd.f32 %v1058_v2, %v987_v13  ;;  %v1128_v15 = vadd.f32 %v1127_v63, %v1057_v1  ;;  %v1687_v13 = vld [vmem:[%s4410_s11 + $0x30] sm:$0xff]  ;;  %v1702_v1 = vld [vmem:[%s4410_s11 + $0xa8] sm:$0xff] }
 0x23f   :  { %v1734_v2 = vld [vmem:[%s4410_s11 + $0x1a8] sm:$0xff] }
 0x240   :  { %v1130_v18 = vadd.f32 %v1129_v16, %v1059_v5  ;;  %v1132_v24 = vmax.f32 %v1128_v15, 0.0  ;;  %v1686_v15 = vld [vmem:[%s4410_s11 + $0x28] sm:$0xff] }
 0x241   :  { %v1718_v16 = vld [vmem:[%s4410_s11 + $0x128] sm:$0xff] }
 0x242   :  { %v1133_v20 = vmax.f32 %v1130_v18, 0.0  ;;  %v1701_v18 = vld [vmem:[%s4410_s11 + $0xa0] sm:$0xff] }
 0x244   :  { %1348 = vmatprep.mubr.f32.mxu0 %v1133_v20  ;;  %1419 = vmatprep.mubr.f32.mxu1 %v1133_v20  ;;  %v1685_v20 = vld [vmem:[%s4410_s11 + $0x20] sm:$0xff] }
 0x245   :  { %1349 = vmatmul.mubr.f32.vlgmr.msra.gmra.mxu0 %v1132_v24  ;;  %1420 = vmatmul.mubr.f32.vlgmr.msra.gmra.mxu1 %v1132_v24  ;;  %v1717_v24 = vld [vmem:[%s4410_s11 + $0x120] sm:$0xff] }
 0x246   :  { %1474 = vmatpush1.msra.mxu0 %v4111_v58  ;;  %1507 = vmatprep.mubr.f32.mxu0 %v2213_v21  ;;  %v1674_v63 = vpop.xlane.xlu0 %1673 }
 0x247   :  { %1545 = vmatpush1.msra.mxu1 %v4116_v59  ;;  %1578 = vmatprep.mubr.f32.mxu1 %v2213_v21  ;;  %v1675_v5 = vmax.f32 %v1674_v63, 1e-24 }
 0x248   :  { %2026 = vmatprep.subr.mxu0 %v1712_v26  ;;  %2061 = vmatprep.subr.mxu1 %v1744_v27  ;;  %v1700_v26 = vld [vmem:[%s4410_s11 + $0x98] sm:$0xff] }
 0x249   :  { %1953 = vmatmul.mubr.msk.f32.vlgmr.msra.gmra.mxu0 %vm1439_vm1, %v1952_v28  ;;  %1954 = vmatmul.mubr.msk.f32.vlgmr.msra.gmra.mxu1 %vm1439_vm1, %v1952_v28  ;;  %2104 = vrsqrt.f32 %v1675_v5  ;;  %v1732_v27 = vld [vmem:[%s4410_s11 + $0x198] sm:$0xff] }
 0x24a   :  { %2027 = vmatpush3.msra.mxu0 %v1696_v29  ;;  %2062 = vmatpush3.msra.mxu1 %v1728_v30  ;;  %v1684_v28 = vld [vmem:[%s4410_s11 + $0x18] sm:$0xff]  ;;  %v1699_v30 = vld [vmem:[%s4410_s11 + $0x90] sm:$0xff] }
 0x24b   :  { %2028 = vmatprep.subr.mxu0 %v1711_v31  ;;  %2063 = vmatprep.subr.mxu1 %v1743_v32  ;;  %v1716_v29 = vld [vmem:[%s4410_s11 + $0x118] sm:$0xff]  ;;  %v1731_v31 = vld [vmem:[%s4410_s11 + $0x190] sm:$0xff] }
 0x24c   :  { %2029 = vmatpush3.msra.mxu0 %v1695_v33  ;;  %2064 = vmatpush3.msra.mxu1 %v1727_v34  ;;  %v1683_v32 = vld [vmem:[%s4410_s11 + $0x10] sm:$0xff]  ;;  %v1698_v34 = vld [vmem:[%s4410_s11 + $0x88] sm:$0xff] }
 0x24d   :  { %2030 = vmatprep.subr.mxu0 %v1710_v35  ;;  %2065 = vmatprep.subr.mxu1 %v1742_v36  ;;  %v1715_v33 = vld [vmem:[%s4410_s11 + $0x110] sm:$0xff]  ;;  %v1730_v35 = vld [vmem:[%s4410_s11 + $0x188] sm:$0xff] }
 0x24e   :  { %2031 = vmatpush3.msra.mxu0 %v1694_v37  ;;  %2066 = vmatpush3.msra.mxu1 %v1726_v38  ;;  %v1682_v36 = vld [vmem:[%s4410_s11 + $0x8] sm:$0xff]  ;;  %v1697_v38 = vld [vmem:[%s4410_s11 + $0x80] sm:$0xff] }
 0x24f   :  { %2032 = vmatprep.subr.mxu0 %v1709_v39  ;;  %2067 = vmatprep.subr.mxu1 %v1741_v40  ;;  %v1714_v37 = vld [vmem:[%s4410_s11 + $0x108] sm:$0xff]  ;;  %v1729_v39 = vld [vmem:[%s4410_s11 + $0x180] sm:$0xff] }
 0x250   :  { %2033 = vmatpush3.msra.mxu0 %v1693_v41  ;;  %2068 = vmatpush3.msra.mxu1 %v1725_v42  ;;  %v1681_v40 = vld [vmem:[%s4410_s11] sm:$0xff] }
 0x251   :  { %2034 = vmatprep.subr.mxu0 %v1708_v43  ;;  %2069 = vmatprep.subr.mxu1 %v1740_v44  ;;  %v1713_v41 = vld [vmem:[%s4410_s11 + $0x100] sm:$0xff] }
 0x252   :  { %2035 = vmatpush3.msra.mxu0 %v1692_v45  ;;  %2070 = vmatpush3.msra.mxu1 %v1724_v46 }
 0x253   :  { %2036 = vmatprep.subr.mxu0 %v1707_v47  ;;  %2071 = vmatprep.subr.mxu1 %v1739_v48  ;;  %v1262_v47 = vld [vmem:[%s4409_s10] sm:$0xf]  ;;  %v698_v48 = vsub.s32 2, %v3309_v22 }
 0x254   :  { %2037 = vmatpush3.msra.mxu0 %v1691_v49  ;;  %2072 = vmatpush3.msra.mxu1 %v1723_v50  ;;  %v702_v49 = vsub.s32 3, %v3309_v22  ;;  %v1267_v50 = vrot.slane %v1262_v47, %v3312_v23  ;;  %v686_v22 = vld [vmem:[%s4405_s6] sm:$0xf] }
 0x255   :  { %2073 = vmatprep.subr.mxu1 %v1738_v51  ;;  %2038 = vmatprep.subr.mxu0 %v1706_v52  ;;  %v1275_v51 = vrot.slane %v1262_v47, %v698_v48  ;;  %v1271_v52 = vrot.slane %v1262_v47, %v3318_v25  ;;  %v699_v63 = vrot.slane %v686_v22, %v698_v48 }
 0x256   :  { %2039 = vmatpush3.msra.mxu0 %v1690_v53  ;;  %2074 = vmatpush3.msra.mxu1 %v1722_v54  ;;  %v2105_v42 = vpop.eup %2104  ;;  %v1279_v53 = vrot.slane %v1262_v47, %v702_v49 }
 0x257   :  { %2040 = vmatprep.subr.mxu0 %v1705_v55  ;;  %2075 = vmatprep.subr.mxu1 %v1737_v60  ;;  %v1678_v43 = vmul.f32 %v2105_v42, %v4099_v56  ;;  %v1680_v44 = vmul.f32 %v2105_v42, %v4104_v57  ;;  %v1677_v45 = vmul.f32 %v2105_v42, %v4111_v58 }
 0x258   :  { %2041 = vmatpush3.msra.mxu0 %v1689_v61  ;;  %2076 = vmatpush3.msra.mxu1 %v1721_v62  ;;  %v1679_v46 = vmul.f32 %v2105_v42, %v4116_v59 }
 0x259   :  { %2042 = vmatprep.subr.mxu0 %v1704_v0  ;;  %2077 = vmatprep.subr.mxu1 %v1736_v3 }
 0x25a   :  { %2043 = vmatpush3.msra.mxu0 %v1688_v4  ;;  %2078 = vmatpush3.msra.mxu1 %v1720_v6 }
 0x25b   :  { %2044 = vmatprep.subr.mxu0 %v1703_v9  ;;  %2079 = vmatprep.subr.mxu1 %v1735_v10  ;;  %v691_v10 = vrot.slane %v686_v22, %v3312_v23 }
 0x25c   :  { %2045 = vmatpush3.msra.mxu0 %v1687_v13  ;;  %2080 = vmatpush3.msra.mxu1 %v1719_v14 }
 0x25d   :  { %2046 = vmatprep.subr.mxu0 %v1702_v1  ;;  %2081 = vmatprep.subr.mxu1 %v1734_v2  ;;  %v695_v1 = vrot.slane %v686_v22, %v3318_v25  ;;  %v775_v23 = vadd.f32 %v4126_v7, %v691_v10 }
 0x25e   :  { %2047 = vmatpush3.msra.mxu0 %v1686_v15  ;;  %2082 = vmatpush3.msra.mxu1 %v1718_v16 }
 0x25f   :  { %2048 = vmatprep.subr.mxu0 %v1701_v18  ;;  %2083 = vmatprep.subr.mxu1 %v1733_v19  ;;  %v703_v18 = vrot.slane %v686_v22, %v702_v49  ;;  %v777_v25 = vadd.f32 %v4134_v11, %v695_v1 }
 0x260   :  { %2049 = vmatpush3.msra.mxu0 %v1685_v20  ;;  %2084 = vmatpush3.msra.mxu1 %v1717_v24 }
 0x261   :  { %2050 = vmatprep.subr.mxu0 %v1700_v26  ;;  %2085 = vmatprep.subr.mxu1 %v1732_v27 }
 0x262   :  { %2051 = vmatpush3.msra.mxu0 %v1684_v28  ;;  %2086 = vmatpush3.msra.mxu1 %v1716_v29  ;;  %v846_v28 = vadd.f32 %v4128_v8, %v699_v63 }
 0x263   :  { %2052 = vmatprep.subr.mxu0 %v1699_v30  ;;  %2087 = vmatprep.subr.mxu1 %v1731_v31  ;;  %v848_v30 = vadd.f32 %v4136_v12, %v703_v18 }
 0x264   :  { %2053 = vmatpush3.msra.mxu0 %v1683_v32  ;;  %2088 = vmatpush3.msra.mxu1 %v1715_v33  ;;  %v1597_v32 = vsub.f32 %v775_v23, %v4111_v58  ;;  %v1599_v7 = vsub.f32 %v846_v28, %v4116_v59 }
 0x265   :  { %2054 = vmatprep.subr.mxu0 %v1698_v34  ;;  %2089 = vmatprep.subr.mxu1 %v1730_v35  ;;  %v1598_v35 = vsub.f32 %v777_v25, %v4099_v56  ;;  %v1600_v8 = vsub.f32 %v848_v30, %v4104_v57 }
 0x266   :  { %2055 = vmatpush3.msra.mxu0 %v1682_v36  ;;  %2090 = vmatpush3.msra.mxu1 %v1714_v37 }
 0x267   :  { %2056 = vmatprep.subr.mxu0 %v1697_v38  ;;  %2091 = vmatprep.subr.mxu1 %v1729_v39  ;;  %v1601_v38 = vmul.f32 %v1597_v32, %v1597_v32 }
 0x268   :  { %2057 = vmatpush3.msra.mxu0 %v1681_v40  ;;  %2092 = vmatpush3.msra.mxu1 %v1713_v41  ;;  %v1603_v40 = vmul.f32 %v1599_v7, %v1599_v7  ;;  %v1602_v41 = vmul.f32 %v1598_v35, %v1598_v35 }
 0x269   :  { %1809 = vmatprep.mubr.f32.mxu0 %v1678_v43  ;;  %1879 = vmatprep.mubr.f32.mxu1 %v1680_v44  ;;  %v1604_v43 = vmul.f32 %v1600_v8, %v1600_v8  ;;  %v1605_v58 = vsub.f32 0.0, %v1601_v38 }
 0x26a   :  { %1810 = vmatmul.mubr.f32.vlgmr.msra.gmra.mxu0 %v1677_v45  ;;  %1880 = vmatmul.mubr.f32.vlgmr.msra.gmra.mxu1 %v1679_v46  ;;  %v1607_v47 = vsub.f32 0.0, %v1603_v40  ;;  %v1606_v59 = vsub.f32 0.0, %v1602_v41 }
 0x305   :  { %v1350_v54 = vpop.f32.mrf.mxu0  ;;  %v1421_v55 = vpop.f32.mrf.mxu1 }
 0x306   :  { %v1351_v60 = vadd.f32 %v1350_v54, %v1267_v50  ;;  %v1422_v61 = vadd.f32 %v1421_v55, %v1275_v51 }
 0x307   :  { %v1352_v62 = vpop.f32.mrf.mxu0  ;;  %v1423_v0 = vpop.f32.mrf.mxu1 }
 0x308   :  { %2106 = vtanh.f32 %v1351_v60  ;;  %v1353_v3 = vadd.f32 %v1352_v62, %v1271_v52  ;;  %v1424_v4 = vadd.f32 %v1423_v0, %v1279_v53  ;;  %v1608_v52 = vsub.f32 0.0, %v1604_v43 }
 0x309   :  { %2108 = vtanh.f32 %v1422_v61  ;;  %v1509_v24 = vpop.f32.mrf.mxu0  ;;  %v1580_v27 = vpop.f32.mrf.mxu1 }
 0x30a   :  { %2110 = vtanh.f32 %v1353_v3  ;;  %v1613_v33 = vsub.f32 %v775_v23, %v1509_v24  ;;  %v1615_v36 = vsub.f32 %v846_v28, %v1580_v27 }
 0x30b   :  { %2112 = vtanh.f32 %v1424_v4  ;;  %v1511_v31 = vpop.f32.mrf.mxu0  ;;  %v1582_v34 = vpop.f32.mrf.mxu1 }
 0x30c   :  { %v1614_v37 = vsub.f32 %v777_v25, %v1511_v31  ;;  %v1616_v11 = vsub.f32 %v848_v30, %v1582_v34  ;;  %v1617_v39 = vmul.f32 %v1613_v33, %v1613_v33  ;;  %v1619_v12 = vmul.f32 %v1615_v36, %v1615_v36 }
 0x30e   :  { %v1618_v42 = vmul.f32 %v1614_v37, %v1614_v37  ;;  %v1620_v44 = vmul.f32 %v1616_v11, %v1616_v11  ;;  %v1621_v45 = vsub.f32 0.0, %v1617_v39  ;;  %v1623_v50 = vsub.f32 0.0, %v1619_v12 }
 0x310   :  { %v1622_v51 = vsub.f32 0.0, %v1618_v42  ;;  %v1624_v53 = vsub.f32 0.0, %v1620_v44 }
 0x315   :  { %v4354_v6 = vpop.eup %2106 }
 0x316   :  { %v4356_v9 = vpop.eup %2108  ;;  %v1585_v13 = vsub.f32 0.0, %v4354_v6 }
 0x317   :  { %v4360_v14 = vpop.eup %2110  ;;  %v1587_v2 = vsub.f32 0.0, %v4356_v9 }
 0x318   :  { %v4364_v5 = vpop.eup %2112  ;;  %v1589_v15 = vmul.f32 1.442695, %v1585_v13  ;;  %v1586_v16 = vsub.f32 0.0, %v4360_v14 }
 0x319   :  { %v1593_v19 = vmul.f32 1.442695, %v1587_v2  ;;  %v1588_v20 = vsub.f32 0.0, %v4364_v5 }
 0x31a   :  { %2114 = vpow2.f32 %v1589_v15  ;;  %v1591_v26 = vmul.f32 1.442695, %v1586_v16 }
 0x31b   :  { %2116 = vpow2.f32 %v1593_v19  ;;  %v1595_v29 = vmul.f32 1.442695, %v1588_v20 }
 0x31c   :  { %2118 = vpow2.f32 %v1591_v26 }
 0x31d   :  { %2120 = vpow2.f32 %v1595_v29 }
 0x327   :  { %v2115_v46 = vpop.eup %2114 }
 0x328   :  { %v2117_v48 = vpop.eup %2116  ;;  %v1609_v56 = vmul.f32 %v2115_v46, %v1605_v58  ;;  %v1625_v49 = vmul.f32 %v2115_v46, %v1621_v45 }
 0x329   :  { %v2119_v57 = vpop.eup %2118  ;;  %v1627_v55 = vmul.f32 %v2117_v48, %v1623_v50  ;;  %v1611_v62 = vmul.f32 %v2117_v48, %v1607_v47 }
 0x32a   :  { %v2121_v54 = vpop.eup %2120  ;;  %v1610_v60 = vmul.f32 %v2119_v57, %v1606_v59  ;;  %v1626_v61 = vmul.f32 %v2119_v57, %v1622_v51  ;;  %v1638_v0 = vsub.f32 %v1609_v56, %v1625_v49  ;;  %v1629_v3 = vsub.f32 %v1609_v56, %v4354_v6  ;;  %v1885_v6 = vld [vmem:[%s4411_s12] sm:$0xff] }
 0x32b   :  { %v1628_v22 = vmul.f32 %v2121_v54, %v1624_v53  ;;  %v1612_v10 = vmul.f32 %v2121_v54, %v1608_v52  ;;  %v1640_v63 = vsub.f32 %v1611_v62, %v1627_v55  ;;  %v1631_v2 = vsub.f32 %v1611_v62, %v4356_v9 }
 0x32c   :  { %v1639_v4 = vsub.f32 %v1610_v60, %v1626_v61  ;;  %v1630_v13 = vsub.f32 %v1610_v60, %v4360_v14 }
 0x32d   :  { %v1641_v16 = vsub.f32 %v1612_v10, %v1628_v22  ;;  %v1632_v19 = vsub.f32 %v1612_v10, %v4364_v5 }
 0x32e   :  { %v1642_v1 = vadd.f32 %v1639_v4, %v1638_v0  ;;  %v1633_v15 = vadd.f32 %v1630_v13, %v1629_v3 }
 0x330   :  { %v1643_v18 = vadd.f32 %v1642_v1, %v1640_v63  ;;  %v1634_v20 = vadd.f32 %v1633_v15, %v1631_v2 }
 0x332   :  { %v1644_v24 = vadd.f32 %v1643_v18, %v1641_v16  ;;  %v1635_v23 = vadd.f32 %v1634_v20, %v1632_v19 }
 0x334   :  { %1645 = vadd.xlane.f32.xlu1 %v1644_v24 }
 0x338   :  { %1636 = vadd.xlane.f32.xlu1 %v1635_v23 }
 0x349   :  { %1887 = vperm.xlu1 %2103, %v1885_v6  }
 0x34a   :  { %2137 = shalt.err (!%p2134_p4)
}
 0x34b   :  { %1915 = dma.vmem_to_hbm [thread:$0]  %s1913_s3, 128, %s4414_s15, [#allocation5]   ;;  %v2058_v9 = vpop.f32.mrf.mxu0  ;;  %v2093_v14 = vpop.f32.mrf.mxu1  ;;  %vm1655_vm3 = vcmask 0  }
 0x34c   :  { %s2215_s12 = smov [#allocation2]   ;;  %s2216_s27 = smov [#allocation6]  }
 0x34d   :  { %v2059_v27 = vpop.f32.mrf.mxu0  ;;  %v2094_v28 = vpop.f32.mrf.mxu1  ;;  %s1902_s15 = sshll.u32 %s2215_s12, 4  ;;  %s1922_s5 = sshll.u32 %s2216_s27, 4  ;;  %s1903_s15 = int_to_ptr.vmem [resolvable:$true] %s1902_s15  ;;  %s1923_s5 = int_to_ptr.vmem [resolvable:$true] %s1922_s5 }
 0x34e   :  { %v2060_v32 = vadd.f32 %v2059_v27, %v2058_v9  ;;  %v2095_v33 = vadd.f32 %v2094_v28, %v2093_v14  ;;  %s2217_s8 = smov [#allocation7]   ;;  %s2146_s2 = scalar_lea.vmem %s1903_s15, 128 }
 0x34f   :  { %s1932_s18 = sshll.u32 %s2217_s8, 4  ;;  %p2147_p5 = scmp.ne.s32.totalorder %s1903_s15, %s2146_s2  ;;  %s1933_s18 = int_to_ptr.vmem [resolvable:$true] %s1932_s18 }
 0x350   :  { %v1882_v8 = vadd.f32 %v2095_v33, %v2060_v32  ;;  %p2151_p6 = scmp.lt.s32.totalorder %s1903_s15, %s1903_s15  ;;  %p2152_p7 = scmp.lt.s32.totalorder %s2146_s2, %s2146_s2 }
 0x352   :  { %p2153_p8 = por %p2152_p7, %p2151_p6 }
 0x354   :  { %p2154_p9 = pnand %p2153_p8, %p2147_p5 }
 0x3bd   :  { %v1646_v5 = vpop.xlane.xlu1 %1645 }
 0x3be   :  { %v1657_v26 = vrot.slane %v1646_v5, 4 }
 0x3c0   :  { %v1658_v25 = vadd.f32 %v1657_v26, %v1646_v5 }
 0x3c1   :  { %v1637_v29 = vpop.xlane.xlu1 %1636 }
 0x3c2   :  { %v1659_v30 = vrot.slane %v1658_v25, 2  ;;  %v1647_v31 = vrot.slane %v1637_v29, 4 }
 0x3c4   :  { %v1660_v34 = vadd.f32 %v1659_v30, %v1658_v25  ;;  %v1648_v7 = vadd.f32 %v1647_v31, %v1637_v29 }
 0x3c5   :  { %v1888_v35 = vpop.permute.xlu1 %1887 }
 0x3c6   :  { %v1661_v36 = vrot.slane %v1660_v34, 1  ;;  %v1649_v37 = vrot.slane %v1648_v7, 2  ;;  %vm1889_vm2 = vcmp.eq.s32.totalorder %v4140_v17, %v1888_v35 }
 0x3c7   :  { %v1955_v11 = vsel %vm1889_vm2, 1.0, %v2213_v21 }
 0x3c8   :  { %v1650_v38 = vadd.f32 %v1649_v37, %v1648_v7  ;;  %v1892_v39 = vmul.f32 0.35, %v1955_v11  ;;  %v1662_v40 = vadd.f32 %v1661_v36, %v1660_v34 }
 0x3ca   :  { %v1651_v41 = vrot.slane %v1650_v38, 1  ;;  %v1893_v12 = vsub.f32 %v1882_v8, %v1892_v39  ;;  %v1663_v42 = vmul.f32 0.125, %v1662_v40 }
 0x3cc   :  { %v1894_v43 = vmul.f32 30.0, %v1893_v12  ;;  %v1664_v44 = vmul.f32 0.5, %v1663_v42  ;;  %v1652_v58 = vadd.f32 %v1651_v41, %v1650_v38 }
 0x3ce   :  { %1895 = vst [vmem:[#allocation2] sm:$0xff] %v1894_v43  ;;  %1665 = vst.msk [vmem:[#allocation6] sm:$0x1] %vm1655_vm3, %v1664_v44  ;;  %v1654_v17 = vmul.f32 0.125, %v1652_v58 }
 0x3cf   :  { %2157 = shalt.err (!%p2154_p9)
}
 0x3d0   :  { %1905 = dma.vmem_to_hbm [thread:$0]  %s1903_s15, 128, %s4413_s14, [#allocation3]  }
 0x3d1   :  { %s2166_s1 = scalar_lea.vmem %s1923_s5, 16  ;;  %s2170_s4 = scalar_lea.vmem %s1923_s5, 32 }
 0x3d2   :  { %p2167_p10 = scmp.ne.s32.totalorder %s1923_s5, %s2166_s1  ;;  %p2171_p11 = scmp.lt.s32.totalorder %s1923_s5, %s1923_s5 }
 0x3d3   :  { %p2172_p12 = scmp.lt.s32.totalorder %s2170_s4, %s2166_s1 }
 0x3d5   :  { %p2173_p13 = por %p2172_p12, %p2171_p11 }
 0x3d7   :  { %p2174_p0 = pnand %p2173_p13, %p2167_p10 }
 0x3d9   :  { %2177 = shalt.err (!%p2174_p0)
}
 0x3da   :  { %1925 = dma.vmem_to_hbm [thread:$0]  %s1923_s5, 16, %s4415_s16, [#allocation5]   ;;  %1656 = vst.msk [vmem:[#allocation7] sm:$0x1] %vm1655_vm3, %v1654_v17 }
 0x3db   :  { %s2186_s21 = scalar_lea.vmem %s1933_s18, 16  ;;  %s2190_s22 = scalar_lea.vmem %s1933_s18, 32 }
 0x3dc   :  { %p2187_p1 = scmp.ne.s32.totalorder %s1933_s18, %s2186_s21  ;;  %p2191_p2 = scmp.lt.s32.totalorder %s1933_s18, %s1933_s18 }
 0x3dd   :  { %p2192_p3 = scmp.lt.s32.totalorder %s2190_s22, %s2186_s21 }
 0x3df   :  { %p2193_p4 = por %p2192_p3, %p2191_p2 }
 0x3e1   :  { %p2194_p5 = pnand %p2193_p4, %p2187_p1 }
 0x3e3   :  { %2197 = shalt.err (!%p2194_p5)
}
 0x3e4   :  { %1935 = dma.vmem_to_hbm [thread:$0]  %s1933_s18, 16, %s4416_s17, [#allocation8]  }
 0x3e5   :  { %2206 = dma.done.wait [#allocation3], 128  }
 0x3e6   :  { %2207 = vsyncadd [#allocation3], 4294967168 }
 0x3e7   :  { %2208 = dma.done.wait [#allocation5], 144  }
 0x3e8   :  { %2209 = vsyncadd [#allocation5], 4294967152 }
 0x3e9   :  { %2210 = dma.done.wait [#allocation8], 16  }
 0x3ea   :  { %2211 = vsyncadd [#allocation8], 4294967280 }
 0x3eb   :  { %1948 = vsyncpa [#allocation3], 1 }
 0x3ec   :  { %1949 = vsyncpa [#allocation5], 1 }
 0x3ed   :  { %1950 = vsyncpa [#allocation8], 1 }

</bundles_post_ra>
